<compile_context>
chip_gen: v7x
topology: tpu7x:2x2x1
jax: 0.10.0
libtpu: 0.0.40
codegen_flags: <defaults>
</compile_context>

<pallas_src>
import jax
import jax.numpy as jnp
import numpy as np
from jax.experimental import pallas as pl
from jax.experimental.pallas import tpu as pltpu

N_EMBD = 184
N_HEAD = 6
HEAD_SIZE = N_EMBD // N_HEAD       # 30
BLOCK_SIZE = 128
LN_EPS = 1e-5

HS_PAD = 32                         # head_size 30 -> 32 (aligned 32-lane head slices)
HCAT = N_HEAD * HS_PAD              # 192
GRP = 256                           # lane-aligned slot per Q/K/V group in fused weight
FF = 4 * N_EMBD                     # 736
FF_PAD = 768                        # 736 -> 768 (lane-dense hidden)
NEG_INF = -1e30


# ----------------------------------------------------------------------------
# Kernel
# ----------------------------------------------------------------------------
def _standardize(x):
    """LayerNorm without affine (gamma/beta are folded into downstream weights)."""
    inv_n = 1.0 / float(N_EMBD)
    mu = jnp.sum(x, axis=-1, keepdims=True) * inv_n
    d = x - mu
    var = jnp.sum(d * d, axis=-1, keepdims=True) * inv_n
    return d * jax.lax.rsqrt(var + LN_EPS)


def block_kernel(x_ref, wqkv_ref, bqkv_ref, wproj_ref, bproj_ref,
                 w1_ref, b1_ref, w2_ref, b2_ref, o_ref):
    Bb, T, C = x_ref.shape
    M = Bb * T
    x = x_ref[...].astype(jnp.float32).reshape(M, C)          # (M, 184)

    # ---------------- attention branch: x + SA(LN1(x)) ----------------
    z1 = _standardize(x).astype(jnp.bfloat16)
    # Fused Q/K/V projection: one (M,184)@(184,768) matmul. Q at lanes [0,192),
    # K at [256,448), V at [512,704). LN1 gamma/beta and the C**-0.5 attention
    # scale are already folded into wqkv / bqkv.
    qkv = jnp.dot(z1, wqkv_ref[...],
                  preferred_element_type=jnp.float32) + bqkv_ref[...]
    qkv = qkv.reshape(Bb, T, 3 * GRP).astype(jnp.bfloat16)

    row = jax.lax.broadcasted_iota(jnp.int32, (T, T), 0)
    col = jax.lax.broadcasted_iota(jnp.int32, (T, T), 1)
    causal_bias = jnp.where(row >= col, 0.0, NEG_INF)[None]   # (1, T, T) f32

    heads = []
    for h in range(N_HEAD):                                   # static unroll
        lo = h * HS_PAD
        q_h = qkv[:, :, lo:lo + HS_PAD]
        k_h = qkv[:, :, GRP + lo:GRP + lo + HS_PAD]
        v_h = qkv[:, :, 2 * GRP + lo:2 * GRP + lo + HS_PAD]
        wei = jnp.einsum('bqd,bkd->bqk', q_h, k_h,
                         preferred_element_type=jnp.float32) + causal_bias
        # keep the max subtraction: it guards the -1e30 additive mask under exp
        wei = wei - jnp.max(wei, axis=-1, keepdims=True)
        p = jnp.exp(wei)
        inv_l = pl.reciprocal(jnp.sum(p, axis=-1, keepdims=True), approx=True)
        p = (p * inv_l).astype(jnp.bfloat16)
        heads.append(jnp.einsum('bqk,bkd->bqd', p, v_h,
                                preferred_element_type=jnp.float32))

    att = jnp.concatenate(heads, axis=-1).reshape(M, HCAT).astype(jnp.bfloat16)
    sa = jnp.dot(att, wproj_ref[...],
                 preferred_element_type=jnp.float32) + bproj_ref[...]
    # TODO(synk): nn.Dropout(p=0.4) layers are identity here (eval / inference mode).
    x = x + sa

    # ---------------- feed-forward branch: x + MLP(LN2(x)) ----------------
    z2 = _standardize(x).astype(jnp.bfloat16)   # LN2 gamma/beta folded into w1/b1
    h1 = jnp.dot(z2, w1_ref[...],
                 preferred_element_type=jnp.float32) + b1_ref[...]
    h1 = jnp.maximum(h1, 0.0).astype(jnp.bfloat16)
    ff = jnp.dot(h1, w2_ref[...],
                 preferred_element_type=jnp.float32) + b2_ref[...]
    x = x + ff

    o_ref[...] = x.reshape(Bb, T, C).astype(o_ref.dtype)


# ----------------------------------------------------------------------------
# Wrapper
# ----------------------------------------------------------------------------
def _pick_block_b(B, T):
    """Rows per grid step M = bb*T: fill the MXU M-dim, cap at ~1024 rows (VMEM,
    v7x has only 64 MiB), and only split across >=2 grid steps (two v7x
    TensorCores) when each step still keeps M >= 256 rows."""
    divisors = [d for d in range(1, B + 1) if B % d == 0]
    cap = max((d for d in divisors if d * T <= 1024), default=1)
    if B // cap == 1:
        split = max((d for d in divisors
                     if d * T >= 256 and (B // d) >= 2 and (B // d) % 2 == 0),
                    default=None)
        if split is not None:
            return split
    return cap


def block_forward(x, kparams):
    B, T, C = x.shape
    assert C == N_EMBD and T % 8 == 0 and T <= BLOCK_SIZE
    bb = _pick_block_b(B, T)
    grid = (B // bb,)

    in_specs = [pl.BlockSpec((bb, T, C), lambda i: (i, 0, 0))]
    for p in kparams:                                  # full, untiled weight blocks
        in_specs.append(pl.BlockSpec(p.shape, (lambda i, _n=p.ndim: (0,) * _n)))

    return pl.pallas_call(
        block_kernel,
        out_shape=jax.ShapeDtypeStruct((B, T, C), x.dtype),
        grid=grid,
        in_specs=in_specs,
        out_specs=pl.BlockSpec((bb, T, C), lambda i: (i, 0, 0)),
        compiler_params=pltpu.CompilerParams(
            dimension_semantics=("parallel",),
            vmem_limit_bytes=48 * 1024 * 1024),
    )(x, *kparams)


# ----------------------------------------------------------------------------
# Param preparation (offline folds / padding / bf16 casts)
# ----------------------------------------------------------------------------
def prepare_kernel_params(params):
    """Fold LN affines + attention scale into weights, fuse Q/K/V, pad head/ffn
    dims, cast matmul weights to bf16. Runs once, outside the kernel."""
    (ln1g, ln1b, wq, wk, wv, wproj, bproj, ln2g, ln2b, w1, b1, w2, b2) = params
    scale = float(N_EMBD) ** -0.5
    g1 = ln1g.reshape(N_EMBD, 1)
    beta1 = ln1b.reshape(1, N_EMBD)

    # Fused Q/K/V weight (C, 3*GRP). With x_norm = z*g1 + beta1:
    #   q = z @ (g1*Wq)*scale + (beta1 @ Wq)*scale, and K/V likewise (scale=1).
    wqkv = jnp.zeros((N_EMBD, 3 * GRP), jnp.float32)
    bqkv = jnp.zeros((1, 3 * GRP), jnp.float32)
    for grp, (w, s) in enumerate([(wq, scale), (wk, 1.0), (wv, 1.0)]):
        for h in range(N_HEAD):
            lo = grp * GRP + h * HS_PAD
            wqkv = wqkv.at[:, lo:lo + HEAD_SIZE].set(s * (g1 * w[h]))
            bqkv = bqkv.at[:, lo:lo + HEAD_SIZE].set(s * (beta1 @ w[h]))

    # Output projection: (H*hs, C) -> (H*HS_PAD, C) with zero rows in the head pad.
    wproj_h = wproj.reshape(N_HEAD, HEAD_SIZE, N_EMBD)
    wproj_h = jnp.pad(wproj_h, ((0, 0), (0, HS_PAD - HEAD_SIZE), (0, 0)))
    wproj_p = wproj_h.reshape(HCAT, N_EMBD).astype(jnp.bfloat16)

    # MLP: fold LN2 affine into the first linear; pad hidden 736 -> 768 (zeros
    # in the pad columns/rows, so ReLU(0)=0 contributes nothing through w2).
    g2 = ln2g.reshape(N_EMBD, 1)
    beta2 = ln2b.reshape(1, N_EMBD)
    w1_eff = g2 * w1
    b1_eff = b1 + beta2 @ w1
    w1_p = jnp.pad(w1_eff, ((0, 0), (0, FF_PAD - FF))).astype(jnp.bfloat16)
    b1_p = jnp.pad(b1_eff, ((0, 0), (0, FF_PAD - FF)))
    w2_p = jnp.pad(w2, ((0, FF_PAD - FF), (0, 0))).astype(jnp.bfloat16)

    return [wqkv.astype(jnp.bfloat16), bqkv, wproj_p, bproj,
            w1_p, b1_p, w2_p, b2]


# ----------------------------------------------------------------------------
# Init + pure-JAX reference (mirrors the PyTorch Block forward, eval mode)
# ----------------------------------------------------------------------------
def init_params(key):
    ks = jax.random.split(key, 9)

    def lin_w(k, fan_in, shape):
        return jax.random.normal(k, shape, jnp.float32) / np.sqrt(fan_in)

    wq = lin_w(ks[0], N_EMBD, (N_HEAD, N_EMBD, HEAD_SIZE))
    wk = lin_w(ks[1], N_EMBD, (N_HEAD, N_EMBD, HEAD_SIZE))
    wv = lin_w(ks[2], N_EMBD, (N_HEAD, N_EMBD, HEAD_SIZE))
    wproj = lin_w(ks[3], N_HEAD * HEAD_SIZE, (N_HEAD * HEAD_SIZE, N_EMBD))
    bproj = 0.01 * jax.random.normal(ks[4], (1, N_EMBD), jnp.float32)
    ln1g = jnp.ones((1, N_EMBD), jnp.float32)
    ln1b = jnp.zeros((1, N_EMBD), jnp.float32)
    ln2g = jnp.ones((1, N_EMBD), jnp.float32)
    ln2b = jnp.zeros((1, N_EMBD), jnp.float32)
    w1 = lin_w(ks[5], N_EMBD, (N_EMBD, FF))
    b1 = 0.01 * jax.random.normal(ks[6], (1, FF), jnp.float32)
    w2 = lin_w(ks[7], FF, (FF, N_EMBD))
    b2 = 0.01 * jax.random.normal(ks[8], (1, N_EMBD), jnp.float32)

    return [ln1g, ln1b, wq, wk, wv, wproj, bproj, ln2g, ln2b, w1, b1, w2, b2]


def _layernorm_ref(x, g, b):
    mu = jnp.mean(x, axis=-1, keepdims=True)
    var = jnp.mean(jnp.square(x - mu), axis=-1, keepdims=True)
    return (x - mu) * jax.lax.rsqrt(var + LN_EPS) * g + b


def block_reference(x, params):
    (ln1g, ln1b, wq, wk, wv, wproj, bproj, ln2g, ln2b, w1, b1, w2, b2) = params
    B, T, C = x.shape
    xn = _layernorm_ref(x, ln1g, ln1b)
    causal = jnp.tril(jnp.ones((T, T), bool))
    scale = float(N_EMBD) ** -0.5                      # PyTorch Head: C**-0.5, C=n_embd
    outs = []
    for h in range(N_HEAD):
        k = xn @ wk[h]
        q = xn @ wq[h]
        v = xn @ wv[h]
        wei = jnp.einsum("btd,bsd->bts", q, k) * scale
        wei = jnp.where(causal[None], wei, -jnp.inf)
        wei = jax.nn.softmax(wei, axis=-1)
        outs.append(jnp.einsum("bts,bsd->btd", wei, v))
    sa = jnp.concatenate(outs, axis=-1) @ wproj + bproj
    x = x + sa
    xn2 = _layernorm_ref(x, ln2g, ln2b)
    ff = jnp.maximum(xn2 @ w1 + b1, 0.0) @ w2 + b2
    return x + ff


if __name__ == "__main__":
    key = jax.random.PRNGKey(0)
    k_x, k_p = jax.random.split(key)

    B, T = 2, 16                                     # small shapes; T <= block_size (128)
    x = jax.random.normal(k_x, (B, T, N_EMBD), jnp.float32)
    params = init_params(k_p)
    kparams = prepare_kernel_params(params)

    out = jax.block_until_ready(jax.jit(block_forward)(x, kparams))
    ref = jax.block_until_ready(block_reference(x, params))

    assert out.shape == (B, T, N_EMBD)
    np.testing.assert_allclose(np.asarray(out), np.asarray(ref), rtol=5e-2, atol=5e-2)

    print("KERNEL_OK")
</pallas_src>

<mosaic_0001>
module attributes {stable_mosaic.version = 11 : i64} {
  func.func @block_kernel(%arg0: i32, %arg1: memref<2x16x184xf32, #tpu.memory_space<vmem>>, %arg2: memref<184x768xbf16, #tpu.memory_space<vmem>>, %arg3: memref<1x768xf32, #tpu.memory_space<vmem>>, %arg4: memref<192x184xbf16, #tpu.memory_space<vmem>>, %arg5: memref<1x184xf32, #tpu.memory_space<vmem>>, %arg6: memref<184x768xbf16, #tpu.memory_space<vmem>>, %arg7: memref<1x768xf32, #tpu.memory_space<vmem>>, %arg8: memref<768x184xbf16, #tpu.memory_space<vmem>>, %arg9: memref<1x184xf32, #tpu.memory_space<vmem>>, %arg10: memref<2x16x184xf32, #tpu.memory_space<vmem>>) attributes {dimension_semantics = [#tpu.dimension_semantics<parallel>], iteration_bounds = array<i64: 1>, scalar_prefetch = 0 : i64, scratch_operands = 0 : i64, tpu.core_type = #tpu.core_type<tc>, window_params = [{transform_indices = @transform_0, window_bounds = array<i64: 2, 16, 184>}, {pipeline_mode = #tpu.pipeline_mode<synchronous>, transform_indices = @transform_1, window_bounds = array<i64: 184, 768>}, {pipeline_mode = #tpu.pipeline_mode<synchronous>, transform_indices = @transform_2, window_bounds = array<i64: 1, 768>}, {pipeline_mode = #tpu.pipeline_mode<synchronous>, transform_indices = @transform_3, window_bounds = array<i64: 192, 184>}, {pipeline_mode = #tpu.pipeline_mode<synchronous>, transform_indices = @transform_4, window_bounds = array<i64: 1, 184>}, {pipeline_mode = #tpu.pipeline_mode<synchronous>, transform_indices = @transform_5, window_bounds = array<i64: 184, 768>}, {pipeline_mode = #tpu.pipeline_mode<synchronous>, transform_indices = @transform_6, window_bounds = array<i64: 1, 768>}, {pipeline_mode = #tpu.pipeline_mode<synchronous>, transform_indices = @transform_7, window_bounds = array<i64: 768, 184>}, {pipeline_mode = #tpu.pipeline_mode<synchronous>, transform_indices = @transform_8, window_bounds = array<i64: 1, 184>}, {transform_indices = @transform_9, window_bounds = array<i64: 2, 16, 184>}]} {
    %c0 = arith.constant 0 : index
    %c0_0 = arith.constant 0 : index
    %c0_1 = arith.constant 0 : index
    %0 = vector.load %arg1[%c0, %c0_0, %c0_1] : memref<2x16x184xf32, #tpu.memory_space<vmem>>, vector<2x16x184xf32>
    %1 = vector.shape_cast %0 : vector<2x16x184xf32> to vector<32x184xf32>
    %cst = arith.constant dense<0.000000e+00> : vector<32xf32>
    %2 = vector.multi_reduction <add>, %1, %cst [1] : vector<32x184xf32> to vector<32xf32>
    %3 = vector.shape_cast %2 : vector<32xf32> to vector<32x1xf32>
    %cst_2 = arith.constant 0.00543478271 : f32
    %4 = vector.broadcast %cst_2 : f32 to vector<32x1xf32>
    %5 = arith.mulf %3, %4 : vector<32x1xf32>
    %6 = vector.broadcast %5 : vector<32x1xf32> to vector<32x184xf32>
    %7 = arith.subf %1, %6 : vector<32x184xf32>
    %8 = arith.mulf %7, %7 : vector<32x184xf32>
    %cst_3 = arith.constant dense<0.000000e+00> : vector<32xf32>
    %9 = vector.multi_reduction <add>, %8, %cst_3 [1] : vector<32x184xf32> to vector<32xf32>
    %10 = vector.shape_cast %9 : vector<32xf32> to vector<32x1xf32>
    %cst_4 = arith.constant 0.00543478271 : f32
    %11 = vector.broadcast %cst_4 : f32 to vector<32x1xf32>
    %12 = arith.mulf %10, %11 : vector<32x1xf32>
    %cst_5 = arith.constant 9.99999974E-6 : f32
    %13 = vector.broadcast %cst_5 : f32 to vector<32x1xf32>
    %14 = arith.addf %12, %13 : vector<32x1xf32>
    %15 = math.rsqrt %14 : vector<32x1xf32>
    %16 = vector.broadcast %15 : vector<32x1xf32> to vector<32x184xf32>
    %17 = arith.mulf %7, %16 : vector<32x184xf32>
    %18 = arith.truncf %17 : vector<32x184xf32> to vector<32x184xbf16>
    %c0_6 = arith.constant 0 : index
    %c0_7 = arith.constant 0 : index
    %19 = vector.load %arg2[%c0_6, %c0_7] : memref<184x768xbf16, #tpu.memory_space<vmem>>, vector<184x768xbf16>
    %cst_8 = arith.constant dense<0.000000e+00> : vector<32x768xf32>
    %20 = tpu.matmul %18, %19, %cst_8 {dimension_numbers = #tpu.dot_dimension_numbers<[1], [0], [0], [1], [0, 0, 1, 1], [], []>} : vector<32x184xbf16>, vector<184x768xbf16>, vector<32x768xf32> -> vector<32x768xf32>
    %c0_9 = arith.constant 0 : index
    %c0_10 = arith.constant 0 : index
    %21 = vector.load %arg3[%c0_9, %c0_10] : memref<1x768xf32, #tpu.memory_space<vmem>>, vector<1x768xf32>
    %22 = vector.broadcast %21 : vector<1x768xf32> to vector<32x768xf32>
    %23 = arith.addf %20, %22 : vector<32x768xf32>
    %24 = vector.shape_cast %23 : vector<32x768xf32> to vector<2x16x768xf32>
    %25 = arith.truncf %24 : vector<2x16x768xf32> to vector<2x16x768xbf16>
    %26 = tpu.iota {dimensions = array<i32: 0>} : vector<16x16xi32>
    %27 = tpu.iota {dimensions = array<i32: 1>} : vector<16x16xi32>
    %28 = arith.cmpi sge, %26, %27 : vector<16x16xi32>
    %cst_11 = arith.constant 0.000000e+00 : f32
    %cst_12 = arith.constant -1.000000e+30 : f32
    %29 = vector.broadcast %cst_11 : f32 to vector<16x16xf32>
    %30 = vector.broadcast %cst_12 : f32 to vector<16x16xf32>
    %31 = arith.select %28, %29, %30 : vector<16x16xi1>, vector<16x16xf32>
    %32 = vector.shape_cast %31 : vector<16x16xf32> to vector<1x16x16xf32>
    %33 = vector.extract_strided_slice %25 {offsets = [0, 0, 0], sizes = [2, 16, 32], strides = [1, 1, 1]} : vector<2x16x768xbf16> to vector<2x16x32xbf16>
    %34 = vector.extract_strided_slice %25 {offsets = [0, 0, 256], sizes = [2, 16, 32], strides = [1, 1, 1]} : vector<2x16x768xbf16> to vector<2x16x32xbf16>
    %35 = vector.extract_strided_slice %25 {offsets = [0, 0, 512], sizes = [2, 16, 32], strides = [1, 1, 1]} : vector<2x16x768xbf16> to vector<2x16x32xbf16>
    "tpu.trace_start"() <{level = 10 : i32, message = "bqd,bkd->bqk"}> : () -> ()
    %cst_13 = arith.constant dense<0.000000e+00> : vector<2x16x16xf32>
    %36 = tpu.matmul %33, %34, %cst_13 {dimension_numbers = #tpu.dot_dimension_numbers<[2], [2], [1], [1], [0, 0, 0, 1, 1, 1], [0], [0]>} : vector<2x16x32xbf16>, vector<2x16x32xbf16>, vector<2x16x16xf32> -> vector<2x16x16xf32>
    "tpu.trace_stop"() : () -> ()
    %37 = vector.broadcast %32 : vector<1x16x16xf32> to vector<2x16x16xf32>
    %38 = arith.addf %36, %37 : vector<2x16x16xf32>
    %cst_14 = arith.constant dense<0xFF800000> : vector<2x16xf32>
    %39 = vector.multi_reduction <maximumf>, %38, %cst_14 [2] : vector<2x16x16xf32> to vector<2x16xf32>
    %40 = vector.shape_cast %39 : vector<2x16xf32> to vector<2x16x1xf32>
    %41 = vector.broadcast %40 : vector<2x16x1xf32> to vector<2x16x16xf32>
    %42 = arith.subf %38, %41 : vector<2x16x16xf32>
    %43 = math.exp %42 : vector<2x16x16xf32>
    %cst_15 = arith.constant dense<0.000000e+00> : vector<2x16xf32>
    %44 = vector.multi_reduction <add>, %43, %cst_15 [2] : vector<2x16x16xf32> to vector<2x16xf32>
    %45 = vector.shape_cast %44 : vector<2x16xf32> to vector<2x16x1xf32>
    %46 = tpu.reciprocal %45 {approx = true} : vector<2x16x1xf32> -> vector<2x16x1xf32>
    %47 = vector.broadcast %46 : vector<2x16x1xf32> to vector<2x16x16xf32>
    %48 = arith.mulf %43, %47 : vector<2x16x16xf32>
    %49 = arith.truncf %48 : vector<2x16x16xf32> to vector<2x16x16xbf16>
    "tpu.trace_start"() <{level = 10 : i32, message = "bqk,bkd->bqd"}> : () -> ()
    %cst_16 = arith.constant dense<0.000000e+00> : vector<2x16x32xf32>
    %50 = tpu.matmul %49, %35, %cst_16 {dimension_numbers = #tpu.dot_dimension_numbers<[2], [1], [1], [2], [0, 0, 0, 1, 1, 2], [0], [0]>} : vector<2x16x16xbf16>, vector<2x16x32xbf16>, vector<2x16x32xf32> -> vector<2x16x32xf32>
    "tpu.trace_stop"() : () -> ()
    %51 = vector.extract_strided_slice %25 {offsets = [0, 0, 32], sizes = [2, 16, 32], strides = [1, 1, 1]} : vector<2x16x768xbf16> to vector<2x16x32xbf16>
    %52 = vector.extract_strided_slice %25 {offsets = [0, 0, 288], sizes = [2, 16, 32], strides = [1, 1, 1]} : vector<2x16x768xbf16> to vector<2x16x32xbf16>
    %53 = vector.extract_strided_slice %25 {offsets = [0, 0, 544], sizes = [2, 16, 32], strides = [1, 1, 1]} : vector<2x16x768xbf16> to vector<2x16x32xbf16>
    "tpu.trace_start"() <{level = 10 : i32, message = "bqd,bkd->bqk"}> : () -> ()
    %cst_17 = arith.constant dense<0.000000e+00> : vector<2x16x16xf32>
    %54 = tpu.matmul %51, %52, %cst_17 {dimension_numbers = #tpu.dot_dimension_numbers<[2], [2], [1], [1], [0, 0, 0, 1, 1, 1], [0], [0]>} : vector<2x16x32xbf16>, vector<2x16x32xbf16>, vector<2x16x16xf32> -> vector<2x16x16xf32>
    "tpu.trace_stop"() : () -> ()
    %55 = vector.broadcast %32 : vector<1x16x16xf32> to vector<2x16x16xf32>
    %56 = arith.addf %54, %55 : vector<2x16x16xf32>
    %cst_18 = arith.constant dense<0xFF800000> : vector<2x16xf32>
    %57 = vector.multi_reduction <maximumf>, %56, %cst_18 [2] : vector<2x16x16xf32> to vector<2x16xf32>
    %58 = vector.shape_cast %57 : vector<2x16xf32> to vector<2x16x1xf32>
    %59 = vector.broadcast %58 : vector<2x16x1xf32> to vector<2x16x16xf32>
    %60 = arith.subf %56, %59 : vector<2x16x16xf32>
    %61 = math.exp %60 : vector<2x16x16xf32>
    %cst_19 = arith.constant dense<0.000000e+00> : vector<2x16xf32>
    %62 = vector.multi_reduction <add>, %61, %cst_19 [2] : vector<2x16x16xf32> to vector<2x16xf32>
    %63 = vector.shape_cast %62 : vector<2x16xf32> to vector<2x16x1xf32>
    %64 = tpu.reciprocal %63 {approx = true} : vector<2x16x1xf32> -> vector<2x16x1xf32>
    %65 = vector.broadcast %64 : vector<2x16x1xf32> to vector<2x16x16xf32>
    %66 = arith.mulf %61, %65 : vector<2x16x16xf32>
    %67 = arith.truncf %66 : vector<2x16x16xf32> to vector<2x16x16xbf16>
    "tpu.trace_start"() <{level = 10 : i32, message = "bqk,bkd->bqd"}> : () -> ()
    %cst_20 = arith.constant dense<0.000000e+00> : vector<2x16x32xf32>
    %68 = tpu.matmul %67, %53, %cst_20 {dimension_numbers = #tpu.dot_dimension_numbers<[2], [1], [1], [2], [0, 0, 0, 1, 1, 2], [0], [0]>} : vector<2x16x16xbf16>, vector<2x16x32xbf16>, vector<2x16x32xf32> -> vector<2x16x32xf32>
    "tpu.trace_stop"() : () -> ()
    %69 = vector.extract_strided_slice %25 {offsets = [0, 0, 64], sizes = [2, 16, 32], strides = [1, 1, 1]} : vector<2x16x768xbf16> to vector<2x16x32xbf16>
    %70 = vector.extract_strided_slice %25 {offsets = [0, 0, 320], sizes = [2, 16, 32], strides = [1, 1, 1]} : vector<2x16x768xbf16> to vector<2x16x32xbf16>
    %71 = vector.extract_strided_slice %25 {offsets = [0, 0, 576], sizes = [2, 16, 32], strides = [1, 1, 1]} : vector<2x16x768xbf16> to vector<2x16x32xbf16>
    "tpu.trace_start"() <{level = 10 : i32, message = "bqd,bkd->bqk"}> : () -> ()
    %cst_21 = arith.constant dense<0.000000e+00> : vector<2x16x16xf32>
    %72 = tpu.matmul %69, %70, %cst_21 {dimension_numbers = #tpu.dot_dimension_numbers<[2], [2], [1], [1], [0, 0, 0, 1, 1, 1], [0], [0]>} : vector<2x16x32xbf16>, vector<2x16x32xbf16>, vector<2x16x16xf32> -> vector<2x16x16xf32>
    "tpu.trace_stop"() : () -> ()
    %73 = vector.broadcast %32 : vector<1x16x16xf32> to vector<2x16x16xf32>
    %74 = arith.addf %72, %73 : vector<2x16x16xf32>
    %cst_22 = arith.constant dense<0xFF800000> : vector<2x16xf32>
    %75 = vector.multi_reduction <maximumf>, %74, %cst_22 [2] : vector<2x16x16xf32> to vector<2x16xf32>
    %76 = vector.shape_cast %75 : vector<2x16xf32> to vector<2x16x1xf32>
    %77 = vector.broadcast %76 : vector<2x16x1xf32> to vector<2x16x16xf32>
    %78 = arith.subf %74, %77 : vector<2x16x16xf32>
    %79 = math.exp %78 : vector<2x16x16xf32>
    %cst_23 = arith.constant dense<0.000000e+00> : vector<2x16xf32>
    %80 = vector.multi_reduction <add>, %79, %cst_23 [2] : vector<2x16x16xf32> to vector<2x16xf32>
    %81 = vector.shape_cast %80 : vector<2x16xf32> to vector<2x16x1xf32>
    %82 = tpu.reciprocal %81 {approx = true} : vector<2x16x1xf32> -> vector<2x16x1xf32>
    %83 = vector.broadcast %82 : vector<2x16x1xf32> to vector<2x16x16xf32>
    %84 = arith.mulf %79, %83 : vector<2x16x16xf32>
    %85 = arith.truncf %84 : vector<2x16x16xf32> to vector<2x16x16xbf16>
    "tpu.trace_start"() <{level = 10 : i32, message = "bqk,bkd->bqd"}> : () -> ()
    %cst_24 = arith.constant dense<0.000000e+00> : vector<2x16x32xf32>
    %86 = tpu.matmul %85, %71, %cst_24 {dimension_numbers = #tpu.dot_dimension_numbers<[2], [1], [1], [2], [0, 0, 0, 1, 1, 2], [0], [0]>} : vector<2x16x16xbf16>, vector<2x16x32xbf16>, vector<2x16x32xf32> -> vector<2x16x32xf32>
    "tpu.trace_stop"() : () -> ()
    %87 = vector.extract_strided_slice %25 {offsets = [0, 0, 96], sizes = [2, 16, 32], strides = [1, 1, 1]} : vector<2x16x768xbf16> to vector<2x16x32xbf16>
    %88 = vector.extract_strided_slice %25 {offsets = [0, 0, 352], sizes = [2, 16, 32], strides = [1, 1, 1]} : vector<2x16x768xbf16> to vector<2x16x32xbf16>
    %89 = vector.extract_strided_slice %25 {offsets = [0, 0, 608], sizes = [2, 16, 32], strides = [1, 1, 1]} : vector<2x16x768xbf16> to vector<2x16x32xbf16>
    "tpu.trace_start"() <{level = 10 : i32, message = "bqd,bkd->bqk"}> : () -> ()
    %cst_25 = arith.constant dense<0.000000e+00> : vector<2x16x16xf32>
    %90 = tpu.matmul %87, %88, %cst_25 {dimension_numbers = #tpu.dot_dimension_numbers<[2], [2], [1], [1], [0, 0, 0, 1, 1, 1], [0], [0]>} : vector<2x16x32xbf16>, vector<2x16x32xbf16>, vector<2x16x16xf32> -> vector<2x16x16xf32>
    "tpu.trace_stop"() : () -> ()
    %91 = vector.broadcast %32 : vector<1x16x16xf32> to vector<2x16x16xf32>
    %92 = arith.addf %90, %91 : vector<2x16x16xf32>
    %cst_26 = arith.constant dense<0xFF800000> : vector<2x16xf32>
    %93 = vector.multi_reduction <maximumf>, %92, %cst_26 [2] : vector<2x16x16xf32> to vector<2x16xf32>
    %94 = vector.shape_cast %93 : vector<2x16xf32> to vector<2x16x1xf32>
    %95 = vector.broadcast %94 : vector<2x16x1xf32> to vector<2x16x16xf32>
    %96 = arith.subf %92, %95 : vector<2x16x16xf32>
    %97 = math.exp %96 : vector<2x16x16xf32>
    %cst_27 = arith.constant dense<0.000000e+00> : vector<2x16xf32>
    %98 = vector.multi_reduction <add>, %97, %cst_27 [2] : vector<2x16x16xf32> to vector<2x16xf32>
    %99 = vector.shape_cast %98 : vector<2x16xf32> to vector<2x16x1xf32>
    %100 = tpu.reciprocal %99 {approx = true} : vector<2x16x1xf32> -> vector<2x16x1xf32>
    %101 = vector.broadcast %100 : vector<2x16x1xf32> to vector<2x16x16xf32>
    %102 = arith.mulf %97, %101 : vector<2x16x16xf32>
    %103 = arith.truncf %102 : vector<2x16x16xf32> to vector<2x16x16xbf16>
    "tpu.trace_start"() <{level = 10 : i32, message = "bqk,bkd->bqd"}> : () -> ()
    %cst_28 = arith.constant dense<0.000000e+00> : vector<2x16x32xf32>
    %104 = tpu.matmul %103, %89, %cst_28 {dimension_numbers = #tpu.dot_dimension_numbers<[2], [1], [1], [2], [0, 0, 0, 1, 1, 2], [0], [0]>} : vector<2x16x16xbf16>, vector<2x16x32xbf16>, vector<2x16x32xf32> -> vector<2x16x32xf32>
    "tpu.trace_stop"() : () -> ()
    %105 = vector.extract_strided_slice %25 {offsets = [0, 0, 128], sizes = [2, 16, 32], strides = [1, 1, 1]} : vector<2x16x768xbf16> to vector<2x16x32xbf16>
    %106 = vector.extract_strided_slice %25 {offsets = [0, 0, 384], sizes = [2, 16, 32], strides = [1, 1, 1]} : vector<2x16x768xbf16> to vector<2x16x32xbf16>
    %107 = vector.extract_strided_slice %25 {offsets = [0, 0, 640], sizes = [2, 16, 32], strides = [1, 1, 1]} : vector<2x16x768xbf16> to vector<2x16x32xbf16>
    "tpu.trace_start"() <{level = 10 : i32, message = "bqd,bkd->bqk"}> : () -> ()
    %cst_29 = arith.constant dense<0.000000e+00> : vector<2x16x16xf32>
    %108 = tpu.matmul %105, %106, %cst_29 {dimension_numbers = #tpu.dot_dimension_numbers<[2], [2], [1], [1], [0, 0, 0, 1, 1, 1], [0], [0]>} : vector<2x16x32xbf16>, vector<2x16x32xbf16>, vector<2x16x16xf32> -> vector<2x16x16xf32>
    "tpu.trace_stop"() : () -> ()
    %109 = vector.broadcast %32 : vector<1x16x16xf32> to vector<2x16x16xf32>
    %110 = arith.addf %108, %109 : vector<2x16x16xf32>
    %cst_30 = arith.constant dense<0xFF800000> : vector<2x16xf32>
    %111 = vector.multi_reduction <maximumf>, %110, %cst_30 [2] : vector<2x16x16xf32> to vector<2x16xf32>
    %112 = vector.shape_cast %111 : vector<2x16xf32> to vector<2x16x1xf32>
    %113 = vector.broadcast %112 : vector<2x16x1xf32> to vector<2x16x16xf32>
    %114 = arith.subf %110, %113 : vector<2x16x16xf32>
    %115 = math.exp %114 : vector<2x16x16xf32>
    %cst_31 = arith.constant dense<0.000000e+00> : vector<2x16xf32>
    %116 = vector.multi_reduction <add>, %115, %cst_31 [2] : vector<2x16x16xf32> to vector<2x16xf32>
    %117 = vector.shape_cast %116 : vector<2x16xf32> to vector<2x16x1xf32>
    %118 = tpu.reciprocal %117 {approx = true} : vector<2x16x1xf32> -> vector<2x16x1xf32>
    %119 = vector.broadcast %118 : vector<2x16x1xf32> to vector<2x16x16xf32>
    %120 = arith.mulf %115, %119 : vector<2x16x16xf32>
    %121 = arith.truncf %120 : vector<2x16x16xf32> to vector<2x16x16xbf16>
    "tpu.trace_start"() <{level = 10 : i32, message = "bqk,bkd->bqd"}> : () -> ()
    %cst_32 = arith.constant dense<0.000000e+00> : vector<2x16x32xf32>
    %122 = tpu.matmul %121, %107, %cst_32 {dimension_numbers = #tpu.dot_dimension_numbers<[2], [1], [1], [2], [0, 0, 0, 1, 1, 2], [0], [0]>} : vector<2x16x16xbf16>, vector<2x16x32xbf16>, vector<2x16x32xf32> -> vector<2x16x32xf32>
    "tpu.trace_stop"() : () -> ()
    %123 = vector.extract_strided_slice %25 {offsets = [0, 0, 160], sizes = [2, 16, 32], strides = [1, 1, 1]} : vector<2x16x768xbf16> to vector<2x16x32xbf16>
    %124 = vector.extract_strided_slice %25 {offsets = [0, 0, 416], sizes = [2, 16, 32], strides = [1, 1, 1]} : vector<2x16x768xbf16> to vector<2x16x32xbf16>
    %125 = vector.extract_strided_slice %25 {offsets = [0, 0, 672], sizes = [2, 16, 32], strides = [1, 1, 1]} : vector<2x16x768xbf16> to vector<2x16x32xbf16>
    "tpu.trace_start"() <{level = 10 : i32, message = "bqd,bkd->bqk"}> : () -> ()
    %cst_33 = arith.constant dense<0.000000e+00> : vector<2x16x16xf32>
    %126 = tpu.matmul %123, %124, %cst_33 {dimension_numbers = #tpu.dot_dimension_numbers<[2], [2], [1], [1], [0, 0, 0, 1, 1, 1], [0], [0]>} : vector<2x16x32xbf16>, vector<2x16x32xbf16>, vector<2x16x16xf32> -> vector<2x16x16xf32>
    "tpu.trace_stop"() : () -> ()
    %127 = vector.broadcast %32 : vector<1x16x16xf32> to vector<2x16x16xf32>
    %128 = arith.addf %126, %127 : vector<2x16x16xf32>
    %cst_34 = arith.constant dense<0xFF800000> : vector<2x16xf32>
    %129 = vector.multi_reduction <maximumf>, %128, %cst_34 [2] : vector<2x16x16xf32> to vector<2x16xf32>
    %130 = vector.shape_cast %129 : vector<2x16xf32> to vector<2x16x1xf32>
    %131 = vector.broadcast %130 : vector<2x16x1xf32> to vector<2x16x16xf32>
    %132 = arith.subf %128, %131 : vector<2x16x16xf32>
    %133 = math.exp %132 : vector<2x16x16xf32>
    %cst_35 = arith.constant dense<0.000000e+00> : vector<2x16xf32>
    %134 = vector.multi_reduction <add>, %133, %cst_35 [2] : vector<2x16x16xf32> to vector<2x16xf32>
    %135 = vector.shape_cast %134 : vector<2x16xf32> to vector<2x16x1xf32>
    %136 = tpu.reciprocal %135 {approx = true} : vector<2x16x1xf32> -> vector<2x16x1xf32>
    %137 = vector.broadcast %136 : vector<2x16x1xf32> to vector<2x16x16xf32>
    %138 = arith.mulf %133, %137 : vector<2x16x16xf32>
    %139 = arith.truncf %138 : vector<2x16x16xf32> to vector<2x16x16xbf16>
    "tpu.trace_start"() <{level = 10 : i32, message = "bqk,bkd->bqd"}> : () -> ()
    %cst_36 = arith.constant dense<0.000000e+00> : vector<2x16x32xf32>
    %140 = tpu.matmul %139, %125, %cst_36 {dimension_numbers = #tpu.dot_dimension_numbers<[2], [1], [1], [2], [0, 0, 0, 1, 1, 2], [0], [0]>} : vector<2x16x16xbf16>, vector<2x16x32xbf16>, vector<2x16x32xf32> -> vector<2x16x32xf32>
    "tpu.trace_stop"() : () -> ()
    %141 = tpu.concatenate %50, %68, %86, %104, %122, %140 in 2 : vector<2x16x32xf32>, vector<2x16x32xf32>, vector<2x16x32xf32>, vector<2x16x32xf32>, vector<2x16x32xf32>, vector<2x16x32xf32> -> vector<2x16x192xf32>
    %142 = vector.shape_cast %141 : vector<2x16x192xf32> to vector<32x192xf32>
    %143 = arith.truncf %142 : vector<32x192xf32> to vector<32x192xbf16>
    %c0_37 = arith.constant 0 : index
    %c0_38 = arith.constant 0 : index
    %144 = vector.load %arg4[%c0_37, %c0_38] : memref<192x184xbf16, #tpu.memory_space<vmem>>, vector<192x184xbf16>
    %cst_39 = arith.constant dense<0.000000e+00> : vector<32x184xf32>
    %145 = tpu.matmul %143, %144, %cst_39 {dimension_numbers = #tpu.dot_dimension_numbers<[1], [0], [0], [1], [0, 0, 1, 1], [], []>} : vector<32x192xbf16>, vector<192x184xbf16>, vector<32x184xf32> -> vector<32x184xf32>
    %c0_40 = arith.constant 0 : index
    %c0_41 = arith.constant 0 : index
    %146 = vector.load %arg5[%c0_40, %c0_41] : memref<1x184xf32, #tpu.memory_space<vmem>>, vector<1x184xf32>
    %147 = vector.broadcast %146 : vector<1x184xf32> to vector<32x184xf32>
    %148 = arith.addf %145, %147 : vector<32x184xf32>
    %149 = arith.addf %1, %148 : vector<32x184xf32>
    %cst_42 = arith.constant dense<0.000000e+00> : vector<32xf32>
    %150 = vector.multi_reduction <add>, %149, %cst_42 [1] : vector<32x184xf32> to vector<32xf32>
    %151 = vector.shape_cast %150 : vector<32xf32> to vector<32x1xf32>
    %cst_43 = arith.constant 0.00543478271 : f32
    %152 = vector.broadcast %cst_43 : f32 to vector<32x1xf32>
    %153 = arith.mulf %151, %152 : vector<32x1xf32>
    %154 = vector.broadcast %153 : vector<32x1xf32> to vector<32x184xf32>
    %155 = arith.subf %149, %154 : vector<32x184xf32>
    %156 = arith.mulf %155, %155 : vector<32x184xf32>
    %cst_44 = arith.constant dense<0.000000e+00> : vector<32xf32>
    %157 = vector.multi_reduction <add>, %156, %cst_44 [1] : vector<32x184xf32> to vector<32xf32>
    %158 = vector.shape_cast %157 : vector<32xf32> to vector<32x1xf32>
    %cst_45 = arith.constant 0.00543478271 : f32
    %159 = vector.broadcast %cst_45 : f32 to vector<32x1xf32>
    %160 = arith.mulf %158, %159 : vector<32x1xf32>
    %cst_46 = arith.constant 9.99999974E-6 : f32
    %161 = vector.broadcast %cst_46 : f32 to vector<32x1xf32>
    %162 = arith.addf %160, %161 : vector<32x1xf32>
    %163 = math.rsqrt %162 : vector<32x1xf32>
    %164 = vector.broadcast %163 : vector<32x1xf32> to vector<32x184xf32>
    %165 = arith.mulf %155, %164 : vector<32x184xf32>
    %166 = arith.truncf %165 : vector<32x184xf32> to vector<32x184xbf16>
    %c0_47 = arith.constant 0 : index
    %c0_48 = arith.constant 0 : index
    %167 = vector.load %arg6[%c0_47, %c0_48] : memref<184x768xbf16, #tpu.memory_space<vmem>>, vector<184x768xbf16>
    %cst_49 = arith.constant dense<0.000000e+00> : vector<32x768xf32>
    %168 = tpu.matmul %166, %167, %cst_49 {dimension_numbers = #tpu.dot_dimension_numbers<[1], [0], [0], [1], [0, 0, 1, 1], [], []>} : vector<32x184xbf16>, vector<184x768xbf16>, vector<32x768xf32> -> vector<32x768xf32>
    %c0_50 = arith.constant 0 : index
    %c0_51 = arith.constant 0 : index
    %169 = vector.load %arg7[%c0_50, %c0_51] : memref<1x768xf32, #tpu.memory_space<vmem>>, vector<1x768xf32>
    %170 = vector.broadcast %169 : vector<1x768xf32> to vector<32x768xf32>
    %171 = arith.addf %168, %170 : vector<32x768xf32>
    %cst_52 = arith.constant 0.000000e+00 : f32
    %172 = vector.broadcast %cst_52 : f32 to vector<32x768xf32>
    %173 = arith.maximumf %171, %172 : vector<32x768xf32>
    %174 = arith.truncf %173 : vector<32x768xf32> to vector<32x768xbf16>
    %c0_53 = arith.constant 0 : index
    %c0_54 = arith.constant 0 : index
    %175 = vector.load %arg8[%c0_53, %c0_54] : memref<768x184xbf16, #tpu.memory_space<vmem>>, vector<768x184xbf16>
    %cst_55 = arith.constant dense<0.000000e+00> : vector<32x184xf32>
    %176 = tpu.matmul %174, %175, %cst_55 {dimension_numbers = #tpu.dot_dimension_numbers<[1], [0], [0], [1], [0, 0, 1, 1], [], []>} : vector<32x768xbf16>, vector<768x184xbf16>, vector<32x184xf32> -> vector<32x184xf32>
    %c0_56 = arith.constant 0 : index
    %c0_57 = arith.constant 0 : index
    %177 = vector.load %arg9[%c0_56, %c0_57] : memref<1x184xf32, #tpu.memory_space<vmem>>, vector<1x184xf32>
    %178 = vector.broadcast %177 : vector<1x184xf32> to vector<32x184xf32>
    %179 = arith.addf %176, %178 : vector<32x184xf32>
    %180 = arith.addf %149, %179 : vector<32x184xf32>
    %181 = vector.shape_cast %180 : vector<32x184xf32> to vector<2x16x184xf32>
    %c0_58 = arith.constant 0 : index
    %c0_59 = arith.constant 0 : index
    %c0_60 = arith.constant 0 : index
    %182 = vector.load %arg10[%c0_58, %c0_59, %c0_60] : memref<2x16x184xf32, #tpu.memory_space<vmem>>, vector<2x16x184xf32>
    tpu.vector_store %arg10[%c0_58, %c0_59, %c0_60], %181 {strides = array<i32>} : memref<2x16x184xf32, #tpu.memory_space<vmem>>, vector<2x16x184xf32>,
    return
  }
  func.func @transform_0(%arg0: i32) -> (i32, i32, i32) {
    %c0_i32 = arith.constant 0 : i32
    %c0_i32_0 = arith.constant 0 : i32
    %c0_i32_1 = arith.constant 0 : i32
    return %arg0, %c0_i32, %c0_i32_0 : i32, i32, i32
  }
  func.func @transform_1(%arg0: i32) -> (i32, i32) {
    %c0_i32 = arith.constant 0 : i32
    %c0_i32_0 = arith.constant 0 : i32
    %c0_i32_1 = arith.constant 0 : i32
    return %c0_i32, %c0_i32_0 : i32, i32
  }
  func.func @transform_2(%arg0: i32) -> (i32, i32) {
    %c0_i32 = arith.constant 0 : i32
    %c0_i32_0 = arith.constant 0 : i32
    %c0_i32_1 = arith.constant 0 : i32
    return %c0_i32, %c0_i32_0 : i32, i32
  }
  func.func @transform_3(%arg0: i32) -> (i32, i32) {
    %c0_i32 = arith.constant 0 : i32
    %c0_i32_0 = arith.constant 0 : i32
    %c0_i32_1 = arith.constant 0 : i32
    return %c0_i32, %c0_i32_0 : i32, i32
  }
  func.func @transform_4(%arg0: i32) -> (i32, i32) {
    %c0_i32 = arith.constant 0 : i32
    %c0_i32_0 = arith.constant 0 : i32
    %c0_i32_1 = arith.constant 0 : i32
    return %c0_i32, %c0_i32_0 : i32, i32
  }
  func.func @transform_5(%arg0: i32) -> (i32, i32) {
    %c0_i32 = arith.constant 0 : i32
    %c0_i32_0 = arith.constant 0 : i32
    %c0_i32_1 = arith.constant 0 : i32
    return %c0_i32, %c0_i32_0 : i32, i32
  }
  func.func @transform_6(%arg0: i32) -> (i32, i32) {
    %c0_i32 = arith.constant 0 : i32
    %c0_i32_0 = arith.constant 0 : i32
    %c0_i32_1 = arith.constant 0 : i32
    return %c0_i32, %c0_i32_0 : i32, i32
  }
  func.func @transform_7(%arg0: i32) -> (i32, i32) {
    %c0_i32 = arith.constant 0 : i32
    %c0_i32_0 = arith.constant 0 : i32
    %c0_i32_1 = arith.constant 0 : i32
    return %c0_i32, %c0_i32_0 : i32, i32
  }
  func.func @transform_8(%arg0: i32) -> (i32, i32) {
    %c0_i32 = arith.constant 0 : i32
    %c0_i32_0 = arith.constant 0 : i32
    %c0_i32_1 = arith.constant 0 : i32
    return %c0_i32, %c0_i32_0 : i32, i32
  }
  func.func @transform_9(%arg0: i32) -> (i32, i32, i32) {
    %c0_i32 = arith.constant 0 : i32
    %c0_i32_0 = arith.constant 0 : i32
    %c0_i32_1 = arith.constant 0 : i32
    return %arg0, %c0_i32, %c0_i32_0 : i32, i32, i32
  }
}

</mosaic_0001>

<bundles_post_ra>
// kernel: block_forward.1
= control target key start
LH: loop header
LB: loop body
LE: loop exit
PB: predicated region body
PF: predicated region fallthrough
CT: control target
= control target key end

     0   :  { %vm42_vm0 = vcmask 457728   ;;  %s6713_s0 = inlined_call_operand.vmem [shape: f32[2,16,184], index: 0, kind: input, shape index: {}]   ;;  %s6714_s1 = inlined_call_operand.vmem [shape: bf16[184,768], index: 1, kind: input, shape index: {}]   ;;  %s6715_s2 = inlined_call_operand.vmem [shape: f32[1,768], index: 2, kind: input, shape index: {}]   ;;  %s6716_s3 = inlined_call_operand.vmem [shape: bf16[192,184], index: 3, kind: input, shape index: {}]   ;;  %s6717_s4 = inlined_call_operand.vmem [shape: f32[1,184], index: 4, kind: input, shape index: {}]   ;;  %s6718_s5 = inlined_call_operand.vmem [shape: bf16[184,768], index: 5, kind: input, shape index: {}]   ;;  %s6719_s6 = inlined_call_operand.vmem [shape: f32[1,768], index: 6, kind: input, shape index: {}]   ;;  %s6720_s7 = inlined_call_operand.vmem [shape: bf16[768,184], index: 7, kind: input, shape index: {}]   ;;  %s6721_s8 = inlined_call_operand.vmem [shape: f32[1,184], index: 8, kind: input, shape index: {}]   ;;  %s6722_s9 = inlined_call_operand.hbm [shape: f32[2,16,184], index: 9, kind: output, shape index: {}]  }
   0x1   :  { %v5206_v0 = vld [vmem:[%s6713_s0] sm:$0xff]  ;;  %v5211_v1 = vld [vmem:[%s6713_s0 + $0x8] sm:$0xff]  ;;  %v5228_v5 = vld [vmem:[%s6713_s0 + $0x10] sm:$0xff] }
   0x2   :  { %v5216_v2 = vld [vmem:[%s6713_s0 + $0x20] sm:$0xff]  ;;  %v43_v3 = vsel %vm42_vm0, %v5211_v1, 0.0  ;;  %v5223_v4 = vld [vmem:[%s6713_s0 + $0x28] sm:$0xff]  ;;  %v5233_v6 = vld [vmem:[%s6713_s0 + $0x18] sm:$0xff] }
   0x3   :  { %v44_v7 = vadd.f32 %v43_v3, %v5206_v0  ;;  %v51_v8 = vsel %vm42_vm0, %v5223_v4, 0.0  ;;  %v47_v9 = vsel %vm42_vm0, %v5233_v6, 0.0  ;;  %v5243_v10 = vld [vmem:[%s6713_s0 + $0x30] sm:$0xff]  ;;  %v5248_v11 = vld [vmem:[%s6713_s0 + $0x38] sm:$0xff] }
   0x4   :  { %v52_v12 = vadd.f32 %v51_v8, %v5216_v2  ;;  %v55_v13 = vsel %vm42_vm0, %v5248_v11, 0.0  ;;  %v48_v14 = vadd.f32 %v47_v9, %v5228_v5  ;;  %v4610_v16 = vld [vmem:[%s6714_s1 + $0x4] ss:$24 sps:$4 sm:$0xff]   ;;  %v4612_v17 = vld [vmem:[%s6714_s1] ss:$24 sps:$4 sm:$0xff]  }
   0x5   :  { %45 = vadd.xlane.f32.xlu0 %v44_v7  ;;  %v56_v15 = vadd.f32 %v55_v13, %v5243_v10  ;;  %v4613_v18 = vld [vmem:[%s6714_s1 + $0x14] ss:$24 sps:$4 sm:$0xff]   ;;  %v4615_v19 = vld [vmem:[%s6714_s1 + $0x10] ss:$24 sps:$4 sm:$0xff]   ;;  %590 = vmatprep.subr.bf16.mxu1 %v4610_v16  ;;  %v4619_v21 = vld [vmem:[%s6714_s1 + $0x44] ss:$24 sps:$4 sm:$0xff]  }
   0x6   :  { %53 = vadd.xlane.f32.xlu1 %v52_v12  ;;  %v4616_v20 = vld [vmem:[%s6714_s1 + $0x34] ss:$24 sps:$4 sm:$0xff]   ;;  %696 = vmatprep.subr.bf16.mxu0 %v4613_v18  ;;  %v4618_v22 = vld [vmem:[%s6714_s1 + $0x30] ss:$24 sps:$4 sm:$0xff]   ;;  %v4621_v23 = vld [vmem:[%s6714_s1 + $0x40] ss:$24 sps:$4 sm:$0xff]  }
   0x7   :  { %591 = vmatpush1.bf16.msra.mxu1 %v4612_v17  ;;  %697 = vmatpush1.bf16.msra.mxu0 %v4615_v19  ;;  %v4622_v24 = vld [vmem:[%s6714_s1 + $0x64] ss:$24 sps:$4 sm:$0xff]   ;;  %v4625_v25 = vld [vmem:[%s6714_s1 + $0x74] ss:$24 sps:$4 sm:$0xff]   ;;  %v4624_v26 = vld [vmem:[%s6714_s1 + $0x60] ss:$24 sps:$4 sm:$0xff]  }
   0x8   :  { %592 = vmatprep.subr.bf16.mxu1 %v4616_v20  ;;  %698 = vmatprep.subr.bf16.mxu0 %v4619_v21  ;;  %v4627_v27 = vld [vmem:[%s6714_s1 + $0x70] ss:$24 sps:$4 sm:$0xff]   ;;  %v4628_v28 = vld [vmem:[%s6714_s1 + $0x94] ss:$24 sps:$4 sm:$0xff]   ;;  %v4631_v29 = vld [vmem:[%s6714_s1 + $0xa4] ss:$24 sps:$4 sm:$0xff]  }
   0x9   :  { %49 = vadd.xlane.f32.xlu0 %v48_v14  ;;  %v4630_v30 = vld [vmem:[%s6714_s1 + $0x90] ss:$24 sps:$4 sm:$0xff]   ;;  %v4633_v31 = vld [vmem:[%s6714_s1 + $0xa0] ss:$24 sps:$4 sm:$0xff]   ;;  %v4634_v32 = vld [vmem:[%s6714_s1 + $0xc4] ss:$24 sps:$4 sm:$0xff]  }
   0xa   :  { %57 = vadd.xlane.f32.xlu1 %v56_v15  ;;  %v4637_v33 = vld [vmem:[%s6714_s1 + $0xd4] ss:$24 sps:$4 sm:$0xff]   ;;  %v4636_v34 = vld [vmem:[%s6714_s1 + $0xc0] ss:$24 sps:$4 sm:$0xff]   ;;  %v4639_v35 = vld [vmem:[%s6714_s1 + $0xd0] ss:$24 sps:$4 sm:$0xff]  }
   0xb   :  { %593 = vmatpush1.bf16.msra.mxu1 %v4618_v22  ;;  %699 = vmatpush1.bf16.msra.mxu0 %v4621_v23  ;;  %v4640_v36 = vld [vmem:[%s6714_s1 + $0xf4] ss:$24 sps:$4 sm:$0xff]   ;;  %v4643_v37 = vld [vmem:[%s6714_s1 + $0x104] ss:$24 sps:$4 sm:$0xff]   ;;  %v4642_v38 = vld [vmem:[%s6714_s1 + $0xf0] ss:$24 sps:$4 sm:$0xff]  }
   0xc   :  { %594 = vmatprep.subr.bf16.mxu1 %v4622_v24  ;;  %700 = vmatprep.subr.bf16.mxu0 %v4625_v25  ;;  %v4645_v39 = vld [vmem:[%s6714_s1 + $0x100] ss:$24 sps:$4 sm:$0xff]   ;;  %v4646_v40 = vld [vmem:[%s6714_s1 + $0x124] ss:$24 sps:$4 sm:$0xff]  }
   0xf   :  { %595 = vmatpush1.bf16.msra.mxu1 %v4624_v26  ;;  %701 = vmatpush1.bf16.msra.mxu0 %v4627_v27 }
  0x10   :  { %596 = vmatprep.subr.bf16.mxu1 %v4628_v28  ;;  %702 = vmatprep.subr.bf16.mxu0 %v4631_v29 }
  0x13   :  { %597 = vmatpush1.bf16.msra.mxu1 %v4630_v30  ;;  %703 = vmatpush1.bf16.msra.mxu0 %v4633_v31 }
  0x14   :  { %598 = vmatprep.subr.bf16.mxu1 %v4634_v32  ;;  %704 = vmatprep.subr.bf16.mxu0 %v4637_v33 }
  0x17   :  { %599 = vmatpush1.bf16.msra.mxu1 %v4636_v34  ;;  %705 = vmatpush1.bf16.msra.mxu0 %v4639_v35 }
  0x18   :  { %600 = vmatprep.subr.bf16.mxu1 %v4640_v36  ;;  %706 = vmatprep.subr.bf16.mxu0 %v4643_v37 }
  0x1b   :  { %601 = vmatpush1.bf16.msra.mxu1 %v4642_v38  ;;  %707 = vmatpush1.bf16.msra.mxu0 %v4645_v39 }
  0x1c   :  { %602 = vmatprep.subr.bf16.mxu1 %v4646_v40 }
  0x1d   :  { %14 = vsyncpa [#allocation3], 0  ;;  %v4648_v9 = vld [vmem:[%s6714_s1 + $0x120] ss:$24 sps:$4 sm:$0xff]   ;;  %v4652_v12 = vld [vmem:[%s6714_s1 + $0x154] ss:$24 sps:$4 sm:$0xff]  }
  0x1e   :  { %v4654_v13 = vld [vmem:[%s6714_s1 + $0x150] ss:$24 sps:$4 sm:$0xff]   ;;  %v4655_v14 = vld [vmem:[%s6714_s1 + $0x164] ss:$24 sps:$4 sm:$0xff]   ;;  %v4657_v15 = vld [vmem:[%s6714_s1 + $0x160] ss:$24 sps:$4 sm:$0xff]  }
  0x1f   :  { %603 = vmatpush1.bf16.msra.mxu1 %v4648_v9  ;;  %v4658_v16 = vld [vmem:[%s6714_s1 + $0x184] ss:$24 sps:$4 sm:$0xff]   ;;  %v4660_v17 = vld [vmem:[%s6714_s1 + $0x180] ss:$24 sps:$4 sm:$0xff]   ;;  %v4661_v18 = vld [vmem:[%s6714_s1 + $0x194] ss:$24 sps:$4 sm:$0xff]  }
  0x20   :  { %604 = vmatprep.subr.bf16.mxu1 %v4652_v12  ;;  %v4663_v19 = vld [vmem:[%s6714_s1 + $0x190] ss:$24 sps:$4 sm:$0xff]   ;;  %v4664_v20 = vld [vmem:[%s6714_s1 + $0x1b4] ss:$24 sps:$4 sm:$0xff]   ;;  %v4667_v22 = vld [vmem:[%s6714_s1 + $0x1c4] ss:$24 sps:$4 sm:$0xff]  }
  0x21   :  { %v4666_v21 = vld [vmem:[%s6714_s1 + $0x1b0] ss:$24 sps:$4 sm:$0xff]   ;;  %v4669_v23 = vld [vmem:[%s6714_s1 + $0x1c0] ss:$24 sps:$4 sm:$0xff]   ;;  %v4670_v24 = vld [vmem:[%s6714_s1 + $0x1e4] ss:$24 sps:$4 sm:$0xff]  }
  0x22   :  { %v4672_v25 = vld [vmem:[%s6714_s1 + $0x1e0] ss:$24 sps:$4 sm:$0xff]   ;;  %v4673_v26 = vld [vmem:[%s6714_s1 + $0x1f4] ss:$24 sps:$4 sm:$0xff]   ;;  %v4675_v28 = vld [vmem:[%s6714_s1 + $0x1f0] ss:$24 sps:$4 sm:$0xff]  }
  0x23   :  { %605 = vmatpush1.bf16.msra.mxu1 %v4654_v13  ;;  %v185_v27 = vld [vmem:[%s6714_s1 + $0x210] sm:$0xff]  ;;  %v187_v31 = vld [vmem:[%s6714_s1 + $0x220] sm:$0xff]  ;;  %vm571_vm1 = vcmask 1043456   ;;  %vm5145_vm2 = vmmov 0   ;;  %vm770_vm3 = vcmask 261120   ;;  %vm865_vm6 = vcmask 130048  }
  0x24   :  { %606 = vmatprep.subr.bf16.mxu1 %v4658_v16  ;;  %v4104_v29 = vcombine.high %v185_v27, %v185_v27  ;;  %v4103_v30 = vcombine.low %v185_v27, %v185_v27  ;;  %v4108_v32 = vcombine.high %v187_v31, %v187_v31  ;;  %v4107_v33 = vcombine.low %v187_v31, %v187_v31  ;;  %v4682_v36 = vld [vmem:[%s6714_s1 + $0xc] ss:$24 sps:$4 sm:$0xff]   ;;  %v4692_v9 = vld [vmem:[%s6714_s1 + $0xc8] ss:$24 sps:$4 sm:$0xff]   ;;  %s5148_s17 = smov 64   ;;  %s5149_s18 = smov 32  }
  0x25   :  { %v4700_v12 = vld [vmem:[%s6714_s1 + $0x12c] ss:$24 sps:$4 sm:$0xff]   ;;  %v4698_v13 = vld [vmem:[%s6714_s1 + $0x128] ss:$24 sps:$4 sm:$0xff]   ;;  %v190_v27 = vlaneseq  ;;  %vm2276_vm7 = vcmask 523264   ;;  %vm2281_vm8 = vcmask 785408  }
  0x26   :  { %v573_v34 = vsel %vm571_vm1, %v4103_v30, 0  ;;  %v585_v35 = vsel %vm571_vm1, %v4107_v33, 0  ;;  %v4706_v16 = vld [vmem:[%s6714_s1 + $0x18c] ss:$24 sps:$4 sm:$0xff]  }
  0x27   :  { %607 = vmatpush1.bf16.msra.mxu1 %v4660_v17  ;;  %v4704_v17 = vld [vmem:[%s6714_s1 + $0x188] ss:$24 sps:$4 sm:$0xff]  }
  0x28   :  { %608 = vmatprep.subr.bf16.mxu1 %v4664_v20  ;;  %v4712_v20 = vld [vmem:[%s6714_s1 + $0x1ec] ss:$24 sps:$4 sm:$0xff]  }
  0x29   :  { %v188_v31 = vld [vmem:[%s6715_s2] sm:$0x3f]  ;;  %s5147_s2 = smov 96  }
  0x2b   :  { %609 = vmatpush1.bf16.msra.mxu1 %v4666_v21  ;;  %v186_v21 = vld [vmem:[%s6714_s1 + $0x218] sm:$0xff] }
  0x2c   :  { %610 = vmatprep.subr.bf16.mxu1 %v4670_v24  ;;  %v4105_v24 = vcombine.low %v186_v21, %v186_v21 }
  0x2f   :  { %611 = vmatpush1.bf16.msra.mxu1 %v4672_v25  ;;  %v579_v25 = vsel %vm571_vm1, %v4105_v24, 0 }
  0x30   :  { %4109 = vmatprep.subr.msk.bf16.mxu1 %vm571_vm1, %v4104_v29 }
  0x33   :  { %613 = vmatpush1.bf16.msra.mxu1 %v573_v34 }
  0x34   :  { %643 = vmatprep.subr.bf16.mxu1 %v4682_v36 }
  0x92   :  { %v46_v41 = vpop.xlane.xlu0 %45 }
  0x93   :  { %v59_v42 = vmul.f32 0.0054347827, %v46_v41  ;;  %v54_v43 = vpop.xlane.xlu1 %53 }
  0x94   :  { %v61_v44 = vmul.f32 0.0054347827, %v54_v43 }
  0x95   :  { %v5331_v45 = vsub.f32 %v5206_v0, %v59_v42  ;;  %v5334_v46 = vsub.f32 %v5211_v1, %v59_v42 }
  0x96   :  { %v5337_v47 = vsub.f32 %v5216_v2, %v61_v44  ;;  %v5340_v48 = vsub.f32 %v5223_v4, %v61_v44  ;;  %v50_v49 = vpop.xlane.xlu0 %49 }
  0x97   :  { %v60_v50 = vmul.f32 0.0054347827, %v50_v49  ;;  %v58_v51 = vpop.xlane.xlu1 %57  ;;  %v71_v52 = vmul.f32 %v5331_v45, %v5331_v45  ;;  %v72_v53 = vmul.f32 %v5334_v46, %v5334_v46 }
  0x98   :  { %v62_v54 = vmul.f32 0.0054347827, %v58_v51  ;;  %v75_v55 = vmul.f32 %v5337_v47, %v5337_v47  ;;  %v76_v56 = vmul.f32 %v5340_v48, %v5340_v48 }
  0x99   :  { %v5351_v57 = vsub.f32 %v5228_v5, %v60_v50  ;;  %v5354_v58 = vsub.f32 %v5233_v6, %v60_v50  ;;  %v79_v59 = vsel %vm42_vm0, %v72_v53, 0.0 }
  0x9a   :  { %v5358_v60 = vsub.f32 %v5243_v10, %v62_v54  ;;  %v5361_v61 = vsub.f32 %v5248_v11, %v62_v54  ;;  %v80_v62 = vadd.f32 %v79_v59, %v71_v52  ;;  %v87_v63 = vsel %vm42_vm0, %v76_v56, 0.0  ;;  %v4649_v10 = vld [vmem:[%s6714_s1 + $0x134] ss:$24 sps:$4 sm:$0xff]   ;;  %v4651_v11 = vld [vmem:[%s6714_s1 + $0x130] ss:$24 sps:$4 sm:$0xff]  }
  0x9b   :  { %v73_v0 = vmul.f32 %v5351_v57, %v5351_v57  ;;  %v74_v1 = vmul.f32 %v5354_v58, %v5354_v58  ;;  %v88_v2 = vadd.f32 %v87_v63, %v75_v55  ;;  %708 = vmatprep.subr.bf16.mxu0 %v4649_v10  ;;  %v4697_v10 = vld [vmem:[%s6714_s1 + $0xfc] ss:$24 sps:$4 sm:$0xff]  }
  0x9c   :  { %81 = vadd.xlane.f32.xlu0 %v80_v62  ;;  %v77_v3 = vmul.f32 %v5358_v60, %v5358_v60  ;;  %v78_v4 = vmul.f32 %v5361_v61, %v5361_v61  ;;  %709 = vmatpush1.bf16.msra.mxu0 %v4651_v11  ;;  %v4695_v11 = vld [vmem:[%s6714_s1 + $0xf8] ss:$24 sps:$4 sm:$0xff]  }
  0x9d   :  { %v83_v5 = vsel %vm42_vm0, %v74_v1, 0.0  ;;  %710 = vmatprep.subr.bf16.mxu0 %v4655_v14  ;;  %v4680_v1 = vld [vmem:[%s6714_s1 + $0x8] ss:$24 sps:$4 sm:$0xff]   ;;  %v4703_v14 = vld [vmem:[%s6714_s1 + $0x15c] ss:$24 sps:$4 sm:$0xff]  }
  0x9e   :  { %v84_v6 = vadd.f32 %v83_v5, %v73_v0  ;;  %v91_v7 = vsel %vm42_vm0, %v78_v4, 0.0  ;;  %v4685_v4 = vld [vmem:[%s6714_s1 + $0x3c] ss:$24 sps:$4 sm:$0xff]   ;;  %v4688_v5 = vld [vmem:[%s6714_s1 + $0x6c] ss:$24 sps:$4 sm:$0xff]  }
  0x9f   :  { %v92_v8 = vadd.f32 %v91_v7, %v77_v3 }
  0xa0   :  { %89 = vadd.xlane.f32.xlu0 %v88_v2  ;;  %85 = vadd.xlane.f32.xlu1 %v84_v6 }
  0xa1   :  { %711 = vmatpush1.bf16.msra.mxu0 %v4657_v15  ;;  %v4701_v15 = vld [vmem:[%s6714_s1 + $0x158] ss:$24 sps:$4 sm:$0xff]  }
  0xa2   :  { %712 = vmatprep.subr.bf16.mxu0 %v4661_v18  ;;  %v4709_v18 = vld [vmem:[%s6714_s1 + $0x1bc] ss:$24 sps:$4 sm:$0xff]  }
  0xa4   :  { %93 = vadd.xlane.f32.xlu1 %v92_v8  ;;  %v4691_v8 = vld [vmem:[%s6714_s1 + $0x9c] ss:$24 sps:$4 sm:$0xff]  }
  0xa5   :  { %713 = vmatpush1.bf16.msra.mxu0 %v4663_v19  ;;  %v4707_v19 = vld [vmem:[%s6714_s1 + $0x1b8] ss:$24 sps:$4 sm:$0xff]  }
  0xa6   :  { %714 = vmatprep.subr.bf16.mxu0 %v4667_v22  ;;  %v4710_v22 = vld [vmem:[%s6714_s1 + $0x1e8] ss:$24 sps:$4 sm:$0xff]  }
  0xa9   :  { %715 = vmatpush1.bf16.msra.mxu0 %v4669_v23  ;;  %v4106_v23 = vcombine.high %v186_v21, %v186_v21 }
  0xaa   :  { %716 = vmatprep.subr.bf16.mxu0 %v4673_v26  ;;  %v5144_v26 = vmov 0.0  }
  0xad   :  { %717 = vmatpush1.bf16.msra.mxu0 %v4675_v28  ;;  %v5538_v28 = vshrl.u32 %v190_v27, 7 }
  0xae   :  { %4115 = vmatprep.subr.msk.bf16.mxu0 %vm571_vm1, %v4108_v32 }
  0xaf   :  { %v5541_v29 = vsub.s32 0, %v5538_v28  ;;  %v208_v30 = vsub.s32 4, %v5538_v28  ;;  %v5548_v32 = vsub.s32 1, %v5538_v28  ;;  %v212_v33 = vsub.s32 5, %v5538_v28 }
  0xb1   :  { %719 = vmatpush1.bf16.msra.mxu0 %v585_v35  ;;  %v193_v34 = vrot.slane %v188_v31, %v5541_v29  ;;  %v209_v35 = vrot.slane %v188_v31, %v208_v30 }
  0xb2   :  { %4393 = vmatprep.subr.bf16.mxu0 %v5144_v26 }
 0x129   :  { %v82_v37 = vpop.xlane.xlu0 %81 }
 0x12a   :  { %v95_v38 = vmul.f32 0.0054347827, %v82_v37 }
 0x12c   :  { %v99_v39 = vadd.f32 1e-05, %v95_v38  ;;  %v197_v38 = vrot.slane %v188_v31, %v5548_v32 }
 0x12d   :  { %v86_v40 = vpop.xlane.xlu1 %85  ;;  %v90_v41 = vpop.xlane.xlu0 %89 }
 0x12e   :  { %v96_v42 = vmul.f32 0.0054347827, %v86_v40  ;;  %v97_v43 = vmul.f32 0.0054347827, %v90_v41  ;;  %5000 = vrsqrt.f32 %v99_v39  ;;  %v213_v39 = vrot.slane %v188_v31, %v212_v33 }
 0x130   :  { %v100_v44 = vadd.f32 1e-05, %v96_v42  ;;  %v101_v49 = vadd.f32 1e-05, %v97_v43 }
 0x131   :  { %v94_v50 = vpop.xlane.xlu1 %93 }
 0x132   :  { %5002 = vrsqrt.f32 %v100_v44  ;;  %v98_v51 = vmul.f32 0.0054347827, %v94_v50 }
 0x133   :  { %5004 = vrsqrt.f32 %v101_v49 }
 0x134   :  { %v102_v52 = vadd.f32 1e-05, %v98_v51 }
 0x136   :  { %5006 = vrsqrt.f32 %v102_v52 }
 0x138   :  { %v5001_v53 = vpop.eup %5000 }
 0x139   :  { %v108_v55 = vmul.f32 %v5001_v53, %v5334_v46  ;;  %v107_v59 = vmul.f32 %v5001_v53, %v5331_v45 }
 0x13c   :  { %v5003_v54 = vpop.eup %5002 }
 0x13d   :  { %v110_v56 = vmul.f32 %v5003_v54, %v5354_v58  ;;  %v109_v62 = vmul.f32 %v5003_v54, %v5351_v57  ;;  %v5005_v63 = vpop.eup %5004  ;;  %v4683_v58 = vld [vmem:[%s6714_s1 + $0x38] ss:$24 sps:$4 sm:$0xff]  }
 0x13e   :  { %v112_v45 = vmul.f32 %v5005_v63, %v5340_v48  ;;  %v111_v48 = vmul.f32 %v5005_v63, %v5337_v47  ;;  %v4689_v47 = vld [vmem:[%s6714_s1 + $0x98] ss:$24 sps:$4 sm:$0xff]  }
 0x13f   :  { %v116_v0 = vpack.c.bf16 %v110_v56, %v108_v55  ;;  %v5451_v2 = vpack.c.bf16 %v109_v62, %v107_v59 }
 0x140   :  { %v5007_v3 = vpop.eup %5006 }
 0x141   :  { %4110 = vmatprep.mubr.msk.bf16.mxu1 %vm42_vm0, %v116_v0  ;;  %4116 = vmatprep.mubr.msk.bf16.mxu0 %vm42_vm0, %v116_v0  ;;  %v114_v46 = vmul.f32 %v5007_v3, %v5361_v61  ;;  %v113_v6 = vmul.f32 %v5007_v3, %v5358_v60  ;;  %v4686_v61 = vld [vmem:[%s6714_s1 + $0x68] ss:$24 sps:$4 sm:$0xff]   ;;  %v4694_v60 = vld [vmem:[%s6714_s1 + $0xcc] ss:$24 sps:$4 sm:$0xff]  }
 0x142   :  { %623 = vmatmul.mubr.bf16.vlgmr.msra.gmra.mrb[0].mxu1 %v5451_v2  ;;  %729 = vmatmul.mubr.bf16.vlgmr.msra.gmra.mrb[0].mxu0 %v5451_v2 }
 0x143   :  { %644 = vmatpush1.bf16.msra.mxu1 %v4680_v1  ;;  %v118_v57 = vpack.c.bf16 %v114_v46, %v112_v45  ;;  %v117_v7 = vpack.c.bf16 %v113_v6, %v111_v48 }
 0x144   :  { %645 = vmatprep.subr.bf16.mxu1 %v4685_v4 }
 0x145   :  { %4111 = vmatprep.mubr.msk.bf16.mxu1 %vm42_vm0, %v118_v57  ;;  %4117 = vmatprep.mubr.msk.bf16.mxu0 %vm42_vm0, %v118_v57 }
 0x147   :  { %646 = vmatpush1.bf16.msra.mxu1 %v4683_v58 }
 0x148   :  { %647 = vmatprep.subr.bf16.mxu1 %v4688_v5 }
 0x14a   :  { %633 = vmatmul.mubr.bf16.gmra.mrb[4].mxu1 %v117_v7  ;;  %739 = vmatmul.mubr.bf16.gmra.mrb[4].mxu0 %v117_v7 }
 0x14b   :  { %648 = vmatpush1.bf16.msra.mxu1 %v4686_v61  ;;  %4113 = vmatprep.mubr.msk.bf16.mxu1 %vm42_vm0, %v116_v0 }
 0x14c   :  { %649 = vmatprep.subr.bf16.mxu1 %v4691_v8  ;;  %4395 = vmatprep.mubr.msk.bf16.mxu0 %vm5145_vm2, %v5144_v26 }
 0x14f   :  { %650 = vmatpush1.bf16.msra.mxu1 %v4689_v47 }
 0x150   :  { %651 = vmatprep.subr.bf16.mxu1 %v4694_v60 }
 0x153   :  { %652 = vmatpush1.bf16.msra.mxu1 %v4692_v9 }
 0x154   :  { %653 = vmatprep.subr.bf16.mxu1 %v4697_v10 }
 0x157   :  { %654 = vmatpush1.bf16.msra.mxu1 %v4695_v11 }
 0x158   :  { %655 = vmatprep.subr.bf16.mxu1 %v4700_v12 }
 0x15b   :  { %656 = vmatpush1.bf16.msra.mxu1 %v4698_v13 }
 0x15c   :  { %657 = vmatprep.subr.bf16.mxu1 %v4703_v14  ;;  %v200_v14 = vsub.s32 2, %v5538_v28 }
 0x15f   :  { %658 = vmatpush1.bf16.msra.mxu1 %v4701_v15  ;;  %v204_v15 = vsub.s32 3, %v5538_v28 }
 0x160   :  { %659 = vmatprep.subr.bf16.mxu1 %v4706_v16  ;;  %v201_v16 = vrot.slane %v188_v31, %v200_v14 }
 0x163   :  { %660 = vmatpush1.bf16.msra.mxu1 %v4704_v17 }
 0x164   :  { %661 = vmatprep.subr.bf16.mxu1 %v4709_v18  ;;  %v205_v18 = vrot.slane %v188_v31, %v204_v15 }
 0x167   :  { %662 = vmatpush1.bf16.msra.mxu1 %v4707_v19 }
 0x168   :  { %663 = vmatprep.subr.bf16.mxu1 %v4712_v20 }
 0x16b   :  { %664 = vmatpush1.bf16.msra.mxu1 %v4710_v22 }
 0x16c   :  { %4112 = vmatprep.subr.msk.bf16.mxu1 %vm571_vm1, %v4106_v23 }
 0x16f   :  { %666 = vmatpush1.bf16.msra.mxu1 %v579_v25 }
 0x170   :  { %4405 = vmatprep.subr.bf16.mxu1 %v5144_v26 }
 0x172   :  { %676 = vmatmul.mubr.bf16.vlgmr.msra.gmra.mrb[8].mxu1 %v5451_v2 }
 0x173   :  { %4114 = vmatprep.mubr.msk.bf16.mxu1 %vm42_vm0, %v118_v57 }
 0x17a   :  { %686 = vmatmul.mubr.bf16.gmra.mrb[12].mxu1 %v117_v7 }
 0x17b   :  { %4407 = vmatprep.mubr.msk.bf16.mxu1 %vm5145_vm2, %v5144_v26 }
 0x215   :  { %v624_v36 = vpop.f32.mrb[0].mxu1  ;;  %v730_v37 = vpop.f32.mrb[0].mxu0 }
 0x216   :  { %v626_v40 = vpop.f32.mrb[1].mxu1  ;;  %v732_v41 = vpop.f32.mrb[1].mxu0  ;;  %v625_v44 = vadd.f32 %v624_v36, %v193_v34  ;;  %v731_v49 = vadd.f32 %v730_v37, %v209_v35 }
 0x217   :  { %v628_v42 = vpop.f32.mrb[2].mxu1  ;;  %v734_v43 = vpop.f32.mrb[2].mxu0  ;;  %v627_v54 = vadd.f32 %v626_v40, %v197_v38  ;;  %v733_v55 = vadd.f32 %v732_v41, %v213_v39 }
 0x218   :  { %v629_v50 = vadd.f32 %v628_v42, %v193_v34  ;;  %v735_v51 = vadd.f32 %v734_v43, %v209_v35  ;;  %v630_v52 = vpop.f32.mrb[3].mxu1  ;;  %v736_v53 = vpop.f32.mrb[3].mxu0 }
 0x219   :  { %v631_v56 = vadd.f32 %v630_v52, %v197_v38  ;;  %v737_v59 = vadd.f32 %v736_v53, %v213_v39  ;;  %v763_v52 = vadd.s32 8, %v5538_v28  ;;  %v5146_v53 = vmov -1e+30  }
 0x21a   :  { %v5557_v62 = vpack.c.bf16 %v629_v50, %v625_v44  ;;  %v5559_v63 = vpack.c.bf16 %v735_v51, %v731_v49  ;;  %v765_v51 = vand.u32 127, %v190_v27 }
 0x21b   :  { %v5561_v0 = vpack.c.bf16 %v631_v56, %v627_v54  ;;  %v5563_v1 = vpack.c.bf16 %v737_v59, %v733_v55 }
 0x21c   :  { %4406 = vmatpush3.bf16.msra.mxu1 %v5559_v63  ;;  %vm766_vm4 = vcmp.ge.s32.totalorder %v5538_v28, %v765_v51  ;;  %vm767_vm5 = vcmp.ge.s32.totalorder %v763_v52, %v765_v51 }
 0x21d   :  { %v634_v2 = vpop.f32.mrb[4].mxu1  ;;  %v740_v3 = vpop.f32.mrb[4].mxu0  ;;  %4411 = vmatprep.subr.bf16.mxu1 %v5144_v26  ;;  %v5606_v54 = vsel %vm766_vm4, 0.0, %v5146_v53  ;;  %v5608_v56 = vsel %vm767_vm5, 0.0, %v5146_v53 }
 0x21e   :  { %v741_v4 = vadd.f32 %v740_v3, %v209_v35  ;;  %v636_v45 = vpop.f32.mrb[5].mxu1  ;;  %v742_v46 = vpop.f32.mrb[5].mxu0  ;;  %v635_v5 = vadd.f32 %v634_v2, %v193_v34 }
 0x21f   :  { %v638_v57 = vpop.f32.mrb[6].mxu1  ;;  %v744_v58 = vpop.f32.mrb[6].mxu0  ;;  %v637_v8 = vadd.f32 %v636_v45, %v197_v38  ;;  %v743_v47 = vadd.f32 %v742_v46, %v213_v39 }
 0x220   :  { %v639_v6 = vadd.f32 %v638_v57, %v193_v34  ;;  %v745_v48 = vadd.f32 %v744_v58, %v209_v35  ;;  %v640_v61 = vpop.f32.mrb[7].mxu1  ;;  %v746_v7 = vpop.f32.mrb[7].mxu0 }
 0x221   :  { %v641_v60 = vadd.f32 %v640_v61, %v197_v38  ;;  %v747_v9 = vadd.f32 %v746_v7, %v213_v39 }
 0x222   :  { %v5567_v10 = vpack.c.bf16 %v639_v6, %v635_v5  ;;  %v5569_v11 = vpack.c.bf16 %v745_v48, %v741_v4 }
 0x223   :  { %v5571_v12 = vpack.c.bf16 %v641_v60, %v637_v8  ;;  %v5573_v13 = vpack.c.bf16 %v747_v9, %v743_v47 }
 0x245   :  { %v677_v17 = vpop.f32.mrb[8].mxu1 }
 0x246   :  { %v679_v19 = vpop.f32.mrb[9].mxu1  ;;  %v678_v21 = vadd.f32 %v677_v17, %v201_v16 }
 0x247   :  { %v681_v20 = vpop.f32.mrb[10].mxu1  ;;  %v680_v24 = vadd.f32 %v679_v19, %v205_v18 }
 0x248   :  { %v682_v22 = vadd.f32 %v681_v20, %v201_v16  ;;  %v683_v23 = vpop.f32.mrb[11].mxu1 }
 0x249   :  { %v684_v25 = vadd.f32 %v683_v23, %v205_v18 }
 0x24a   :  { %v5581_v34 = vpack.c.bf16 %v682_v22, %v678_v21 }
 0x24b   :  { %v5583_v35 = vpack.c.bf16 %v684_v25, %v680_v24 }
 0x24c   :  { %v775_v36 = vsel %vm770_vm3, %v5581_v34, 0 }
 0x24d   :  { %v687_v37 = vpop.f32.mrb[12].mxu1  ;;  %4394 = vmatpush3.bf16.xpose.msra.mxu0 %v775_v36 }
 0x24e   :  { %v689_v38 = vpop.f32.mrb[13].mxu1  ;;  %4399 = vmatprep.subr.bf16.mxu0 %v5144_v26  ;;  %v688_v39 = vadd.f32 %v687_v37, %v201_v16 }
 0x24f   :  { %v691_v31 = vpop.f32.mrb[14].mxu1  ;;  %v690_v42 = vadd.f32 %v689_v38, %v205_v18 }
 0x250   :  { %v692_v40 = vadd.f32 %v691_v31, %v201_v16  ;;  %v693_v41 = vpop.f32.mrb[15].mxu1 }
 0x251   :  { %v694_v43 = vadd.f32 %v693_v41, %v205_v18 }
 0x252   :  { %v5588_v44 = vpack.c.bf16 %v692_v40, %v688_v39 }
 0x253   :  { %v5590_v49 = vpack.c.bf16 %v694_v43, %v690_v42 }
 0x254   :  { %4396 = vmatmul.mubr.msk.bf16.vlgmr.msra.gmra.mrb[8].mxu0 %vm770_vm3, %v5557_v62  ;;  %v822_v50 = vsel %vm770_vm3, %v5588_v44, 0 }
 0x255   :  { %4400 = vmatpush3.bf16.xpose.msra.mxu0 %v822_v50  ;;  %4401 = vmatprep.mubr.msk.bf16.mxu0 %vm5145_vm2, %v5144_v26 }
 0x256   :  { %4429 = vmatprep.subr.bf16.mxu0 %v5144_v26 }
 0x25c   :  { %4402 = vmatmul.mubr.msk.bf16.vlgmr.msra.gmra.mrb[12].mxu0 %vm770_vm3, %v5567_v10 }
 0x25d   :  { %4431 = vmatprep.mubr.msk.bf16.mxu0 %vm5145_vm2, %v5144_v26 }
 0x327   :  { %v811_v55 = vpop.f32.mrb[8].mxu0 }
 0x328   :  { %v812_v59 = vadd.f32 %v811_v55, %v5606_v54  ;;  %v4397_v2 = vpop.f32.mrb[9].mxu0 }
 0x329   :  { %v814_v3 = vpop.f32.mrb[10].mxu0 }
 0x32a   :  { %v815_v4 = vadd.f32 %v814_v3, %v5608_v56  ;;  %v4398_v45 = vpop.f32.mrb[11].mxu0  ;;  %v866_v27 = vsel %vm865_vm6, %v812_v59, -inf }
 0x32b   :  { %867 = vmax.xlane.f32.xlu0 %v866_v27 }
 0x32c   :  { %v869_v46 = vsel %vm865_vm6, %v815_v4, -inf }
 0x32d   :  { %870 = vmax.xlane.f32.xlu1 %v869_v46 }
 0x32f   :  { %v858_v57 = vpop.f32.mrb[12].mxu0 }
 0x330   :  { %v859_v58 = vadd.f32 %v858_v57, %v5606_v54  ;;  %v4403_v5 = vpop.f32.mrb[13].mxu0 }
 0x331   :  { %v861_v6 = vpop.f32.mrb[14].mxu0 }
 0x332   :  { %v862_v48 = vadd.f32 %v861_v6, %v5608_v56  ;;  %v4404_v61 = vpop.f32.mrb[15].mxu0  ;;  %v872_v7 = vsel %vm865_vm6, %v859_v58, -inf }
 0x333   :  { %873 = vmax.xlane.f32.xlu0 %v872_v7 }
 0x334   :  { %v875_v8 = vsel %vm865_vm6, %v862_v48, -inf }
 0x335   :  { %876 = vmax.xlane.f32.xlu1 %v875_v8 }
 0x3b8   :  { %v868_v47 = vpop.xlane.xlu0 %867 }
 0x3b9   :  { %v878_v60 = vsub.f32 %v812_v59, %v868_v47 }
 0x3ba   :  { %v871_v9 = vpop.xlane.xlu1 %870 }
 0x3bb   :  { %v882_v16 = vmul.f32 1.442695, %v878_v60  ;;  %v879_v17 = vsub.f32 %v815_v4, %v871_v9 }
 0x3bd   :  { %5008 = vpow2.f32 %v882_v16  ;;  %v884_v18 = vmul.f32 1.442695, %v879_v17 }
 0x3bf   :  { %5010 = vpow2.f32 %v884_v18 }
 0x3c0   :  { %v874_v19 = vpop.xlane.xlu0 %873 }
 0x3c1   :  { %v880_v20 = vsub.f32 %v859_v58, %v874_v19 }
 0x3c2   :  { %v877_v21 = vpop.xlane.xlu1 %876 }
 0x3c3   :  { %v886_v22 = vmul.f32 1.442695, %v880_v20  ;;  %v881_v23 = vsub.f32 %v862_v48, %v877_v21 }
 0x3c5   :  { %5012 = vpow2.f32 %v886_v22  ;;  %v888_v24 = vmul.f32 1.442695, %v881_v23 }
 0x3c7   :  { %v5009_v25 = vpop.eup %5008  ;;  %5014 = vpow2.f32 %v888_v24 }
 0x3c8   :  { %v890_v36 = vsel %vm865_vm6, %v5009_v25, 0.0 }
 0x3c9   :  { %v5011_v37 = vpop.eup %5010  ;;  %891 = vadd.xlane.f32.xlu0 %v890_v36 }
 0x3ca   :  { %v893_v38 = vsel %vm865_vm6, %v5011_v37, 0.0 }
 0x3cb   :  { %894 = vadd.xlane.f32.xlu1 %v893_v38 }
 0x3cf   :  { %v5013_v31 = vpop.eup %5012 }
 0x3d0   :  { %v896_v39 = vsel %vm865_vm6, %v5013_v31, 0.0 }
 0x3d1   :  { %v5015_v40 = vpop.eup %5014  ;;  %897 = vadd.xlane.f32.xlu0 %v896_v39 }
 0x3d2   :  { %v899_v41 = vsel %vm865_vm6, %v5015_v40, 0.0 }
 0x3d3   :  { %900 = vadd.xlane.f32.xlu1 %v899_v41 }
 0x3e4   :  { %1001 = vrot.lane.b32.xlu1 %v5557_v62, %s5147_s2 }
 0x3e7   :  { %1004 = vrot.lane.b32.xlu0 %v5581_v34, %s5147_s2 }
 0x3e8   :  { %1057 = vrot.lane.b32.xlu1 %v5588_v44, %s5147_s2 }
 0x3ec   :  { %1054 = vrot.lane.b32.xlu1 %v5567_v10, %s5147_s2 }
 0x456   :  { %v892_v42 = vpop.xlane.xlu0 %891 }
 0x457   :  { %5016 = vrcp.f32 %v892_v42 }
 0x458   :  { %v895_v43 = vpop.xlane.xlu1 %894 }
 0x459   :  { %5018 = vrcp.f32 %v895_v43 }
 0x45e   :  { %v898_v50 = vpop.xlane.xlu0 %897 }
 0x45f   :  { %5020 = vrcp.f32 %v898_v50 }
 0x460   :  { %v901_v51 = vpop.xlane.xlu1 %900 }
 0x461   :  { %v5017_v52 = vpop.eup %5016  ;;  %5022 = vrcp.f32 %v901_v51 }
 0x462   :  { %v906_v55 = vmul.f32 %v5017_v52, %v5009_v25  ;;  %v1005_v46 = vpop.permute.xlu0 %1004 }
 0x463   :  { %v5019_v53 = vpop.eup %5018  ;;  %v1010_v5 = vsel %vm770_vm3, %v1005_v46, 0 }
 0x464   :  { %v907_v59 = vmul.f32 %v5019_v53, %v5011_v37  ;;  %v1002_v58 = vpop.permute.xlu1 %1001 }
 0x466   :  { %v910_v2 = vpack.c.bf16 %v907_v59, %v906_v55 }
 0x468   :  { %4408 = vmatmul.mubr.msk.bf16.vlgmr.msra.gmra.mrb[16].mxu1 %vm865_vm6, %v910_v2  ;;  %v1058_v6 = vpop.permute.xlu1 %1057 }
 0x469   :  { %v5021_v3 = vpop.eup %5020  ;;  %4412 = vmatpush3.bf16.msra.mxu1 %v5569_v11  ;;  %4413 = vmatprep.mubr.msk.bf16.mxu1 %vm5145_vm2, %v5144_v26  ;;  %v1063_v48 = vsel %vm770_vm3, %v1058_v6, 0 }
 0x46a   :  { %4417 = vmatprep.subr.bf16.mxu1 %v5144_v26  ;;  %v908_v45 = vmul.f32 %v5021_v3, %v5013_v31 }
 0x46b   :  { %v5023_v4 = vpop.eup %5022 }
 0x46c   :  { %v909_v27 = vmul.f32 %v5023_v4, %v5015_v40  ;;  %v1055_v61 = vpop.permute.xlu1 %1054 }
 0x46e   :  { %v911_v57 = vpack.c.bf16 %v909_v27, %v908_v45 }
 0x470   :  { %4414 = vmatmul.mubr.msk.bf16.vlgmr.msra.gmra.mrb[20].mxu1 %vm865_vm6, %v911_v57 }
 0x471   :  { %4419 = vmatprep.mubr.msk.bf16.mxu1 %vm5145_vm2, %v5144_v26 }
 0x472   :  { %4418 = vmatpush3.bf16.xpose.msra.mxu1 %v1010_v5 }
 0x473   :  { %4423 = vmatprep.subr.bf16.mxu1 %v5144_v26 }
 0x479   :  { %4420 = vmatmul.mubr.msk.bf16.vlgmr.msra.gmra.mrb[24].mxu1 %vm770_vm3, %v1002_v58 }
 0x47a   :  { %4424 = vmatpush3.bf16.xpose.msra.mxu1 %v1063_v48  ;;  %4425 = vmatprep.mubr.msk.bf16.mxu1 %vm5145_vm2, %v5144_v26 }
 0x47b   :  { %4435 = vmatprep.subr.bf16.mxu1 %v5144_v26 }
 0x481   :  { %4426 = vmatmul.mubr.msk.bf16.vlgmr.msra.gmra.mrb[28].mxu1 %vm770_vm3, %v1055_v61 }
 0x482   :  { %4437 = vmatprep.mubr.msk.bf16.mxu1 %vm5145_vm2, %v5144_v26 }
 0x53b   :  { %v5648_v7 = vpop.f32.mrb[16].mxu1 }
 0x53c   :  { %v4409_v8 = vpop.f32.mrb[17].mxu1 }
 0x53d   :  { %v5650_v47 = vpop.f32.mrb[18].mxu1 }
 0x53e   :  { %v4410_v60 = vpop.f32.mrb[19].mxu1 }
 0x543   :  { %v5652_v9 = vpop.f32.mrb[20].mxu1 }
 0x544   :  { %v4415_v16 = vpop.f32.mrb[21].mxu1 }
 0x545   :  { %v5654_v17 = vpop.f32.mrb[22].mxu1 }
 0x546   :  { %v4416_v18 = vpop.f32.mrb[23].mxu1 }
 0x54c   :  { %v1046_v19 = vpop.f32.mrb[24].mxu1 }
 0x54d   :  { %v1047_v20 = vadd.f32 %v1046_v19, %v5606_v54  ;;  %v4421_v21 = vpop.f32.mrb[25].mxu1 }
 0x54e   :  { %v1049_v22 = vpop.f32.mrb[26].mxu1 }
 0x54f   :  { %v1050_v23 = vadd.f32 %v1049_v22, %v5608_v56  ;;  %v4422_v24 = vpop.f32.mrb[27].mxu1  ;;  %v1106_v25 = vsel %vm865_vm6, %v1047_v20, -inf }
 0x550   :  { %1107 = vmax.xlane.f32.xlu0 %v1106_v25 }
 0x551   :  { %v1109_v36 = vsel %vm865_vm6, %v1050_v23, -inf }
 0x552   :  { %1110 = vmax.xlane.f32.xlu1 %v1109_v36 }
 0x554   :  { %v1099_v37 = vpop.f32.mrb[28].mxu1 }
 0x555   :  { %v1100_v38 = vadd.f32 %v1099_v37, %v5606_v54  ;;  %v4427_v31 = vpop.f32.mrb[29].mxu1 }
 0x556   :  { %v1102_v39 = vpop.f32.mrb[30].mxu1 }
 0x557   :  { %v1103_v40 = vadd.f32 %v1102_v39, %v5608_v56  ;;  %v4428_v41 = vpop.f32.mrb[31].mxu1  ;;  %v1112_v42 = vsel %vm865_vm6, %v1100_v38, -inf }
 0x558   :  { %1113 = vmax.xlane.f32.xlu0 %v1112_v42 }
 0x559   :  { %v1115_v43 = vsel %vm865_vm6, %v1103_v40, -inf }
 0x55c   :  { %1116 = vmax.xlane.f32.xlu0 %v1115_v43 }
 0x563   :  { %1250 = vrot.lane.b32.xlu1 %v5581_v34, %s5148_s17 }
 0x5dd   :  { %v1108_v50 = vpop.xlane.xlu0 %1107 }
 0x5de   :  { %v1118_v51 = vsub.f32 %v1047_v20, %v1108_v50 }
 0x5df   :  { %v1111_v52 = vpop.xlane.xlu1 %1110 }
 0x5e0   :  { %v1122_v53 = vmul.f32 1.442695, %v1118_v51  ;;  %v1119_v55 = vsub.f32 %v1050_v23, %v1111_v52 }
 0x5e2   :  { %5024 = vpow2.f32 %v1122_v53  ;;  %v1124_v59 = vmul.f32 1.442695, %v1119_v55 }
 0x5e3   :  { %v1251_v16 = vpop.permute.xlu1 %1250 }
 0x5e4   :  { %5026 = vpow2.f32 %v1124_v59  ;;  %v1256_v36 = vsel %vm770_vm3, %v1251_v16, 0 }
 0x5e5   :  { %v1114_v27 = vpop.xlane.xlu0 %1113 }
 0x5e6   :  { %v1120_v58 = vsub.f32 %v1100_v38, %v1114_v27 }
 0x5e8   :  { %v1126_v6 = vmul.f32 1.442695, %v1120_v58 }
 0x5e9   :  { %v1117_v46 = vpop.xlane.xlu0 %1116 }
 0x5ea   :  { %v1121_v57 = vsub.f32 %v1103_v40, %v1117_v46 }
 0x5ec   :  { %v5025_v2 = vpop.eup %5024  ;;  %v1128_v5 = vmul.f32 1.442695, %v1121_v57 }
 0x5ed   :  { %v1130_v3 = vsel %vm865_vm6, %v5025_v2, 0.0 }
 0x5ee   :  { %v5027_v4 = vpop.eup %5026  ;;  %1131 = vadd.xlane.f32.xlu0 %v1130_v3  ;;  %5028 = vpow2.f32 %v1128_v5 }
 0x5ef   :  { %v1133_v45 = vsel %vm865_vm6, %v5027_v4, 0.0  ;;  %5030 = vpow2.f32 %v1126_v6 }
 0x5f0   :  { %1134 = vadd.xlane.f32.xlu1 %v1133_v45 }
 0x5f8   :  { %v5029_v48 = vpop.eup %5028 }
 0x5f9   :  { %v5031_v61 = vpop.eup %5030  ;;  %v1139_v8 = vsel %vm865_vm6, %v5029_v48, 0.0 }
 0x5fa   :  { %v1136_v60 = vsel %vm865_vm6, %v5031_v61, 0.0 }
 0x601   :  { %1248 = vrot.lane.b32.xlu1 %v5557_v62, %s5148_s17 }
 0x604   :  { %1153 = vrot.lane.b32.xlu0 %v5559_v63, %s5147_s2 }
 0x623   :  { %1140 = vadd.xlane.f32.xlu0 %v1139_v8 }
 0x625   :  { %1137 = vadd.xlane.f32.xlu1 %v1136_v60 }
 0x636   :  { %1301 = vrot.lane.b32.xlu1 %v5588_v44, %s5148_s17 }
 0x639   :  { %1201 = vrot.lane.b32.xlu0 %v5569_v11, %s5147_s2 }
 0x63a   :  { %1299 = vrot.lane.b32.xlu1 %v5567_v10, %s5148_s17 }
 0x67b   :  { %v1132_v18 = vpop.xlane.xlu0 %1131 }
 0x67c   :  { %5032 = vrcp.f32 %v1132_v18 }
 0x67d   :  { %v1135_v19 = vpop.xlane.xlu1 %1134 }
 0x67e   :  { %5034 = vrcp.f32 %v1135_v19 }
 0x67f   :  { %v1154_v20 = vpop.permute.xlu0 %1153 }
 0x680   :  { %4430 = vmatpush3.bf16.msra.mxu0 %v1154_v20 }
 0x681   :  { %4441 = vmatprep.subr.bf16.mxu0 %v5144_v26  ;;  %v1249_v37 = vpop.permute.xlu1 %1248 }
 0x686   :  { %v5033_v21 = vpop.eup %5032 }
 0x687   :  { %v1146_v23 = vmul.f32 %v5033_v21, %v5025_v2 }
 0x688   :  { %v5035_v22 = vpop.eup %5034 }
 0x689   :  { %v1147_v24 = vmul.f32 %v5035_v22, %v5027_v4 }
 0x68b   :  { %v1150_v25 = vpack.c.bf16 %v1147_v24, %v1146_v23 }
 0x68d   :  { %4432 = vmatmul.mubr.msk.bf16.vlgmr.msra.gmra.mrb[16].mxu0 %vm865_vm6, %v1150_v25 }
 0x68e   :  { %4442 = vmatpush3.bf16.xpose.msra.mxu0 %v1256_v36  ;;  %4443 = vmatprep.mubr.msk.bf16.mxu0 %vm5145_vm2, %v5144_v26 }
 0x68f   :  { %4453 = vmatprep.subr.bf16.mxu0 %v5144_v26 }
 0x695   :  { %4444 = vmatmul.mubr.msk.bf16.vlgmr.msra.gmra.mrb[20].mxu0 %vm770_vm3, %v1249_v37 }
 0x696   :  { %4455 = vmatprep.mubr.msk.bf16.mxu0 %vm5145_vm2, %v5144_v26 }
 0x6b0   :  { %v1141_v38 = vpop.xlane.xlu0 %1140 }
 0x6b1   :  { %5036 = vrcp.f32 %v1141_v38 }
 0x6b2   :  { %v1138_v31 = vpop.xlane.xlu1 %1137 }
 0x6b3   :  { %5038 = vrcp.f32 %v1138_v31 }
 0x6b4   :  { %v1202_v39 = vpop.permute.xlu0 %1201 }
 0x6b5   :  { %4436 = vmatpush3.bf16.msra.mxu1 %v1202_v39 }
 0x6b6   :  { %4447 = vmatprep.subr.bf16.mxu1 %v5144_v26  ;;  %v1302_v50 = vpop.permute.xlu1 %1301 }
 0x6b7   :  { %v1307_v52 = vsel %vm770_vm3, %v1302_v50, 0 }
 0x6ba   :  { %v1300_v53 = vpop.permute.xlu1 %1299 }
 0x6bb   :  { %v5037_v40 = vpop.eup %5036 }
 0x6bc   :  { %v1149_v42 = vmul.f32 %v5037_v40, %v5029_v48 }
 0x6bd   :  { %v5039_v41 = vpop.eup %5038 }
 0x6be   :  { %v1148_v43 = vmul.f32 %v5039_v41, %v5031_v61 }
 0x6c0   :  { %v1151_v51 = vpack.c.bf16 %v1149_v42, %v1148_v43 }
 0x6c2   :  { %4438 = vmatmul.mubr.msk.bf16.vlgmr.msra.gmra.mrb[32].mxu1 %vm865_vm6, %v1151_v51 }
 0x6c3   :  { %4448 = vmatpush3.bf16.xpose.msra.mxu1 %v1307_v52  ;;  %4449 = vmatprep.mubr.msk.bf16.mxu1 %vm5145_vm2, %v5144_v26 }
 0x6c4   :  { %4459 = vmatprep.subr.bf16.mxu1 %v5144_v26 }
 0x6ca   :  { %4450 = vmatmul.mubr.msk.bf16.vlgmr.msra.gmra.mrb[36].mxu1 %vm770_vm3, %v1300_v53 }
 0x6cb   :  { %4461 = vmatprep.mubr.msk.bf16.mxu1 %vm5145_vm2, %v5144_v26 }
 0x760   :  { %v5698_v55 = vpop.f32.mrb[16].mxu0 }
 0x761   :  { %v4433_v59 = vpop.f32.mrb[17].mxu0 }
 0x762   :  { %v5700_v2 = vpop.f32.mrb[18].mxu0 }
 0x763   :  { %v4570_v3 = vpack.i.bf16 %v5700_v2, %v5698_v55  ;;  %v4434_v4 = vpop.f32.mrb[19].mxu0 }
 0x768   :  { %v1292_v45 = vpop.f32.mrb[20].mxu0 }
 0x769   :  { %v1293_v27 = vadd.f32 %v1292_v45, %v5606_v54  ;;  %v4445_v46 = vpop.f32.mrb[21].mxu0 }
 0x76a   :  { %v1295_v57 = vpop.f32.mrb[22].mxu0 }
 0x76b   :  { %v1296_v58 = vadd.f32 %v1295_v57, %v5608_v56  ;;  %v4446_v5 = vpop.f32.mrb[23].mxu0  ;;  %v1350_v6 = vsel %vm865_vm6, %v1293_v27, -inf }
 0x76c   :  { %1351 = vmax.xlane.f32.xlu0 %v1350_v6 }
 0x76d   :  { %v1353_v48 = vsel %vm865_vm6, %v1296_v58, -inf }
 0x76e   :  { %1354 = vmax.xlane.f32.xlu1 %v1353_v48 }
 0x77f   :  { %1492 = vrot.lane.b32.xlu1 %v5581_v34, %s5149_s18 }
 0x795   :  { %v5710_v61 = vpop.f32.mrb[32].mxu1 }
 0x796   :  { %v4439_v8 = vpop.f32.mrb[33].mxu1 }
 0x797   :  { %v5712_v60 = vpop.f32.mrb[34].mxu1 }
 0x798   :  { %v4590_v16 = vpack.i.bf16 %v5712_v60, %v5710_v61  ;;  %v4440_v18 = vpop.f32.mrb[35].mxu1 }
 0x79d   :  { %v1343_v19 = vpop.f32.mrb[36].mxu1 }
 0x79e   :  { %v1344_v20 = vadd.f32 %v1343_v19, %v5606_v54  ;;  %v4451_v21 = vpop.f32.mrb[37].mxu1 }
 0x79f   :  { %v1346_v22 = vpop.f32.mrb[38].mxu1 }
 0x7a0   :  { %v1347_v23 = vadd.f32 %v1346_v22, %v5608_v56  ;;  %v4452_v24 = vpop.f32.mrb[39].mxu1  ;;  %v1356_v25 = vsel %vm865_vm6, %v1344_v20, -inf }
 0x7a1   :  { %1357 = vmax.xlane.f32.xlu0 %v1356_v25 }
 0x7a2   :  { %v1359_v34 = vsel %vm865_vm6, %v1347_v23, -inf }
 0x7a5   :  { %1360 = vmax.xlane.f32.xlu0 %v1359_v34 }
 0x7f9   :  { %v1352_v36 = vpop.xlane.xlu0 %1351 }
 0x7fa   :  { %v1362_v37 = vsub.f32 %v1293_v27, %v1352_v36 }
 0x7fb   :  { %v1355_v38 = vpop.xlane.xlu1 %1354 }
 0x7fc   :  { %v1366_v31 = vmul.f32 1.442695, %v1362_v37  ;;  %v1363_v39 = vsub.f32 %v1296_v58, %v1355_v38 }
 0x7fe   :  { %5040 = vpow2.f32 %v1366_v31  ;;  %v1368_v40 = vmul.f32 1.442695, %v1363_v39 }
 0x800   :  { %5042 = vpow2.f32 %v1368_v40 }
 0x808   :  { %v5041_v41 = vpop.eup %5040 }
 0x809   :  { %v1374_v42 = vsel %vm865_vm6, %v5041_v41, 0.0 }
 0x80a   :  { %v5043_v43 = vpop.eup %5042  ;;  %1375 = vadd.xlane.f32.xlu0 %v1374_v42 }
 0x80b   :  { %v1377_v50 = vsel %vm865_vm6, %v5043_v43, 0.0 }
 0x80c   :  { %1378 = vadd.xlane.f32.xlu1 %v1377_v50 }
 0x81d   :  { %1490 = vrot.lane.b32.xlu1 %v5557_v62, %s5149_s18  ;;  %v1493_v62 = vpop.permute.xlu1 %1492 }
 0x81e   :  { %v1498_v21 = vsel %vm770_vm3, %v1493_v62, 0 }
 0x820   :  { %1396 = vrot.lane.b32.xlu0 %v5559_v63, %s5148_s17 }
 0x82e   :  { %v1358_v51 = vpop.xlane.xlu0 %1357 }
 0x82f   :  { %v1364_v52 = vsub.f32 %v1344_v20, %v1358_v51 }
 0x831   :  { %v1370_v53 = vmul.f32 1.442695, %v1364_v52 }
 0x832   :  { %v1361_v59 = vpop.xlane.xlu0 %1360 }
 0x833   :  { %5044 = vpow2.f32 %v1370_v53  ;;  %v1365_v4 = vsub.f32 %v1347_v23, %v1361_v59 }
 0x835   :  { %v1372_v45 = vmul.f32 1.442695, %v1365_v4 }
 0x837   :  { %5046 = vpow2.f32 %v1372_v45 }
 0x83d   :  { %v5045_v27 = vpop.eup %5044 }
 0x83e   :  { %v1380_v46 = vsel %vm865_vm6, %v5045_v27, 0.0 }
 0x841   :  { %v5047_v57 = vpop.eup %5046  ;;  %1381 = vadd.xlane.f32.xlu1 %v1380_v46 }
 0x842   :  { %v1383_v58 = vsel %vm865_vm6, %v5047_v57, 0.0 }
 0x843   :  { %1384 = vadd.xlane.f32.xlu0 %v1383_v58 }
 0x852   :  { %1543 = vrot.lane.b32.xlu1 %v5588_v44, %s5149_s18 }
 0x856   :  { %1541 = vrot.lane.b32.xlu1 %v5567_v10, %s5149_s18 }
 0x859   :  { %1443 = vrot.lane.b32.xlu0 %v5569_v11, %s5148_s17 }
 0x897   :  { %v1376_v5 = vpop.xlane.xlu0 %1375 }
 0x898   :  { %5048 = vrcp.f32 %v1376_v5 }
 0x899   :  { %v1379_v6 = vpop.xlane.xlu1 %1378 }
 0x89a   :  { %5050 = vrcp.f32 %v1379_v6 }
 0x89b   :  { %v1397_v48 = vpop.permute.xlu0 %1396 }
 0x89c   :  { %4454 = vmatpush3.bf16.msra.mxu0 %v1397_v48 }
 0x89d   :  { %4465 = vmatprep.subr.bf16.mxu0 %v5144_v26  ;;  %v1491_v10 = vpop.permute.xlu1 %1490 }
 0x8a2   :  { %v5049_v8 = vpop.eup %5048 }
 0x8a3   :  { %v1390_v19 = vmul.f32 %v5049_v8, %v5041_v41 }
 0x8a4   :  { %v5051_v18 = vpop.eup %5050 }
 0x8a5   :  { %v1391_v20 = vmul.f32 %v5051_v18, %v5043_v43 }
 0x8a7   :  { %v1394_v44 = vpack.c.bf16 %v1391_v20, %v1390_v19 }
 0x8a9   :  { %4456 = vmatmul.mubr.msk.bf16.vlgmr.msra.gmra.mrb[24].mxu0 %vm865_vm6, %v1394_v44 }
 0x8aa   :  { %4466 = vmatpush3.bf16.xpose.msra.mxu0 %v1498_v21  ;;  %4467 = vmatprep.mubr.msk.bf16.mxu0 %vm5145_vm2, %v5144_v26 }
 0x8ab   :  { %4477 = vmatprep.subr.bf16.mxu0 %v5144_v26 }
 0x8b1   :  { %4468 = vmatmul.mubr.msk.bf16.vlgmr.msra.gmra.mrb[28].mxu0 %vm770_vm3, %v1491_v10 }
 0x8b2   :  { %4479 = vmatprep.mubr.msk.bf16.mxu0 %vm5145_vm2, %v5144_v26 }
 0x8ce   :  { %v1382_v22 = vpop.xlane.xlu1 %1381 }
 0x8cf   :  { %5052 = vrcp.f32 %v1382_v22 }
 0x8d0   :  { %v1385_v23 = vpop.xlane.xlu0 %1384 }
 0x8d1   :  { %5054 = vrcp.f32 %v1385_v23 }
 0x8d2   :  { %v1544_v38 = vpop.permute.xlu1 %1543 }
 0x8d3   :  { %v1549_v39 = vsel %vm770_vm3, %v1544_v38, 0 }
 0x8d4   :  { %v1444_v24 = vpop.permute.xlu0 %1443 }
 0x8d5   :  { %4460 = vmatpush3.bf16.msra.mxu1 %v1444_v24 }
 0x8d6   :  { %4471 = vmatprep.subr.bf16.mxu1 %v5144_v26  ;;  %v1542_v40 = vpop.permute.xlu1 %1541 }
 0x8d9   :  { %v5053_v25 = vpop.eup %5052 }
 0x8da   :  { %v1392_v36 = vmul.f32 %v5053_v25, %v5045_v27 }
 0x8db   :  { %v5055_v34 = vpop.eup %5054 }
 0x8dc   :  { %v1393_v37 = vmul.f32 %v5055_v34, %v5047_v57 }
 0x8de   :  { %v1395_v31 = vpack.c.bf16 %v1393_v37, %v1392_v36 }
 0x8e0   :  { %4462 = vmatmul.mubr.msk.bf16.vlgmr.msra.gmra.mrb[40].mxu1 %vm865_vm6, %v1395_v31 }
 0x8e1   :  { %4472 = vmatpush3.bf16.xpose.msra.mxu1 %v1549_v39  ;;  %4473 = vmatprep.mubr.msk.bf16.mxu1 %vm5145_vm2, %v5144_v26 }
 0x8e2   :  { %4483 = vmatprep.subr.bf16.mxu1 %v5144_v26 }
 0x8e8   :  { %4474 = vmatmul.mubr.msk.bf16.vlgmr.msra.gmra.mrb[44].mxu1 %vm770_vm3, %v1542_v40 }
 0x8e9   :  { %4485 = vmatprep.mubr.msk.bf16.mxu1 %vm5145_vm2, %v5144_v26 }
 0x97c   :  { %v5752_v41 = vpop.f32.mrb[24].mxu0 }
 0x97d   :  { %v4457_v42 = vpop.f32.mrb[25].mxu0 }
 0x97e   :  { %v5754_v43 = vpop.f32.mrb[26].mxu0 }
 0x97f   :  { %v4575_v50 = vpack.i.bf16 %v5754_v43, %v5752_v41  ;;  %v4458_v51 = vpop.f32.mrb[27].mxu0 }
 0x984   :  { %v1534_v52 = vpop.f32.mrb[28].mxu0 }
 0x985   :  { %v1535_v53 = vadd.f32 %v1534_v52, %v5606_v54  ;;  %v4469_v59 = vpop.f32.mrb[29].mxu0 }
 0x986   :  { %v1537_v4 = vpop.f32.mrb[30].mxu0 }
 0x987   :  { %v1538_v45 = vadd.f32 %v1537_v4, %v5608_v56  ;;  %v4470_v27 = vpop.f32.mrb[31].mxu0  ;;  %v1592_v46 = vsel %vm865_vm6, %v1535_v53, -inf }
 0x988   :  { %1593 = vmax.xlane.f32.xlu0 %v1592_v46 }
 0x989   :  { %v1595_v57 = vsel %vm865_vm6, %v1538_v45, -inf }
 0x98a   :  { %1596 = vmax.xlane.f32.xlu1 %v1595_v57 }
 0x9b3   :  { %v5762_v58 = vpop.f32.mrb[40].mxu1 }
 0x9b4   :  { %v4463_v62 = vpop.f32.mrb[41].mxu1 }
 0x9b5   :  { %v5764_v5 = vpop.f32.mrb[42].mxu1 }
 0x9b6   :  { %v4595_v6 = vpack.i.bf16 %v5764_v5, %v5762_v58  ;;  %v4464_v48 = vpop.f32.mrb[43].mxu1 }
 0x9bb   :  { %v1585_v8 = vpop.f32.mrb[44].mxu1 }
 0x9bc   :  { %v1586_v18 = vadd.f32 %v1585_v8, %v5606_v54  ;;  %v4475_v19 = vpop.f32.mrb[45].mxu1 }
 0x9bd   :  { %v1588_v20 = vpop.f32.mrb[46].mxu1 }
 0x9be   :  { %v1589_v44 = vadd.f32 %v1588_v20, %v5608_v56  ;;  %v4476_v21 = vpop.f32.mrb[47].mxu1  ;;  %v1598_v10 = vsel %vm865_vm6, %v1586_v18, -inf }
 0x9bf   :  { %1599 = vmax.xlane.f32.xlu0 %v1598_v10  ;;  %v1736_v21 = vsel %vm770_vm3, %v5583_v35, 0 }
 0x9c0   :  { %v1601_v22 = vsel %vm865_vm6, %v1589_v44, -inf }
 0x9c3   :  { %1602 = vmax.xlane.f32.xlu0 %v1601_v22 }
 0xa15   :  { %v1594_v23 = vpop.xlane.xlu0 %1593 }
 0xa16   :  { %v1604_v24 = vsub.f32 %v1535_v53, %v1594_v23 }
 0xa17   :  { %v1597_v25 = vpop.xlane.xlu1 %1596 }
 0xa18   :  { %v1608_v34 = vmul.f32 1.442695, %v1604_v24  ;;  %v1605_v36 = vsub.f32 %v1538_v45, %v1597_v25 }
 0xa1a   :  { %5056 = vpow2.f32 %v1608_v34  ;;  %v1610_v37 = vmul.f32 1.442695, %v1605_v36 }
 0xa1c   :  { %5058 = vpow2.f32 %v1610_v37  ;;  %v1783_v37 = vsel %vm770_vm3, %v5590_v49, 0 }
 0xa24   :  { %v5057_v38 = vpop.eup %5056 }
 0xa25   :  { %v1616_v31 = vsel %vm865_vm6, %v5057_v38, 0.0 }
 0xa26   :  { %v5059_v39 = vpop.eup %5058  ;;  %1617 = vadd.xlane.f32.xlu0 %v1616_v31 }
 0xa27   :  { %v1619_v40 = vsel %vm865_vm6, %v5059_v39, 0.0 }
 0xa28   :  { %1620 = vadd.xlane.f32.xlu1 %v1619_v40 }
 0xa3c   :  { %1638 = vrot.lane.b32.xlu0 %v5559_v63, %s5149_s18 }
 0xa4c   :  { %v1600_v42 = vpop.xlane.xlu0 %1599 }
 0xa4d   :  { %v1606_v51 = vsub.f32 %v1586_v18, %v1600_v42 }
 0xa4f   :  { %v1612_v52 = vmul.f32 1.442695, %v1606_v51 }
 0xa50   :  { %v1603_v53 = vpop.xlane.xlu0 %1602 }
 0xa51   :  { %5060 = vpow2.f32 %v1612_v52  ;;  %v1607_v59 = vsub.f32 %v1589_v44, %v1603_v53 }
 0xa53   :  { %v1614_v4 = vmul.f32 1.442695, %v1607_v59 }
 0xa55   :  { %5062 = vpow2.f32 %v1614_v4 }
 0xa5b   :  { %v5061_v45 = vpop.eup %5060 }
 0xa5c   :  { %v1622_v27 = vsel %vm865_vm6, %v5061_v45, 0.0 }
 0xa5d   :  { %1623 = vadd.xlane.f32.xlu1 %v1622_v27 }
 0xa5f   :  { %v5063_v46 = vpop.eup %5062 }
 0xa60   :  { %v1625_v57 = vsel %vm865_vm6, %v5063_v46, 0.0 }
 0xa61   :  { %1626 = vadd.xlane.f32.xlu1 %v1625_v57 }
 0xa72   :  { %1685 = vrot.lane.b32.xlu1 %v5569_v11, %s5149_s18 }
 0xab3   :  { %v1618_v63 = vpop.xlane.xlu0 %1617 }
 0xab4   :  { %5064 = vrcp.f32 %v1618_v63 }
 0xab5   :  { %v1621_v62 = vpop.xlane.xlu1 %1620 }
 0xab6   :  { %5066 = vrcp.f32 %v1621_v62 }
 0xab7   :  { %v1639_v48 = vpop.permute.xlu0 %1638 }
 0xab8   :  { %4478 = vmatpush3.bf16.msra.mxu0 %v1639_v48 }
 0xab9   :  { %4489 = vmatprep.subr.bf16.mxu0 %v5144_v26 }
 0xabe   :  { %v5065_v8 = vpop.eup %5064 }
 0xabf   :  { %v1632_v19 = vmul.f32 %v5065_v8, %v5057_v38 }
 0xac0   :  { %v5067_v18 = vpop.eup %5066 }
 0xac1   :  { %v1633_v20 = vmul.f32 %v5067_v18, %v5059_v39 }
 0xac3   :  { %v1636_v44 = vpack.c.bf16 %v1633_v20, %v1632_v19 }
 0xac5   :  { %4480 = vmatmul.mubr.msk.bf16.vlgmr.msra.gmra.mrb[32].mxu0 %vm865_vm6, %v1636_v44 }
 0xac6   :  { %4490 = vmatpush3.bf16.xpose.msra.mxu0 %v1736_v21  ;;  %4491 = vmatprep.mubr.msk.bf16.mxu0 %vm5145_vm2, %v5144_v26 }
 0xac7   :  { %4501 = vmatprep.subr.bf16.mxu0 %v5144_v26 }
 0xacd   :  { %4492 = vmatmul.mubr.msk.bf16.vlgmr.msra.gmra.mrb[36].mxu0 %vm770_vm3, %v5561_v0 }
 0xace   :  { %4502 = vmatpush3.bf16.msra.mxu0 %v5563_v1  ;;  %4503 = vmatprep.mubr.msk.bf16.mxu0 %vm5145_vm2, %v5144_v26 }
 0xacf   :  { %4513 = vmatprep.subr.bf16.mxu0 %v5144_v26 }
 0xaea   :  { %v1624_v11 = vpop.xlane.xlu1 %1623 }
 0xaeb   :  { %5068 = vrcp.f32 %v1624_v11 }
 0xaee   :  { %v1627_v10 = vpop.xlane.xlu1 %1626 }
 0xaef   :  { %5070 = vrcp.f32 %v1627_v10 }
 0xaf2   :  { %v1686_v22 = vpop.permute.xlu1 %1685 }
 0xaf3   :  { %4484 = vmatpush3.bf16.msra.mxu1 %v1686_v22 }
 0xaf4   :  { %4495 = vmatprep.subr.bf16.mxu1 %v5144_v26 }
 0xaf5   :  { %v5069_v23 = vpop.eup %5068 }
 0xaf6   :  { %v1634_v25 = vmul.f32 %v5069_v23, %v5061_v45 }
 0xaf9   :  { %v5071_v24 = vpop.eup %5070 }
 0xafa   :  { %v1635_v34 = vmul.f32 %v5071_v24, %v5063_v46 }
 0xafc   :  { %v1637_v36 = vpack.c.bf16 %v1635_v34, %v1634_v25 }
 0xafe   :  { %4486 = vmatmul.mubr.msk.bf16.vlgmr.msra.gmra.mrb[48].mxu1 %vm865_vm6, %v1637_v36 }
 0xaff   :  { %4496 = vmatpush3.bf16.xpose.msra.mxu1 %v1783_v37  ;;  %4497 = vmatprep.mubr.msk.bf16.mxu1 %vm5145_vm2, %v5144_v26 }
 0xb00   :  { %4507 = vmatprep.subr.bf16.mxu1 %v5144_v26 }
 0xb06   :  { %4498 = vmatmul.mubr.msk.bf16.vlgmr.msra.gmra.mrb[52].mxu1 %vm770_vm3, %v5571_v12 }
 0xb07   :  { %4508 = vmatpush3.bf16.msra.mxu1 %v5573_v13  ;;  %4509 = vmatprep.mubr.msk.bf16.mxu1 %vm5145_vm2, %v5144_v26 }
 0xb08   :  { %4519 = vmatprep.subr.bf16.mxu1 %v5144_v26 }
 0xb98   :  { %v5806_v38 = vpop.f32.mrb[32].mxu0 }
 0xb99   :  { %v4481_v31 = vpop.f32.mrb[33].mxu0 }
 0xb9a   :  { %v5808_v39 = vpop.f32.mrb[34].mxu0 }
 0xb9b   :  { %v4585_v40 = vpack.i.bf16 %v5808_v39, %v5806_v38  ;;  %v4482_v42 = vpop.f32.mrb[35].mxu0 }
 0xba0   :  { %v1772_v51 = vpop.f32.mrb[36].mxu0 }
 0xba1   :  { %v1773_v52 = vadd.f32 %v1772_v51, %v5606_v54  ;;  %v4493_v53 = vpop.f32.mrb[37].mxu0 }
 0xba2   :  { %v1775_v59 = vpop.f32.mrb[38].mxu0 }
 0xba3   :  { %v1776_v4 = vadd.f32 %v1775_v59, %v5608_v56  ;;  %v4494_v45 = vpop.f32.mrb[39].mxu0  ;;  %v1826_v27 = vsel %vm865_vm6, %v1773_v52, -inf }
 0xba4   :  { %1827 = vmax.xlane.f32.xlu0 %v1826_v27 }
 0xba5   :  { %v1829_v46 = vsel %vm865_vm6, %v1776_v4, -inf }
 0xba6   :  { %1830 = vmax.xlane.f32.xlu1 %v1829_v46 }
 0xbd1   :  { %v5816_v57 = vpop.f32.mrb[48].mxu1 }
 0xbd2   :  { %v4487_v63 = vpop.f32.mrb[49].mxu1 }
 0xbd3   :  { %v5818_v62 = vpop.f32.mrb[50].mxu1 }
 0xbd4   :  { %v4605_v48 = vpack.i.bf16 %v5818_v62, %v5816_v57  ;;  %v4488_v8 = vpop.f32.mrb[51].mxu1 }
 0xbd9   :  { %v1819_v18 = vpop.f32.mrb[52].mxu1 }
 0xbda   :  { %v1820_v19 = vadd.f32 %v1819_v18, %v5606_v54  ;;  %v4499_v20 = vpop.f32.mrb[53].mxu1 }
 0xbdb   :  { %v1822_v44 = vpop.f32.mrb[54].mxu1 }
 0xbdc   :  { %v1823_v21 = vadd.f32 %v1822_v44, %v5608_v56  ;;  %v4500_v11 = vpop.f32.mrb[55].mxu1  ;;  %v1832_v10 = vsel %vm865_vm6, %v1820_v19, -inf }
 0xbdd   :  { %1833 = vmax.xlane.f32.xlu0 %v1832_v10 }
 0xbde   :  { %v1835_v22 = vsel %vm865_vm6, %v1823_v21, -inf }
 0xbe1   :  { %1836 = vmax.xlane.f32.xlu0 %v1835_v22 }
 0xc31   :  { %v1828_v23 = vpop.xlane.xlu0 %1827 }
 0xc32   :  { %v1838_v24 = vsub.f32 %v1773_v52, %v1828_v23 }
 0xc33   :  { %v1831_v25 = vpop.xlane.xlu1 %1830 }
 0xc34   :  { %v1842_v34 = vmul.f32 1.442695, %v1838_v24  ;;  %v1839_v36 = vsub.f32 %v1776_v4, %v1831_v25 }
 0xc36   :  { %5072 = vpow2.f32 %v1842_v34  ;;  %v1844_v37 = vmul.f32 1.442695, %v1839_v36 }
 0xc38   :  { %5074 = vpow2.f32 %v1844_v37 }
 0xc40   :  { %v5073_v31 = vpop.eup %5072 }
 0xc41   :  { %v1850_v42 = vsel %vm865_vm6, %v5073_v31, 0.0 }
 0xc42   :  { %v5075_v51 = vpop.eup %5074  ;;  %1851 = vadd.xlane.f32.xlu0 %v1850_v42 }
 0xc43   :  { %v1853_v53 = vsel %vm865_vm6, %v5075_v51, 0.0 }
 0xc44   :  { %1854 = vadd.xlane.f32.xlu1 %v1853_v53 }
 0xc55   :  { %1961 = vrot.lane.b32.xlu1 %v5561_v0, %s5147_s2 }
 0xc58   :  { %1964 = vrot.lane.b32.xlu0 %v5583_v35, %s5147_s2 }
 0xc6a   :  { %v1834_v52 = vpop.xlane.xlu0 %1833 }
 0xc6b   :  { %v1840_v59 = vsub.f32 %v1820_v19, %v1834_v52 }
 0xc6d   :  { %v1846_v4 = vmul.f32 1.442695, %v1840_v59 }
 0xc6e   :  { %v1837_v45 = vpop.xlane.xlu0 %1836 }
 0xc6f   :  { %5076 = vpow2.f32 %v1846_v4  ;;  %v1841_v27 = vsub.f32 %v1823_v21, %v1837_v45 }
 0xc71   :  { %v1848_v46 = vmul.f32 1.442695, %v1841_v27 }
 0xc73   :  { %5078 = vpow2.f32 %v1848_v46 }
 0xc79   :  { %v5077_v63 = vpop.eup %5076 }
 0xc7a   :  { %v1856_v8 = vsel %vm865_vm6, %v5077_v63, 0.0 }
 0xc7b   :  { %1857 = vadd.xlane.f32.xlu1 %v1856_v8 }
 0xc7d   :  { %v5079_v18 = vpop.eup %5078 }
 0xc7e   :  { %v1859_v20 = vsel %vm865_vm6, %v5079_v18, 0.0 }
 0xc7f   :  { %1860 = vadd.xlane.f32.xlu0 %v1859_v20 }
 0xc8c   :  { %2014 = vrot.lane.b32.xlu1 %v5571_v12, %s5147_s2 }
 0xc95   :  { %2017 = vrot.lane.b32.xlu0 %v5590_v49, %s5147_s2 }
 0xccf   :  { %v1852_v0 = vpop.xlane.xlu0 %1851 }
 0xcd0   :  { %5080 = vrcp.f32 %v1852_v0 }
 0xcd1   :  { %v1855_v35 = vpop.xlane.xlu1 %1854 }
 0xcd2   :  { %5082 = vrcp.f32 %v1855_v35 }
 0xcd3   :  { %v1965_v10 = vpop.permute.xlu0 %1964 }
 0xcd4   :  { %v1970_v23 = vsel %vm770_vm3, %v1965_v10, 0 }
 0xcd5   :  { %v1962_v12 = vpop.permute.xlu1 %1961 }
 0xcda   :  { %v5081_v19 = vpop.eup %5080 }
 0xcdb   :  { %v1866_v21 = vmul.f32 %v5081_v19, %v5073_v31 }
 0xcdc   :  { %v5083_v44 = vpop.eup %5082 }
 0xcdd   :  { %v1867_v11 = vmul.f32 %v5083_v44, %v5075_v51 }
 0xcdf   :  { %v1870_v22 = vpack.c.bf16 %v1867_v11, %v1866_v21 }
 0xce1   :  { %4504 = vmatmul.mubr.msk.bf16.vlgmr.msra.gmra.mrb[40].mxu0 %vm865_vm6, %v1870_v22 }
 0xce2   :  { %4514 = vmatpush3.bf16.xpose.msra.mxu0 %v1970_v23  ;;  %4515 = vmatprep.mubr.msk.bf16.mxu0 %vm5145_vm2, %v5144_v26 }
 0xce3   :  { %4525 = vmatprep.subr.bf16.mxu0 %v5144_v26 }
 0xce9   :  { %4516 = vmatmul.mubr.msk.bf16.vlgmr.msra.gmra.mrb[44].mxu0 %vm770_vm3, %v1962_v12 }
 0xcea   :  { %4527 = vmatprep.mubr.msk.bf16.mxu0 %vm5145_vm2, %v5144_v26 }
 0xd08   :  { %v1858_v49 = vpop.xlane.xlu1 %1857 }
 0xd09   :  { %5084 = vrcp.f32 %v1858_v49 }
 0xd0c   :  { %v1861_v24 = vpop.xlane.xlu0 %1860  ;;  %v2015_v53 = vpop.permute.xlu1 %2014 }
 0xd0d   :  { %5086 = vrcp.f32 %v1861_v24 }
 0xd10   :  { %v2018_v31 = vpop.permute.xlu0 %2017 }
 0xd11   :  { %v2023_v51 = vsel %vm770_vm3, %v2018_v31, 0 }
 0xd13   :  { %v5085_v25 = vpop.eup %5084 }
 0xd14   :  { %v1868_v36 = vmul.f32 %v5085_v25, %v5077_v63 }
 0xd17   :  { %v5087_v34 = vpop.eup %5086 }
 0xd18   :  { %v1869_v37 = vmul.f32 %v5087_v34, %v5079_v18 }
 0xd1a   :  { %v1871_v42 = vpack.c.bf16 %v1869_v37, %v1868_v36 }
 0xd1c   :  { %4510 = vmatmul.mubr.msk.bf16.vlgmr.msra.gmra.mrb[56].mxu1 %vm865_vm6, %v1871_v42 }
 0xd1d   :  { %4520 = vmatpush3.bf16.xpose.msra.mxu1 %v2023_v51  ;;  %4521 = vmatprep.mubr.msk.bf16.mxu1 %vm5145_vm2, %v5144_v26 }
 0xd1e   :  { %4531 = vmatprep.subr.bf16.mxu1 %v5144_v26 }
 0xd24   :  { %4522 = vmatmul.mubr.msk.bf16.vlgmr.msra.gmra.mrb[60].mxu1 %vm770_vm3, %v2015_v53 }
 0xd25   :  { %4533 = vmatprep.mubr.msk.bf16.mxu1 %vm5145_vm2, %v5144_v26 }
 0xdb4   :  { %v5854_v52 = vpop.f32.mrb[40].mxu0 }
 0xdb5   :  { %v4505_v59 = vpop.f32.mrb[41].mxu0 }
 0xdb6   :  { %v5856_v4 = vpop.f32.mrb[42].mxu0 }
 0xdb7   :  { %v4506_v45 = vpop.f32.mrb[43].mxu0 }
 0xdbc   :  { %v2006_v27 = vpop.f32.mrb[44].mxu0 }
 0xdbd   :  { %v2007_v46 = vadd.f32 %v2006_v27, %v5606_v54  ;;  %v4517_v63 = vpop.f32.mrb[45].mxu0 }
 0xdbe   :  { %v2009_v8 = vpop.f32.mrb[46].mxu0 }
 0xdbf   :  { %v2010_v18 = vadd.f32 %v2009_v8, %v5608_v56  ;;  %v4518_v20 = vpop.f32.mrb[47].mxu0  ;;  %v2066_v0 = vsel %vm865_vm6, %v2007_v46, -inf }
 0xdc0   :  { %2067 = vmax.xlane.f32.xlu1 %v2066_v0 }
 0xdc1   :  { %v2069_v35 = vsel %vm865_vm6, %v2010_v18, -inf }
 0xdc2   :  { %2070 = vmax.xlane.f32.xlu0 %v2069_v35 }
 0xdef   :  { %v5862_v26 = vpop.f32.mrb[56].mxu1 }
 0xdf0   :  { %v4511_v19 = vpop.f32.mrb[57].mxu1 }
 0xdf1   :  { %v5864_v44 = vpop.f32.mrb[58].mxu1 }
 0xdf2   :  { %v4512_v21 = vpop.f32.mrb[59].mxu1 }
 0xdf7   :  { %v2059_v11 = vpop.f32.mrb[60].mxu1 }
 0xdf8   :  { %v2060_v10 = vadd.f32 %v2059_v11, %v5606_v54  ;;  %v4523_v22 = vpop.f32.mrb[61].mxu1 }
 0xdf9   :  { %v2062_v23 = vpop.f32.mrb[62].mxu1 }
 0xdfa   :  { %v2063_v12 = vadd.f32 %v2062_v23, %v5608_v56  ;;  %v4524_v49 = vpop.f32.mrb[63].mxu1  ;;  %v2072_v24 = vsel %vm865_vm6, %v2060_v10, -inf }
 0xdfb   :  { %2073 = vmax.xlane.f32.xlu0 %v2072_v24 }
 0xdfc   :  { %v2075_v25 = vsel %vm865_vm6, %v2063_v12, -inf }
 0xdfd   :  { %2076 = vmax.xlane.f32.xlu1 %v2075_v25 }
 0xe4d   :  { %v2068_v34 = vpop.xlane.xlu1 %2067 }
 0xe4e   :  { %v2078_v36 = vsub.f32 %v2007_v46, %v2068_v34 }
 0xe4f   :  { %v2071_v37 = vpop.xlane.xlu0 %2070 }
 0xe50   :  { %v2082_v31 = vmul.f32 1.442695, %v2078_v36  ;;  %v2079_v42 = vsub.f32 %v2010_v18, %v2071_v37 }
 0xe52   :  { %5088 = vpow2.f32 %v2082_v31  ;;  %v2084_v51 = vmul.f32 1.442695, %v2079_v42 }
 0xe54   :  { %5090 = vpow2.f32 %v2084_v51 }
 0xe5c   :  { %v5089_v54 = vpop.eup %5088 }
 0xe5d   :  { %v2090_v53 = vsel %vm865_vm6, %v5089_v54, 0.0 }
 0xe5e   :  { %v5091_v59 = vpop.eup %5090  ;;  %2091 = vadd.xlane.f32.xlu0 %v2090_v53  ;;  %v4718_v53 = vld [vmem:[%s6716_s3 + $0x10] ss:$8 sps:$4 sm:$0xff]  }
 0xe5f   :  { %v2093_v56 = vsel %vm865_vm6, %v5091_v59, 0.0 }
 0xe60   :  { %2094 = vadd.xlane.f32.xlu1 %v2093_v56  ;;  %v4721_v56 = vld [vmem:[%s6716_s3 + $0x20] ss:$8 sps:$4 sm:$0xff]  }
 0xe74   :  { %2113 = vrot.lane.b32.xlu0 %v5563_v1, %s5147_s2 }
 0xe78   :  { %4571 = vrot.lane.b32.xlu0 %v4570_v3, %s5149_s18 }
 0xe88   :  { %v2074_v45 = vpop.xlane.xlu0 %2073 }
 0xe89   :  { %v2080_v27 = vsub.f32 %v2060_v10, %v2074_v45  ;;  %v4726_v45 = vld [vmem:[%s6716_s3 + $0x34] ss:$8 sps:$4 sm:$0xff]  }
 0xe8a   :  { %v2077_v46 = vpop.xlane.xlu1 %2076 }
 0xe8b   :  { %v2086_v63 = vmul.f32 1.442695, %v2080_v27  ;;  %v2081_v8 = vsub.f32 %v2063_v12, %v2077_v46  ;;  %v4724_v27 = vld [vmem:[%s6716_s3 + $0x30] ss:$8 sps:$4 sm:$0xff]   ;;  %v4729_v46 = vld [vmem:[%s6716_s3 + $0x44] ss:$8 sps:$4 sm:$0xff]  }
 0xe8d   :  { %5092 = vpow2.f32 %v2086_v63  ;;  %v2088_v18 = vmul.f32 1.442695, %v2081_v8  ;;  %v4727_v63 = vld [vmem:[%s6716_s3 + $0x40] ss:$8 sps:$4 sm:$0xff]   ;;  %v4732_v8 = vld [vmem:[%s6716_s3 + $0x54] ss:$8 sps:$4 sm:$0xff]  }
 0xe8f   :  { %5094 = vpow2.f32 %v2088_v18  ;;  %v4730_v18 = vld [vmem:[%s6716_s3 + $0x50] ss:$8 sps:$4 sm:$0xff]  }
 0xe97   :  { %v5093_v20 = vpop.eup %5092 }
 0xe98   :  { %v2096_v0 = vsel %vm865_vm6, %v5093_v20, 0.0 }
 0xe99   :  { %v5095_v35 = vpop.eup %5094  ;;  %2097 = vadd.xlane.f32.xlu1 %v2096_v0  ;;  %v4733_v0 = vld [vmem:[%s6716_s3 + $0x60] ss:$8 sps:$4 sm:$0xff]  }
 0xe9a   :  { %v2099_v1 = vsel %vm865_vm6, %v5095_v35, 0.0 }
 0xe9d   :  { %2100 = vadd.xlane.f32.xlu1 %v2099_v1  ;;  %v4736_v1 = vld [vmem:[%s6716_s3 + $0x70] ss:$8 sps:$4 sm:$0xff]  }
 0xeae   :  { %2161 = vrot.lane.b32.xlu1 %v5573_v13, %s5147_s2 }
 0xeb2   :  { %4576 = vrot.lane.b32.xlu1 %v4575_v50, %s5148_s17 }
 0xeb6   :  { %4586 = vrot.lane.b32.xlu1 %v4585_v40, %s5147_s2 }
 0xeba   :  { %4596 = vrot.lane.b32.xlu1 %v4595_v6, %s5148_s17 }
 0xebe   :  { %4606 = vrot.lane.b32.xlu1 %v4605_v48, %s5147_s2 }
 0xeeb   :  { %v2092_v13 = vpop.xlane.xlu0 %2091 }
 0xeec   :  { %5096 = vrcp.f32 %v2092_v13  ;;  %v4741_v13 = vld [vmem:[%s6716_s3 + $0x84] ss:$8 sps:$4 sm:$0xff]  }
 0xeed   :  { %v2095_v55 = vpop.xlane.xlu1 %2094 }
 0xeee   :  { %5098 = vrcp.f32 %v2095_v55  ;;  %v4739_v55 = vld [vmem:[%s6716_s3 + $0x80] ss:$8 sps:$4 sm:$0xff]  }
 0xeef   :  { %v2114_v2 = vpop.permute.xlu0 %2113 }
 0xef0   :  { %4526 = vmatpush3.bf16.msra.mxu0 %v2114_v2  ;;  %v4744_v2 = vld [vmem:[%s6716_s3 + $0x94] ss:$8 sps:$4 sm:$0xff]  }
 0xef3   :  { %v4572_v39 = vpop.permute.xlu0 %4571 }
 0xef4   :  { %v4574_v62 = vunpack.i.h.bf16 %v4572_v39  ;;  %v4573_v48 = vunpack.i.l.bf16 %v4572_v39 }
 0xef6   :  { %v5097_v3 = vpop.eup %5096  ;;  %v2273_v12 = vsel %vm770_vm3, %v5650_v47, %v4574_v62  ;;  %v2272_v49 = vsel %vm770_vm3, %v5648_v7, %v4573_v48  ;;  %v4715_v7 = vld [vmem:[%s6716_s3] ss:$8 sps:$4 sm:$0xff]   ;;  %v4717_v47 = vld [vmem:[%s6716_s3 + $0x4] ss:$8 sps:$4 sm:$0xff]  }
 0xef7   :  { %v2106_v43 = vmul.f32 %v5097_v3, %v5089_v54  ;;  %v4720_v54 = vld [vmem:[%s6716_s3 + $0x14] ss:$8 sps:$4 sm:$0xff]   ;;  %2456 = vmatprep.subr.bf16.mxu0 %v4717_v47  ;;  %v4742_v3 = vld [vmem:[%s6716_s3 + $0x90] ss:$8 sps:$4 sm:$0xff]  }
 0xef8   :  { %v5099_v41 = vpop.eup %5098 }
 0xef9   :  { %v2107_v50 = vmul.f32 %v5099_v41, %v5091_v59  ;;  %v4723_v59 = vld [vmem:[%s6716_s3 + $0x24] ss:$8 sps:$4 sm:$0xff]  }
 0xefa   :  { %v4747_v41 = vld [vmem:[%s6716_s3 + $0xa4] ss:$8 sps:$4 sm:$0xff]  }
 0xefb   :  { %v2110_v38 = vpack.c.bf16 %v2107_v50, %v2106_v43  ;;  %v4745_v43 = vld [vmem:[%s6716_s3 + $0xa0] ss:$8 sps:$4 sm:$0xff]   ;;  %v4750_v50 = vld [vmem:[%s6716_s3 + $0xb4] ss:$8 sps:$4 sm:$0xff]  }
 0xefd   :  { %4528 = vmatmul.mubr.msk.bf16.vlgmr.msra.gmra.mrb[48].mxu0 %vm865_vm6, %v2110_v38  ;;  %v4748_v38 = vld [vmem:[%s6716_s3 + $0xb0] ss:$8 sps:$4 sm:$0xff]  }
 0xefe   :  { %2457 = vmatpush1.bf16.msra.mxu0 %v4715_v7 }
 0xeff   :  { %2458 = vmatprep.subr.bf16.mxu0 %v4720_v54 }
 0xf02   :  { %2459 = vmatpush1.bf16.msra.mxu0 %v4718_v53 }
 0xf03   :  { %2460 = vmatprep.subr.bf16.mxu0 %v4723_v59 }
 0xf06   :  { %2461 = vmatpush1.bf16.msra.mxu0 %v4721_v56 }
 0xf07   :  { %2462 = vmatprep.subr.bf16.mxu0 %v4726_v45 }
 0xf0a   :  { %2463 = vmatpush1.bf16.msra.mxu0 %v4724_v27 }
 0xf0b   :  { %2464 = vmatprep.subr.bf16.mxu0 %v4729_v46 }
 0xf0e   :  { %2465 = vmatpush1.bf16.msra.mxu0 %v4727_v63 }
 0xf0f   :  { %2466 = vmatprep.subr.bf16.mxu0 %v4732_v8 }
 0xf12   :  { %2467 = vmatpush1.bf16.msra.mxu0 %v4730_v18 }
 0xf26   :  { %v2098_v58 = vpop.xlane.xlu1 %2097 }
 0xf27   :  { %5100 = vrcp.f32 %v2098_v58 }
 0xf2a   :  { %v2101_v5 = vpop.xlane.xlu1 %2100 }
 0xf2b   :  { %5102 = vrcp.f32 %v2101_v5 }
 0xf2e   :  { %v2162_v6 = vpop.permute.xlu1 %2161 }
 0xf2f   :  { %4532 = vmatpush3.bf16.msra.mxu1 %v2162_v6 }
 0xf31   :  { %v5101_v57 = vpop.eup %5100 }
 0xf32   :  { %v4577_v40 = vpop.permute.xlu1 %4576  ;;  %v2108_v10 = vmul.f32 %v5101_v57, %v5093_v20  ;;  %v4735_v20 = vld [vmem:[%s6716_s3 + $0x64] ss:$8 sps:$4 sm:$0xff]  }
 0xf33   :  { %v4579_v19 = vunpack.i.h.bf16 %v4577_v40  ;;  %v4578_v21 = vunpack.i.l.bf16 %v4577_v40  ;;  %2468 = vmatprep.subr.bf16.mxu0 %v4735_v20 }
 0xf34   :  { %2469 = vmatpush1.bf16.msra.mxu0 %v4733_v0 }
 0xf35   :  { %v5103_v11 = vpop.eup %5102  ;;  %v2277_v34 = vsel %vm2276_vm7, %v2272_v49, %v4578_v21  ;;  %v2278_v36 = vsel %vm2276_vm7, %v2273_v12, %v4579_v19 }
 0xf36   :  { %v2109_v22 = vmul.f32 %v5103_v11, %v5095_v35  ;;  %v4587_v23 = vpop.permute.xlu1 %4586  ;;  %v4738_v35 = vld [vmem:[%s6716_s3 + $0x74] ss:$8 sps:$4 sm:$0xff]  }
 0xf37   :  { %v4589_v24 = vunpack.i.h.bf16 %v4587_v23  ;;  %v4588_v25 = vunpack.i.l.bf16 %v4587_v23  ;;  %2470 = vmatprep.subr.bf16.mxu0 %v4738_v35 }
 0xf38   :  { %v2111_v37 = vpack.c.bf16 %v2109_v22, %v2108_v10  ;;  %2471 = vmatpush1.bf16.msra.mxu0 %v4736_v1 }
 0xf39   :  { %v5906_v31 = vsel %vm2281_vm8, %v2277_v34, %v4588_v25  ;;  %v5909_v42 = vsel %vm2281_vm8, %v2278_v36, %v4589_v24  ;;  %2472 = vmatprep.subr.bf16.mxu0 %v4741_v13 }
 0xf3a   :  { %v2290_v51 = vpack.c.bf16 %v5909_v42, %v5906_v31  ;;  %4534 = vmatmul.mubr.msk.bf16.vlgmr.msra.gmra.mrb[64].mxu1 %vm865_vm6, %v2111_v37  ;;  %v4597_v11 = vpop.permute.xlu1 %4596  ;;  %v2318_v42 = vld [vmem:[%s6717_s4] sm:$0x3] }
 0xf3b   :  { %v4599_v34 = vunpack.i.h.bf16 %v4597_v11  ;;  %v4598_v36 = vunpack.i.l.bf16 %v4597_v11  ;;  %v2327_v63 = vrot.slane %v2318_v42, %v5548_v32 }
 0xf3c   :  { %2473 = vmatpush1.bf16.msra.mxu0 %v4739_v55 }
 0xf3d   :  { %2474 = vmatprep.subr.bf16.mxu0 %v4744_v2  ;;  %v5113_v2 = vld [vmem:[%s6713_s0] sm:$0xff] }
 0xf3e   :  { %v4607_v24 = vpop.permute.xlu1 %4606 }
 0xf3f   :  { %v4609_v37 = vunpack.i.h.bf16 %v4607_v24  ;;  %v4608_v7 = vunpack.i.l.bf16 %v4607_v24  ;;  %v5118_v24 = vld [vmem:[%s6713_s0 + $0x38] sm:$0xff] }
 0xf40   :  { %2475 = vmatpush1.bf16.msra.mxu0 %v4742_v3 }
 0xf41   :  { %2476 = vmatprep.subr.bf16.mxu0 %v4747_v41  ;;  %v5114_v41 = vld [vmem:[%s6713_s0 + $0x18] sm:$0xff] }
 0xf44   :  { %2477 = vmatpush1.bf16.msra.mxu0 %v4745_v43 }
 0xf45   :  { %2478 = vmatprep.subr.bf16.mxu0 %v4750_v50 }
 0xf48   :  { %2479 = vmatpush1.bf16.msra.mxu0 %v4748_v38  ;;  %v5115_v38 = vld [vmem:[%s6713_s0 + $0x10] sm:$0xff] }
 0xfd0   :  { %v2153_v58 = vpop.f32.mrb[48].mxu0 }
 0xfd1   :  { %v4529_v5 = vpop.f32.mrb[49].mxu0 }
 0xfd2   :  { %v2156_v6 = vpop.f32.mrb[50].mxu0 }
 0xfd3   :  { %v4580_v39 = vpack.i.bf16 %v2156_v6, %v2153_v58  ;;  %v4530_v40 = vpop.f32.mrb[51].mxu0 }
 0xfd5   :  { %4581 = vrot.lane.b32.xlu0 %v4580_v39, %s5149_s18 }
 0xfd9   :  { %4591 = vrot.lane.b32.xlu0 %v4590_v16, %s5149_s18 }
0x100d   :  { %v2201_v57 = vpop.f32.mrb[64].mxu1 }
0x100e   :  { %v4535_v62 = vpop.f32.mrb[65].mxu1 }
0x100f   :  { %v2204_v48 = vpop.f32.mrb[66].mxu1 }
0x1010   :  { %v4600_v19 = vpack.i.bf16 %v2204_v48, %v2201_v57  ;;  %v4536_v21 = vpop.f32.mrb[67].mxu1 }
0x1012   :  { %4601 = vrot.lane.b32.xlu0 %v4600_v19, %s5149_s18 }
0x1047   :  { %v4582_v10 = vpop.permute.xlu0 %4581 }
0x1048   :  { %v4584_v22 = vunpack.i.h.bf16 %v4582_v10  ;;  %v4583_v23 = vunpack.i.l.bf16 %v4582_v10  ;;  %v5116_v10 = vld [vmem:[%s6713_s0 + $0x28] sm:$0xff] }
0x104a   :  { %v2287_v12 = vsel %vm770_vm3, %v5856_v4, %v4584_v22  ;;  %v2286_v49 = vsel %vm770_vm3, %v5854_v52, %v4583_v23 }
0x104b   :  { %v2291_v61 = vpack.c.bf16 %v2287_v12, %v2286_v49  ;;  %v4592_v60 = vpop.permute.xlu0 %4591  ;;  %v5117_v12 = vld [vmem:[%s6713_s0 + $0x20] sm:$0xff] }
0x104c   :  { %v4594_v16 = vunpack.i.h.bf16 %v4592_v60  ;;  %v4593_v25 = vunpack.i.l.bf16 %v4592_v60 }
0x104d   :  { %4166 = vmatprep.mubr.msk.bf16.mxu0 %vm2276_vm7, %v2291_v61 }
0x104e   :  { %v2275_v47 = vsel %vm770_vm3, %v5654_v17, %v4594_v16  ;;  %v2274_v4 = vsel %vm770_vm3, %v5652_v9, %v4593_v25  ;;  %2489 = vmatmul.mubr.bf16.vlgmr.msra.gmra.mrb[52].mxu0 %v2290_v51  ;;  %v2323_v51 = vrot.slane %v2318_v42, %v5541_v29  ;;  %v4769_v42 = vld [vmem:[%s6718_s5 + $0x90] ss:$24 sps:$4 sm:$0xff]  }
0x104f   :  { %v2279_v52 = vsel %vm2276_vm7, %v2274_v4, %v4598_v36  ;;  %v2280_v54 = vsel %vm2276_vm7, %v2275_v47, %v4599_v34  ;;  %v5119_v34 = vld [vmem:[%s6713_s0 + $0x30] sm:$0xff]  ;;  %v4753_v47 = vld [vmem:[%s6718_s5 + $0x4] ss:$24 sps:$4 sm:$0xff]   ;;  %v4754_v4 = vld [vmem:[%s6718_s5 + $0x8] ss:$24 sps:$4 sm:$0xff]  }
0x1050   :  { %v2284_v53 = vsel %vm2281_vm8, %v2279_v52, %v4608_v7  ;;  %v2285_v59 = vsel %vm2281_vm8, %v2280_v54, %v4609_v37  ;;  %v4751_v7 = vld [vmem:[%s6718_s5] ss:$24 sps:$4 sm:$0xff]   ;;  %v4756_v52 = vld [vmem:[%s6718_s5 + $0xc] ss:$24 sps:$4 sm:$0xff]   ;;  %3063 = vmatprep.subr.bf16.mxu1 %v4753_v47 }
0x1051   :  { %v2292_v56 = vpack.c.bf16 %v2285_v59, %v2284_v53  ;;  %v4759_v54 = vld [vmem:[%s6718_s5 + $0x34] ss:$24 sps:$4 sm:$0xff]   ;;  %3116 = vmatprep.subr.bf16.mxu0 %v4756_v52  ;;  %3064 = vmatpush1.bf16.msra.mxu1 %v4751_v7  ;;  %v4757_v59 = vld [vmem:[%s6718_s5 + $0x30] ss:$24 sps:$4 sm:$0xff]   ;;  %v4799_v47 = vld [vmem:[%s6718_s5 + $0x180] ss:$24 sps:$4 sm:$0xff]  }
0x1052   :  { %v4762_v53 = vld [vmem:[%s6718_s5 + $0x3c] ss:$24 sps:$4 sm:$0xff]   ;;  %3117 = vmatpush1.bf16.msra.mxu0 %v4754_v4  ;;  %3065 = vmatprep.subr.bf16.mxu1 %v4759_v54  ;;  %v4804_v7 = vld [vmem:[%s6718_s5 + $0x18c] ss:$24 sps:$4 sm:$0xff]   ;;  %v4802_v4 = vld [vmem:[%s6718_s5 + $0x188] ss:$24 sps:$4 sm:$0xff]  }
0x1053   :  { %3118 = vmatprep.subr.bf16.mxu0 %v4762_v53  ;;  %v4807_v52 = vld [vmem:[%s6718_s5 + $0x1b4] ss:$24 sps:$4 sm:$0xff]   ;;  %v4805_v53 = vld [vmem:[%s6718_s5 + $0x1b0] ss:$24 sps:$4 sm:$0xff]  }
0x1054   :  { %v4810_v54 = vld [vmem:[%s6718_s5 + $0x1bc] ss:$24 sps:$4 sm:$0xff]  }
0x1055   :  { %3066 = vmatpush1.bf16.msra.mxu1 %v4757_v59  ;;  %v4808_v59 = vld [vmem:[%s6718_s5 + $0x1b8] ss:$24 sps:$4 sm:$0xff]  }
0x1084   :  { %v4602_v45 = vpop.permute.xlu0 %4601 }
0x1085   :  { %v4604_v27 = vunpack.i.h.bf16 %v4602_v45  ;;  %v4603_v46 = vunpack.i.l.bf16 %v4602_v45  ;;  %v4765_v45 = vld [vmem:[%s6718_s5 + $0x64] ss:$24 sps:$4 sm:$0xff]  }
0x1086   :  { %3067 = vmatprep.subr.bf16.mxu1 %v4765_v45  ;;  %v4816_v45 = vld [vmem:[%s6718_s5 + $0x1ec] ss:$24 sps:$4 sm:$0xff]  }
0x1087   :  { %v2289_v17 = vsel %vm770_vm3, %v5864_v44, %v4604_v27  ;;  %v2288_v9 = vsel %vm770_vm3, %v5862_v26, %v4603_v46  ;;  %v5112_v26 = vld [vmem:[%s6713_s0 + $0x8] sm:$0xff]  ;;  %v4763_v46 = vld [vmem:[%s6718_s5 + $0x60] ss:$24 sps:$4 sm:$0xff]  }
0x1088   :  { %v2293_v31 = vpack.c.bf16 %v2289_v17, %v2288_v9  ;;  %v4768_v27 = vld [vmem:[%s6718_s5 + $0x6c] ss:$24 sps:$4 sm:$0xff]   ;;  %v4766_v17 = vld [vmem:[%s6718_s5 + $0x68] ss:$24 sps:$4 sm:$0xff]   ;;  %3068 = vmatpush1.bf16.msra.mxu1 %v4763_v46  ;;  %v2660_v46 = vld [vmem:[%s6718_s5 + $0x218] sm:$0xff] }
0x1089   :  { %v4771_v9 = vld [vmem:[%s6718_s5 + $0x94] ss:$24 sps:$4 sm:$0xff]  }
0x108a   :  { %4167 = vmatprep.mubr.msk.bf16.mxu0 %vm2276_vm7, %v2293_v31  ;;  %v4774_v31 = vld [vmem:[%s6718_s5 + $0x9c] ss:$24 sps:$4 sm:$0xff]   ;;  %3069 = vmatprep.subr.bf16.mxu1 %v4771_v9  ;;  %v4814_v9 = vld [vmem:[%s6718_s5 + $0x1e8] ss:$24 sps:$4 sm:$0xff]  }
0x108b   :  { %2499 = vmatmul.mubr.bf16.gmra.mrb[56].mxu0 %v2292_v56  ;;  %v4760_v56 = vld [vmem:[%s6718_s5 + $0x38] ss:$24 sps:$4 sm:$0xff]  }
0x108c   :  { %3119 = vmatpush1.bf16.msra.mxu0 %v4760_v56  ;;  %3070 = vmatpush1.bf16.msra.mxu1 %v4769_v42  ;;  %v4813_v56 = vld [vmem:[%s6718_s5 + $0x1e4] ss:$24 sps:$4 sm:$0xff]   ;;  %v4237_v42 = vcombine.high %v2660_v46, %v2660_v46 }
0x108d   :  { %3120 = vmatprep.subr.bf16.mxu0 %v4768_v27  ;;  %v2659_v27 = vld [vmem:[%s6718_s5 + $0x210] sm:$0xff] }
0x1090   :  { %3121 = vmatpush1.bf16.msra.mxu0 %v4766_v17  ;;  %v4811_v17 = vld [vmem:[%s6718_s5 + $0x1e0] ss:$24 sps:$4 sm:$0xff]  }
0x1091   :  { %3122 = vmatprep.subr.bf16.mxu0 %v4774_v31  ;;  %v4235_v31 = vcombine.high %v2659_v27, %v2659_v27 }
0x1121   :  { %v2490_v8 = vpop.f32.mrb[52].mxu0 }
0x1122   :  { %v2491_v18 = vadd.f32 %v2490_v8, %v2323_v51  ;;  %v2492_v20 = vpop.f32.mrb[53].mxu0  ;;  %v4780_v8 = vld [vmem:[%s6718_s5 + $0xcc] ss:$24 sps:$4 sm:$0xff]  }
0x1123   :  { %v2493_v0 = vadd.f32 %v2492_v20, %v2327_v63  ;;  %v2494_v44 = vpop.f32.mrb[54].mxu0  ;;  %v4778_v20 = vld [vmem:[%s6718_s5 + $0xc8] ss:$24 sps:$4 sm:$0xff]  }
0x1124   :  { %v2495_v35 = vadd.f32 %v2494_v44, %v2323_v51  ;;  %v2496_v1 = vpop.f32.mrb[55].mxu0  ;;  %v6026_v3 = vadd.f32 %v5113_v2, %v2491_v18  ;;  %v4775_v18 = vld [vmem:[%s6718_s5 + $0xc0] ss:$24 sps:$4 sm:$0xff]   ;;  %v4786_v44 = vld [vmem:[%s6718_s5 + $0xfc] ss:$24 sps:$4 sm:$0xff]  }
0x1125   :  { %v6021_v13 = vadd.f32 %v5112_v26, %v2493_v0  ;;  %v2497_v55 = vadd.f32 %v2496_v1, %v2327_v63  ;;  %v4783_v0 = vld [vmem:[%s6718_s5 + $0xf4] ss:$24 sps:$4 sm:$0xff]   ;;  %v4784_v1 = vld [vmem:[%s6718_s5 + $0xf8] ss:$24 sps:$4 sm:$0xff]   ;;  %v4789_v26 = vld [vmem:[%s6718_s5 + $0x124] ss:$24 sps:$4 sm:$0xff]  }
0x1126   :  { %v6038_v58 = vadd.f32 %v5115_v38, %v2495_v35  ;;  %v4781_v35 = vld [vmem:[%s6718_s5 + $0xf0] ss:$24 sps:$4 sm:$0xff]   ;;  %v4787_v2 = vld [vmem:[%s6718_s5 + $0x120] ss:$24 sps:$4 sm:$0xff]  }
0x1127   :  { %v6031_v43 = vadd.f32 %v5114_v41, %v2497_v55  ;;  %v2517_v50 = vsel %vm42_vm0, %v6021_v13, 0.0  ;;  %v4792_v55 = vld [vmem:[%s6718_s5 + $0x12c] ss:$24 sps:$4 sm:$0xff]   ;;  %v4790_v41 = vld [vmem:[%s6718_s5 + $0x128] ss:$24 sps:$4 sm:$0xff]  }
0x1128   :  { %v2518_v5 = vadd.f32 %v2517_v50, %v6026_v3 }
0x1129   :  { %v2521_v6 = vsel %vm42_vm0, %v6031_v43, 0.0 }
0x112a   :  { %2519 = vadd.xlane.f32.xlu0 %v2518_v5  ;;  %v2522_v39 = vadd.f32 %v2521_v6, %v6038_v58 }
0x112c   :  { %2523 = vadd.xlane.f32.xlu1 %v2522_v39 }
0x115e   :  { %v2500_v40 = vpop.f32.mrb[56].mxu0 }
0x115f   :  { %v2501_v57 = vadd.f32 %v2500_v40, %v2323_v51  ;;  %v2502_v62 = vpop.f32.mrb[57].mxu0 }
0x1160   :  { %v2503_v48 = vadd.f32 %v2502_v62, %v2327_v63  ;;  %v2504_v19 = vpop.f32.mrb[58].mxu0 }
0x1161   :  { %v2505_v21 = vadd.f32 %v2504_v19, %v2323_v51  ;;  %v2506_v11 = vpop.f32.mrb[59].mxu0  ;;  %v6052_v49 = vadd.f32 %v5117_v12, %v2501_v57  ;;  %v4772_v51 = vld [vmem:[%s6718_s5 + $0x98] ss:$24 sps:$4 sm:$0xff]  }
0x1162   :  { %v6047_v22 = vadd.f32 %v5116_v10, %v2503_v48  ;;  %v2507_v23 = vadd.f32 %v2506_v11, %v2327_v63  ;;  %v4777_v63 = vld [vmem:[%s6718_s5 + $0xc4] ss:$24 sps:$4 sm:$0xff]   ;;  %3123 = vmatpush1.bf16.msra.mxu0 %v4772_v51  ;;  %v4234_v51 = vcombine.low %v2659_v27, %v2659_v27 }
0x1163   :  { %v6067_v36 = vadd.f32 %v5119_v34, %v2505_v21  ;;  %3071 = vmatprep.subr.bf16.mxu1 %v4777_v63  ;;  %3124 = vmatprep.subr.bf16.mxu0 %v4780_v8  ;;  %v4796_v34 = vld [vmem:[%s6718_s5 + $0x158] ss:$24 sps:$4 sm:$0xff]   ;;  %v4236_v63 = vcombine.low %v2660_v46, %v2660_v46  ;;  %v4873_v27 = vld [vmem:[%s6720_s7 + $0x124] ss:$8 sps:$4 sm:$0xff]  }
0x1164   :  { %v6057_v61 = vadd.f32 %v5118_v24, %v2507_v23  ;;  %v2525_v60 = vsel %vm42_vm0, %v6047_v22, 0.0  ;;  %3072 = vmatpush1.bf16.msra.mxu1 %v4775_v18  ;;  %v3046_v8 = vsel %vm571_vm1, %v4234_v51, 0  ;;  %v4827_v46 = vld [vmem:[%s6718_s5 + $0x70] ss:$24 sps:$4 sm:$0xff]  }
0x1165   :  { %v2526_v16 = vadd.f32 %v2525_v60, %v6052_v49  ;;  %3073 = vmatprep.subr.bf16.mxu1 %v4783_v0  ;;  %v4795_v60 = vld [vmem:[%s6718_s5 + $0x154] ss:$24 sps:$4 sm:$0xff]   ;;  %v3052_v18 = vsel %vm571_vm1, %v4236_v63, 0  ;;  %v4877_v51 = vld [vmem:[%s6720_s7 + $0x130] ss:$8 sps:$4 sm:$0xff]  }
0x1166   :  { %v2529_v25 = vsel %vm42_vm0, %v6057_v61, 0.0  ;;  %3125 = vmatpush1.bf16.msra.mxu0 %v4778_v20  ;;  %v4823_v20 = vld [vmem:[%s6718_s5 + $0x14] ss:$24 sps:$4 sm:$0xff]  }
0x1167   :  { %2527 = vadd.xlane.f32.xlu0 %v2526_v16  ;;  %v2530_v37 = vadd.f32 %v2529_v25, %v6067_v36  ;;  %3126 = vmatprep.subr.bf16.mxu0 %v4786_v44  ;;  %v4798_v16 = vld [vmem:[%s6718_s5 + $0x15c] ss:$24 sps:$4 sm:$0xff]   ;;  %v4793_v25 = vld [vmem:[%s6718_s5 + $0x150] ss:$24 sps:$4 sm:$0xff]  }
0x1168   :  { %3074 = vmatpush1.bf16.msra.mxu1 %v4781_v35  ;;  %v4835_v63 = vld [vmem:[%s6718_s5 + $0xd4] ss:$24 sps:$4 sm:$0xff]  }
0x1169   :  { %3075 = vmatprep.subr.bf16.mxu1 %v4789_v26 }
0x116a   :  { %3127 = vmatpush1.bf16.msra.mxu0 %v4784_v1 }
0x116b   :  { %2531 = vadd.xlane.f32.xlu0 %v2530_v37  ;;  %3128 = vmatprep.subr.bf16.mxu0 %v4792_v55  ;;  %v4801_v37 = vld [vmem:[%s6718_s5 + $0x184] ss:$24 sps:$4 sm:$0xff]  }
0x116c   :  { %3076 = vmatpush1.bf16.msra.mxu1 %v4787_v2 }
0x116d   :  { %3077 = vmatprep.subr.bf16.mxu1 %v4795_v60 }
0x116e   :  { %3129 = vmatpush1.bf16.msra.mxu0 %v4790_v41 }
0x116f   :  { %3130 = vmatprep.subr.bf16.mxu0 %v4798_v16 }
0x1170   :  { %3078 = vmatpush1.bf16.msra.mxu1 %v4793_v25 }
0x1171   :  { %3079 = vmatprep.subr.bf16.mxu1 %v4801_v37 }
0x1172   :  { %3131 = vmatpush1.bf16.msra.mxu0 %v4796_v34 }
0x1173   :  { %3132 = vmatprep.subr.bf16.mxu0 %v4804_v7 }
0x1174   :  { %3080 = vmatpush1.bf16.msra.mxu1 %v4799_v47 }
0x1175   :  { %3081 = vmatprep.subr.bf16.mxu1 %v4807_v52 }
0x1176   :  { %3133 = vmatpush1.bf16.msra.mxu0 %v4802_v4 }
0x1177   :  { %3134 = vmatprep.subr.bf16.mxu0 %v4810_v54 }
0x1178   :  { %3082 = vmatpush1.bf16.msra.mxu1 %v4805_v53 }
0x1179   :  { %3083 = vmatprep.subr.bf16.mxu1 %v4813_v56  ;;  %v4859_v56 = vld [vmem:[%s6720_s7 + $0x100] ss:$8 sps:$4 sm:$0xff]  }
0x117a   :  { %3135 = vmatpush1.bf16.msra.mxu0 %v4808_v59  ;;  %v4821_v59 = vld [vmem:[%s6718_s5 + $0x10] ss:$24 sps:$4 sm:$0xff]  }
0x117b   :  { %3136 = vmatprep.subr.bf16.mxu0 %v4816_v45  ;;  %v4829_v45 = vld [vmem:[%s6718_s5 + $0x74] ss:$24 sps:$4 sm:$0xff]  }
0x117c   :  { %3084 = vmatpush1.bf16.msra.mxu1 %v4811_v17  ;;  %v4871_v17 = vld [vmem:[%s6720_s7 + $0x120] ss:$8 sps:$4 sm:$0xff]  }
0x117d   :  { %4240 = vmatprep.subr.msk.bf16.mxu1 %vm571_vm1, %v4235_v31  ;;  %v4879_v31 = vld [vmem:[%s6720_s7 + $0x134] ss:$8 sps:$4 sm:$0xff]  }
0x117e   :  { %3137 = vmatpush1.bf16.msra.mxu0 %v4814_v9  ;;  %v4832_v9 = vld [vmem:[%s6718_s5 + $0xa4] ss:$24 sps:$4 sm:$0xff]  }
0x117f   :  { %4243 = vmatprep.subr.msk.bf16.mxu0 %vm571_vm1, %v4237_v42  ;;  %v4830_v42 = vld [vmem:[%s6718_s5 + $0xa0] ss:$24 sps:$4 sm:$0xff]  }
0x1180   :  { %3086 = vmatpush1.bf16.msra.mxu1 %v3046_v8  ;;  %v4885_v8 = vld [vmem:[%s6720_s7 + $0x144] ss:$8 sps:$4 sm:$0xff]  }
0x1181   :  { %3169 = vmatprep.subr.bf16.mxu1 %v4823_v20  ;;  %v4883_v20 = vld [vmem:[%s6720_s7 + $0x140] ss:$8 sps:$4 sm:$0xff]  }
0x1182   :  { %3139 = vmatpush1.bf16.msra.mxu0 %v3052_v18  ;;  %v4833_v18 = vld [vmem:[%s6718_s5 + $0xd0] ss:$24 sps:$4 sm:$0xff]  }
0x11b7   :  { %v2520_v50 = vpop.xlane.xlu0 %2519 }
0x11b8   :  { %v2533_v38 = vmul.f32 0.0054347827, %v2520_v50 }
0x11b9   :  { %v2524_v5 = vpop.xlane.xlu1 %2523 }
0x11ba   :  { %v6155_v6 = vsub.f32 %v6026_v3, %v2533_v38  ;;  %v6158_v39 = vsub.f32 %v6021_v13, %v2533_v38  ;;  %v2534_v40 = vmul.f32 0.0054347827, %v2524_v5 }
0x11bc   :  { %v6161_v57 = vsub.f32 %v6038_v58, %v2534_v40  ;;  %v6164_v62 = vsub.f32 %v6031_v43, %v2534_v40  ;;  %v2545_v48 = vmul.f32 %v6155_v6, %v6155_v6  ;;  %v2546_v19 = vmul.f32 %v6158_v39, %v6158_v39 }
0x11be   :  { %v2553_v21 = vsel %vm42_vm0, %v2546_v19, 0.0  ;;  %v2547_v11 = vmul.f32 %v6161_v57, %v6161_v57  ;;  %v2548_v10 = vmul.f32 %v6164_v62, %v6164_v62 }
0x11bf   :  { %v2554_v23 = vadd.f32 %v2553_v21, %v2545_v48 }
0x11c0   :  { %v2557_v12 = vsel %vm42_vm0, %v2548_v10, 0.0  ;;  %v4861_v10 = vld [vmem:[%s6720_s7 + $0x104] ss:$8 sps:$4 sm:$0xff]  }
0x11c1   :  { %2555 = vadd.xlane.f32.xlu0 %v2554_v23  ;;  %v2558_v24 = vadd.f32 %v2557_v12, %v2547_v11  ;;  %3899 = vmatprep.subr.bf16.mxu0 %v4861_v10  ;;  %v4847_v10 = vld [vmem:[%s6718_s5 + $0x194] ss:$24 sps:$4 sm:$0xff]  }
0x11c3   :  { %2559 = vadd.xlane.f32.xlu1 %v2558_v24 }
0x11f4   :  { %v2528_v0 = vpop.xlane.xlu0 %2527 }
0x11f5   :  { %v2535_v44 = vmul.f32 0.0054347827, %v2528_v0  ;;  %v4838_v0 = vld [vmem:[%s6718_s5 + $0x104] ss:$24 sps:$4 sm:$0xff]  }
0x11f7   :  { %v6238_v35 = vsub.f32 %v6052_v49, %v2535_v44  ;;  %v6241_v1 = vsub.f32 %v6047_v22, %v2535_v44  ;;  %v4891_v44 = vld [vmem:[%s6720_s7 + $0x154] ss:$8 sps:$4 sm:$0xff]  }
0x11f8   :  { %v2532_v26 = vpop.xlane.xlu0 %2531 }
0x11f9   :  { %v2536_v55 = vmul.f32 0.0054347827, %v2532_v26  ;;  %v2549_v2 = vmul.f32 %v6238_v35, %v6238_v35  ;;  %v2550_v41 = vmul.f32 %v6241_v1, %v6241_v1  ;;  %v4836_v26 = vld [vmem:[%s6718_s5 + $0x100] ss:$24 sps:$4 sm:$0xff]  }
0x11fb   :  { %v6248_v50 = vsub.f32 %v6067_v36, %v2536_v55  ;;  %v6251_v38 = vsub.f32 %v6057_v61, %v2536_v55  ;;  %v2561_v5 = vsel %vm42_vm0, %v2550_v41, 0.0  ;;  %v4889_v55 = vld [vmem:[%s6720_s7 + $0x150] ss:$8 sps:$4 sm:$0xff]   ;;  %v4897_v41 = vld [vmem:[%s6720_s7 + $0x164] ss:$8 sps:$4 sm:$0xff]  }
0x11fc   :  { %v2562_v40 = vadd.f32 %v2561_v5, %v2549_v2  ;;  %v4841_v2 = vld [vmem:[%s6718_s5 + $0x134] ss:$24 sps:$4 sm:$0xff]   ;;  %v4839_v5 = vld [vmem:[%s6718_s5 + $0x130] ss:$24 sps:$4 sm:$0xff]  }
0x11fd   :  { %v2551_v48 = vmul.f32 %v6248_v50, %v6248_v50  ;;  %v2552_v19 = vmul.f32 %v6251_v38, %v6251_v38 }
0x11fe   :  { %2563 = vadd.xlane.f32.xlu0 %v2562_v40  ;;  %v4895_v40 = vld [vmem:[%s6720_s7 + $0x160] ss:$8 sps:$4 sm:$0xff]  }
0x11ff   :  { %v2565_v21 = vsel %vm42_vm0, %v2552_v19, 0.0  ;;  %v4903_v19 = vld [vmem:[%s6720_s7 + $0x174] ss:$8 sps:$4 sm:$0xff]  }
0x1200   :  { %v2566_v11 = vadd.f32 %v2565_v21, %v2551_v48  ;;  %v4844_v48 = vld [vmem:[%s6718_s5 + $0x164] ss:$24 sps:$4 sm:$0xff]   ;;  %v4842_v21 = vld [vmem:[%s6718_s5 + $0x160] ss:$24 sps:$4 sm:$0xff]  }
0x1202   :  { %2567 = vadd.xlane.f32.xlu1 %v2566_v11  ;;  %v4901_v11 = vld [vmem:[%s6720_s7 + $0x170] ss:$8 sps:$4 sm:$0xff]  }
0x124e   :  { %v2556_v23 = vpop.xlane.xlu0 %2555 }
0x124f   :  { %v2569_v12 = vmul.f32 0.0054347827, %v2556_v23  ;;  %v4909_v23 = vld [vmem:[%s6720_s7 + $0x184] ss:$8 sps:$4 sm:$0xff]  }
0x1250   :  { %v2560_v24 = vpop.xlane.xlu1 %2559 }
0x1251   :  { %v2573_v60 = vadd.f32 1e-05, %v2569_v12  ;;  %v2570_v16 = vmul.f32 0.0054347827, %v2560_v24  ;;  %v4845_v12 = vld [vmem:[%s6718_s5 + $0x190] ss:$24 sps:$4 sm:$0xff]  }
0x1252   :  { %v4907_v24 = vld [vmem:[%s6720_s7 + $0x180] ss:$8 sps:$4 sm:$0xff]  }
0x1253   :  { %5104 = vrsqrt.f32 %v2573_v60  ;;  %v2574_v25 = vadd.f32 1e-05, %v2570_v16  ;;  %v4850_v60 = vld [vmem:[%s6718_s5 + $0x1c4] ss:$24 sps:$4 sm:$0xff]  }
0x1254   :  { %v4915_v16 = vld [vmem:[%s6720_s7 + $0x194] ss:$8 sps:$4 sm:$0xff]  }
0x1255   :  { %5106 = vrsqrt.f32 %v2574_v25  ;;  %v4848_v25 = vld [vmem:[%s6718_s5 + $0x1c0] ss:$24 sps:$4 sm:$0xff]  }
0x125d   :  { %v5105_v34 = vpop.eup %5104 }
0x125e   :  { %v2582_v7 = vmul.f32 %v5105_v34, %v6158_v39  ;;  %v2581_v4 = vmul.f32 %v5105_v34, %v6155_v6  ;;  %v4826_v39 = vld [vmem:[%s6718_s5 + $0x44] ss:$24 sps:$4 sm:$0xff]   ;;  %v4913_v34 = vld [vmem:[%s6720_s7 + $0x190] ss:$8 sps:$4 sm:$0xff]  }
0x125f   :  { %v5107_v37 = vpop.eup %5106  ;;  %v4867_v6 = vld [vmem:[%s6720_s7 + $0x114] ss:$8 sps:$4 sm:$0xff]  }
0x1260   :  { %v2584_v47 = vmul.f32 %v5107_v37, %v6164_v62  ;;  %v2583_v52 = vmul.f32 %v5107_v37, %v6161_v57  ;;  %v4824_v57 = vld [vmem:[%s6718_s5 + $0x40] ss:$24 sps:$4 sm:$0xff]   ;;  %v4853_v37 = vld [vmem:[%s6718_s5 + $0x1f4] ss:$24 sps:$4 sm:$0xff]  }
0x1261   :  { %v4865_v62 = vld [vmem:[%s6720_s7 + $0x110] ss:$8 sps:$4 sm:$0xff]  }
0x1262   :  { %v6266_v54 = vpack.c.bf16 %v2584_v47, %v2582_v7  ;;  %v6268_v53 = vpack.c.bf16 %v2583_v52, %v2581_v4  ;;  %v4921_v7 = vld [vmem:[%s6720_s7 + $0x1a4] ss:$8 sps:$4 sm:$0xff]   ;;  %v4851_v4 = vld [vmem:[%s6718_s5 + $0x1f0] ss:$24 sps:$4 sm:$0xff]  }
0x1263   :  { %v2661_v47 = vld [vmem:[%s6718_s5 + $0x220] sm:$0xff] }
0x1264   :  { %4241 = vmatprep.mubr.msk.bf16.mxu1 %vm42_vm0, %v6266_v54  ;;  %4244 = vmatprep.mubr.msk.bf16.mxu0 %vm42_vm0, %v6266_v54  ;;  %v4919_v52 = vld [vmem:[%s6720_s7 + $0x1a0] ss:$8 sps:$4 sm:$0xff]  }
0x1265   :  { %3096 = vmatmul.mubr.bf16.vlgmr.msra.gmra.mrb[68].mxu1 %v6268_v53  ;;  %3149 = vmatmul.mubr.bf16.vlgmr.msra.gmra.mrb[60].mxu0 %v6268_v53 }
0x1266   :  { %3170 = vmatpush1.bf16.msra.mxu1 %v4821_v59  ;;  %3900 = vmatpush1.bf16.msra.mxu0 %v4859_v56  ;;  %v4239_v56 = vcombine.high %v2661_v47, %v2661_v47 }
0x1267   :  { %3171 = vmatprep.subr.bf16.mxu1 %v4826_v39  ;;  %3901 = vmatprep.subr.bf16.mxu0 %v4867_v6  ;;  %v4238_v39 = vcombine.low %v2661_v47, %v2661_v47  ;;  %v4927_v6 = vld [vmem:[%s6720_s7 + $0x1b4] ss:$8 sps:$4 sm:$0xff]  }
0x1268   :  { %v4912_v47 = vld [vmem:[%s6720_s7 + $0x94] ss:$8 sps:$4 sm:$0xff]  }
0x126a   :  { %3172 = vmatpush1.bf16.msra.mxu1 %v4824_v57  ;;  %3902 = vmatpush1.bf16.msra.mxu0 %v4865_v62 }
0x126b   :  { %3173 = vmatprep.subr.bf16.mxu1 %v4829_v45  ;;  %3903 = vmatprep.subr.bf16.mxu0 %v4873_v27  ;;  %v4925_v45 = vld [vmem:[%s6720_s7 + $0x1b0] ss:$8 sps:$4 sm:$0xff]  }
0x126e   :  { %3174 = vmatpush1.bf16.msra.mxu1 %v4827_v46  ;;  %3904 = vmatpush1.bf16.msra.mxu0 %v4871_v17  ;;  %v3058_v46 = vsel %vm571_vm1, %v4238_v39, 0  ;;  %v4858_v17 = vld [vmem:[%s6720_s7 + $0x4] ss:$8 sps:$4 sm:$0xff]   ;;  %v4922_v39 = vld [vmem:[%s6720_s7 + $0xb0] ss:$8 sps:$4 sm:$0xff]  }
0x126f   :  { %3175 = vmatprep.subr.bf16.mxu1 %v4832_v9  ;;  %3905 = vmatprep.subr.bf16.mxu0 %v4879_v31  ;;  %v4933_v9 = vld [vmem:[%s6720_s7 + $0x1c4] ss:$8 sps:$4 sm:$0xff]  }
0x1272   :  { %3176 = vmatpush1.bf16.msra.mxu1 %v4830_v42  ;;  %3906 = vmatpush1.bf16.msra.mxu0 %v4877_v51  ;;  %v4931_v51 = vld [vmem:[%s6720_s7 + $0x1c0] ss:$8 sps:$4 sm:$0xff]  }
0x1273   :  { %3177 = vmatprep.subr.bf16.mxu1 %v4835_v63  ;;  %3907 = vmatprep.subr.bf16.mxu0 %v4885_v8  ;;  %v4939_v63 = vld [vmem:[%s6720_s7 + $0x1d4] ss:$8 sps:$4 sm:$0xff]   ;;  %v4937_v8 = vld [vmem:[%s6720_s7 + $0x1d0] ss:$8 sps:$4 sm:$0xff]  }
0x1276   :  { %3178 = vmatpush1.bf16.msra.mxu1 %v4833_v18  ;;  %3908 = vmatpush1.bf16.msra.mxu0 %v4883_v20 }
0x1277   :  { %3179 = vmatprep.subr.bf16.mxu1 %v4838_v0  ;;  %3909 = vmatprep.subr.bf16.mxu0 %v4891_v44 }
0x127a   :  { %3180 = vmatpush1.bf16.msra.mxu1 %v4836_v26  ;;  %3910 = vmatpush1.bf16.msra.mxu0 %v4889_v55 }
0x127b   :  { %3181 = vmatprep.subr.bf16.mxu1 %v4841_v2  ;;  %3911 = vmatprep.subr.bf16.mxu0 %v4897_v41 }
0x127e   :  { %3182 = vmatpush1.bf16.msra.mxu1 %v4839_v5  ;;  %3912 = vmatpush1.bf16.msra.mxu0 %v4895_v40  ;;  %v4874_v5 = vld [vmem:[%s6720_s7 + $0x30] ss:$8 sps:$4 sm:$0xff]   ;;  %v4882_v40 = vld [vmem:[%s6720_s7 + $0x44] ss:$8 sps:$4 sm:$0xff]  }
0x127f   :  { %3183 = vmatprep.subr.bf16.mxu1 %v4844_v48  ;;  %3913 = vmatprep.subr.bf16.mxu0 %v4903_v19  ;;  %v4880_v48 = vld [vmem:[%s6720_s7 + $0x40] ss:$8 sps:$4 sm:$0xff]   ;;  %v4888_v19 = vld [vmem:[%s6720_s7 + $0x54] ss:$8 sps:$4 sm:$0xff]  }
0x1282   :  { %3184 = vmatpush1.bf16.msra.mxu1 %v4842_v21  ;;  %3914 = vmatpush1.bf16.msra.mxu0 %v4901_v11  ;;  %v4945_v21 = vld [vmem:[%s6720_s7 + $0x1e4] ss:$8 sps:$4 sm:$0xff]   ;;  %v4943_v11 = vld [vmem:[%s6720_s7 + $0x1e0] ss:$8 sps:$4 sm:$0xff]  }
0x1283   :  { %3185 = vmatprep.subr.bf16.mxu1 %v4847_v10  ;;  %3915 = vmatprep.subr.bf16.mxu0 %v4909_v23  ;;  %v4886_v10 = vld [vmem:[%s6720_s7 + $0x50] ss:$8 sps:$4 sm:$0xff]   ;;  %v4894_v23 = vld [vmem:[%s6720_s7 + $0x64] ss:$8 sps:$4 sm:$0xff]  }
0x1286   :  { %3186 = vmatpush1.bf16.msra.mxu1 %v4845_v12  ;;  %3916 = vmatpush1.bf16.msra.mxu0 %v4907_v24  ;;  %v4951_v12 = vld [vmem:[%s6720_s7 + $0x1f4] ss:$8 sps:$4 sm:$0xff]   ;;  %v4949_v24 = vld [vmem:[%s6720_s7 + $0x1f0] ss:$8 sps:$4 sm:$0xff]  }
0x1287   :  { %3187 = vmatprep.subr.bf16.mxu1 %v4850_v60  ;;  %3917 = vmatprep.subr.bf16.mxu0 %v4915_v16  ;;  %v4892_v60 = vld [vmem:[%s6720_s7 + $0x60] ss:$8 sps:$4 sm:$0xff]   ;;  %v4900_v16 = vld [vmem:[%s6720_s7 + $0x74] ss:$8 sps:$4 sm:$0xff]  }
0x128a   :  { %3188 = vmatpush1.bf16.msra.mxu1 %v4848_v25  ;;  %3918 = vmatpush1.bf16.msra.mxu0 %v4913_v34  ;;  %v4954_v25 = vld [vmem:[%s6720_s7 + $0x204] ss:$8 sps:$4 sm:$0xff]   ;;  %v4898_v34 = vld [vmem:[%s6720_s7 + $0x70] ss:$8 sps:$4 sm:$0xff]  }
0x128b   :  { %v2564_v59 = vpop.xlane.xlu0 %2563  ;;  %3189 = vmatprep.subr.bf16.mxu1 %v4853_v37  ;;  %3919 = vmatprep.subr.bf16.mxu0 %v4921_v7  ;;  %v4906_v37 = vld [vmem:[%s6720_s7 + $0x84] ss:$8 sps:$4 sm:$0xff]   ;;  %v4904_v7 = vld [vmem:[%s6720_s7 + $0x80] ss:$8 sps:$4 sm:$0xff]  }
0x128c   :  { %v2571_v57 = vmul.f32 0.0054347827, %v2564_v59  ;;  %v4916_v59 = vld [vmem:[%s6720_s7 + $0xa0] ss:$8 sps:$4 sm:$0xff]  }
0x128e   :  { %v2575_v62 = vadd.f32 1e-05, %v2571_v57  ;;  %3190 = vmatpush1.bf16.msra.mxu1 %v4851_v4  ;;  %3920 = vmatpush1.bf16.msra.mxu0 %v4919_v52  ;;  %v4910_v4 = vld [vmem:[%s6720_s7 + $0x90] ss:$8 sps:$4 sm:$0xff]   ;;  %v4918_v52 = vld [vmem:[%s6720_s7 + $0xa4] ss:$8 sps:$4 sm:$0xff]  }
0x128f   :  { %v2568_v27 = vpop.xlane.xlu1 %2567  ;;  %4246 = vmatprep.subr.msk.bf16.mxu1 %vm571_vm1, %v4239_v56  ;;  %3921 = vmatprep.subr.bf16.mxu0 %v4927_v6  ;;  %v4924_v56 = vld [vmem:[%s6720_s7 + $0xb4] ss:$8 sps:$4 sm:$0xff]   ;;  %v4930_v6 = vld [vmem:[%s6720_s7 + $0xc4] ss:$8 sps:$4 sm:$0xff]   ;;  %v4928_v57 = vld [vmem:[%s6720_s7 + $0xc0] ss:$8 sps:$4 sm:$0xff]  }
0x1290   :  { %v2572_v31 = vmul.f32 0.0054347827, %v2568_v27  ;;  %5108 = vrsqrt.f32 %v2575_v62  ;;  %v4936_v62 = vld [vmem:[%s6720_s7 + $0xd4] ss:$8 sps:$4 sm:$0xff]   ;;  %v4942_v27 = vld [vmem:[%s6720_s7 + $0xe4] ss:$8 sps:$4 sm:$0xff]  }
0x1292   :  { %v2576_v42 = vadd.f32 1e-05, %v2572_v31  ;;  %3192 = vmatpush1.bf16.msra.mxu1 %v3058_v46  ;;  %3922 = vmatpush1.bf16.msra.mxu0 %v4925_v45  ;;  %v4934_v45 = vld [vmem:[%s6720_s7 + $0xd0] ss:$8 sps:$4 sm:$0xff]   ;;  %v4940_v46 = vld [vmem:[%s6720_s7 + $0xe0] ss:$8 sps:$4 sm:$0xff]  }
0x1293   :  { %3846 = vmatprep.subr.bf16.mxu1 %v4858_v17  ;;  %3923 = vmatprep.subr.bf16.mxu0 %v4933_v9  ;;  %v4948_v17 = vld [vmem:[%s6720_s7 + $0xf4] ss:$8 sps:$4 sm:$0xff]   ;;  %v4946_v9 = vld [vmem:[%s6720_s7 + $0xf0] ss:$8 sps:$4 sm:$0xff]   ;;  %v6549_v31 = vld [vmem:[%s6719_s6] sm:$0x3f] }
0x1294   :  { %5110 = vrsqrt.f32 %v2576_v42  ;;  %v6553_v42 = vrot.slane %v6549_v31, %v5541_v29 }
0x1296   :  { %3924 = vmatpush1.bf16.msra.mxu0 %v4931_v51  ;;  %v6558_v51 = vrot.slane %v6549_v31, %v200_v14 }
0x1297   :  { %3925 = vmatprep.subr.bf16.mxu0 %v4939_v63  ;;  %v6562_v63 = vrot.slane %v6549_v31, %v5548_v32 }
0x129a   :  { %3926 = vmatpush1.bf16.msra.mxu0 %v4937_v8  ;;  %v5109_v18 = vpop.eup %5108  ;;  %v6567_v8 = vrot.slane %v6549_v31, %v204_v15 }
0x129b   :  { %v2586_v0 = vmul.f32 %v5109_v18, %v6241_v1  ;;  %v2585_v26 = vmul.f32 %v5109_v18, %v6238_v35  ;;  %v4856_v1 = vld [vmem:[%s6720_s7] ss:$8 sps:$4 sm:$0xff]   ;;  %v4864_v35 = vld [vmem:[%s6720_s7 + $0x14] ss:$8 sps:$4 sm:$0xff]   ;;  %3927 = vmatprep.subr.bf16.mxu0 %v4945_v21 }
0x129e   :  { %v5111_v20 = vpop.eup %5110  ;;  %3928 = vmatpush1.bf16.msra.mxu0 %v4943_v11 }
0x129f   :  { %v2588_v44 = vmul.f32 %v5111_v20, %v6251_v38  ;;  %v2587_v55 = vmul.f32 %v5111_v20, %v6248_v50  ;;  %v4862_v50 = vld [vmem:[%s6720_s7 + $0x10] ss:$8 sps:$4 sm:$0xff]   ;;  %v4870_v38 = vld [vmem:[%s6720_s7 + $0x24] ss:$8 sps:$4 sm:$0xff]   ;;  %3929 = vmatprep.subr.bf16.mxu0 %v4951_v12 }
0x12a1   :  { %v2592_v2 = vpack.c.bf16 %v2588_v44, %v2586_v0  ;;  %v2591_v41 = vpack.c.bf16 %v2587_v55, %v2585_v26 }
0x12a2   :  { %3930 = vmatpush1.bf16.msra.mxu0 %v4949_v24 }
0x12a3   :  { %4242 = vmatprep.mubr.msk.bf16.mxu1 %vm42_vm0, %v2592_v2  ;;  %4245 = vmatprep.mubr.msk.bf16.mxu0 %vm42_vm0, %v2592_v2 }
0x12a4   :  { %3106 = vmatmul.mubr.bf16.gmra.mrb[72].mxu1 %v2591_v41  ;;  %3159 = vmatmul.mubr.bf16.gmra.mrb[64].mxu0 %v2591_v41 }
0x12a5   :  { %4247 = vmatprep.mubr.msk.bf16.mxu1 %vm42_vm0, %v6266_v54  ;;  %v4868_v54 = vld [vmem:[%s6720_s7 + $0x20] ss:$8 sps:$4 sm:$0xff]   ;;  %3952 = vmatprep.subr.bf16.mxu0 %v4954_v25 }
0x12a6   :  { %v4952_v25 = vld [vmem:[%s6720_s7 + $0x200] ss:$8 sps:$4 sm:$0xff]  }
0x12ac   :  { %3202 = vmatmul.mubr.bf16.vlgmr.msra.gmra.mrb[76].mxu1 %v6268_v53  ;;  %v4876_v53 = vld [vmem:[%s6720_s7 + $0x34] ss:$8 sps:$4 sm:$0xff]  }
0x12ad   :  { %4248 = vmatprep.mubr.msk.bf16.mxu1 %vm42_vm0, %v2592_v2  ;;  %3847 = vmatpush1.bf16.msra.mxu1 %v4856_v1 }
0x12ae   :  { %3848 = vmatprep.subr.bf16.mxu1 %v4864_v35 }
0x12b1   :  { %3849 = vmatpush1.bf16.msra.mxu1 %v4862_v50 }
0x12b2   :  { %3850 = vmatprep.subr.bf16.mxu1 %v4870_v38 }
0x12b4   :  { %3212 = vmatmul.mubr.bf16.gmra.mrb[80].mxu1 %v2591_v41 }
0x12b5   :  { %3851 = vmatpush1.bf16.msra.mxu1 %v4868_v54 }
0x12b6   :  { %3852 = vmatprep.subr.bf16.mxu1 %v4876_v53 }
0x12b9   :  { %3853 = vmatpush1.bf16.msra.mxu1 %v4874_v5 }
0x12ba   :  { %3854 = vmatprep.subr.bf16.mxu1 %v4882_v40 }
0x12bd   :  { %3855 = vmatpush1.bf16.msra.mxu1 %v4880_v48 }
0x12be   :  { %3856 = vmatprep.subr.bf16.mxu1 %v4888_v19 }
0x12c1   :  { %3857 = vmatpush1.bf16.msra.mxu1 %v4886_v10 }
0x12c2   :  { %3858 = vmatprep.subr.bf16.mxu1 %v4894_v23 }
0x12c5   :  { %3859 = vmatpush1.bf16.msra.mxu1 %v4892_v60 }
0x12c6   :  { %3860 = vmatprep.subr.bf16.mxu1 %v4900_v16 }
0x12c9   :  { %3861 = vmatpush1.bf16.msra.mxu1 %v4898_v34  ;;  %v4957_v34 = vld [vmem:[%s6720_s7 + $0x214] ss:$8 sps:$4 sm:$0xff]  }
0x12ca   :  { %3862 = vmatprep.subr.bf16.mxu1 %v4906_v37  ;;  %v4955_v37 = vld [vmem:[%s6720_s7 + $0x210] ss:$8 sps:$4 sm:$0xff]  }
0x12cd   :  { %3863 = vmatpush1.bf16.msra.mxu1 %v4904_v7  ;;  %v4960_v7 = vld [vmem:[%s6720_s7 + $0x224] ss:$8 sps:$4 sm:$0xff]  }
0x12ce   :  { %3864 = vmatprep.subr.bf16.mxu1 %v4912_v47  ;;  %v4958_v47 = vld [vmem:[%s6720_s7 + $0x220] ss:$8 sps:$4 sm:$0xff]  }
0x12d1   :  { %3865 = vmatpush1.bf16.msra.mxu1 %v4910_v4  ;;  %v4963_v4 = vld [vmem:[%s6720_s7 + $0x234] ss:$8 sps:$4 sm:$0xff]  }
0x12d2   :  { %3866 = vmatprep.subr.bf16.mxu1 %v4918_v52  ;;  %v4961_v52 = vld [vmem:[%s6720_s7 + $0x230] ss:$8 sps:$4 sm:$0xff]  }
0x12d5   :  { %3867 = vmatpush1.bf16.msra.mxu1 %v4916_v59  ;;  %v4966_v59 = vld [vmem:[%s6720_s7 + $0x244] ss:$8 sps:$4 sm:$0xff]  }
0x12d6   :  { %3868 = vmatprep.subr.bf16.mxu1 %v4924_v56  ;;  %v4964_v56 = vld [vmem:[%s6720_s7 + $0x240] ss:$8 sps:$4 sm:$0xff]  }
0x12d9   :  { %3869 = vmatpush1.bf16.msra.mxu1 %v4922_v39  ;;  %v4969_v39 = vld [vmem:[%s6720_s7 + $0x254] ss:$8 sps:$4 sm:$0xff]  }
0x12da   :  { %3870 = vmatprep.subr.bf16.mxu1 %v4930_v6  ;;  %v4967_v6 = vld [vmem:[%s6720_s7 + $0x250] ss:$8 sps:$4 sm:$0xff]  }
0x12dd   :  { %3871 = vmatpush1.bf16.msra.mxu1 %v4928_v57  ;;  %v4972_v57 = vld [vmem:[%s6720_s7 + $0x264] ss:$8 sps:$4 sm:$0xff]  }
0x12de   :  { %3872 = vmatprep.subr.bf16.mxu1 %v4936_v62  ;;  %v4970_v62 = vld [vmem:[%s6720_s7 + $0x260] ss:$8 sps:$4 sm:$0xff]  }
0x12e1   :  { %3873 = vmatpush1.bf16.msra.mxu1 %v4934_v45  ;;  %v4975_v45 = vld [vmem:[%s6720_s7 + $0x274] ss:$8 sps:$4 sm:$0xff]  }
0x12e2   :  { %3874 = vmatprep.subr.bf16.mxu1 %v4942_v27  ;;  %v4973_v27 = vld [vmem:[%s6720_s7 + $0x270] ss:$8 sps:$4 sm:$0xff]  }
0x12e5   :  { %3875 = vmatpush1.bf16.msra.mxu1 %v4940_v46  ;;  %v4978_v46 = vld [vmem:[%s6720_s7 + $0x284] ss:$8 sps:$4 sm:$0xff]  }
0x12e6   :  { %3876 = vmatprep.subr.bf16.mxu1 %v4948_v17  ;;  %v4976_v17 = vld [vmem:[%s6720_s7 + $0x280] ss:$8 sps:$4 sm:$0xff]  }
0x12e9   :  { %3877 = vmatpush1.bf16.msra.mxu1 %v4946_v9  ;;  %v4981_v9 = vld [vmem:[%s6720_s7 + $0x294] ss:$8 sps:$4 sm:$0xff]  }
0x1338   :  { %v3097_v18 = vpop.f32.mrb[68].mxu1  ;;  %v3150_v20 = vpop.f32.mrb[60].mxu0 }
0x1339   :  { %v3098_v0 = vadd.f32 %v3097_v18, %v6553_v42  ;;  %v3151_v44 = vadd.f32 %v3150_v20, %v6558_v51  ;;  %v3099_v26 = vpop.f32.mrb[69].mxu1  ;;  %v3152_v55 = vpop.f32.mrb[61].mxu0  ;;  %v4979_v18 = vld [vmem:[%s6720_s7 + $0x290] ss:$8 sps:$4 sm:$0xff]   ;;  %v4984_v20 = vld [vmem:[%s6720_s7 + $0x2a4] ss:$8 sps:$4 sm:$0xff]  }
0x133a   :  { %v3100_v14 = vadd.f32 %v3099_v26, %v6562_v63  ;;  %v3153_v2 = vadd.f32 %v3152_v55, %v6567_v8  ;;  %v3101_v41 = vpop.f32.mrb[70].mxu1  ;;  %v3154_v1 = vpop.f32.mrb[62].mxu0  ;;  %v4985_v26 = vld [vmem:[%s6720_s7 + $0x2b0] ss:$8 sps:$4 sm:$0xff]   ;;  %v4990_v55 = vld [vmem:[%s6720_s7 + $0x2c4] ss:$8 sps:$4 sm:$0xff]  }
0x133b   :  { %v3102_v35 = vadd.f32 %v3101_v41, %v6553_v42  ;;  %v3155_v50 = vadd.f32 %v3154_v1, %v6558_v51  ;;  %v3103_v15 = vpop.f32.mrb[71].mxu1  ;;  %v3156_v38 = vpop.f32.mrb[63].mxu0  ;;  %v3222_v5 = vmax.f32 %v3098_v0, 0.0  ;;  %v3224_v40 = vmax.f32 %v3151_v44, 0.0  ;;  %v4982_v0 = vld [vmem:[%s6720_s7 + $0x2a0] ss:$8 sps:$4 sm:$0xff]  }
0x133c   :  { %v3104_v54 = vadd.f32 %v3103_v15, %v6562_v63  ;;  %v3157_v53 = vadd.f32 %v3156_v38, %v6567_v8  ;;  %v3223_v21 = vmax.f32 %v3100_v14, 0.0  ;;  %v3225_v11 = vmax.f32 %v3153_v2, 0.0  ;;  %v4987_v44 = vld [vmem:[%s6720_s7 + $0x2b4] ss:$8 sps:$4 sm:$0xff]   ;;  %v4988_v14 = vld [vmem:[%s6720_s7 + $0x2c0] ss:$8 sps:$4 sm:$0xff]  }
0x133d   :  { %v3228_v48 = vmax.f32 %v3102_v35, 0.0  ;;  %v3230_v19 = vmax.f32 %v3155_v50, 0.0  ;;  %v4993_v2 = vld [vmem:[%s6720_s7 + $0x2d4] ss:$8 sps:$4 sm:$0xff]   ;;  %v4991_v41 = vld [vmem:[%s6720_s7 + $0x2d0] ss:$8 sps:$4 sm:$0xff]  }
0x133e   :  { %v3229_v10 = vmax.f32 %v3104_v54, 0.0  ;;  %v3231_v23 = vmax.f32 %v3157_v53, 0.0  ;;  %v4996_v1 = vld [vmem:[%s6720_s7 + $0x2e4] ss:$8 sps:$4 sm:$0xff]  }
0x133f   :  { %v3246_v12 = vpack.c.bf16 %v3228_v48, %v3222_v5  ;;  %v3248_v24 = vpack.c.bf16 %v3230_v19, %v3224_v40  ;;  %v4994_v5 = vld [vmem:[%s6720_s7 + $0x2e0] ss:$8 sps:$4 sm:$0xff]  }
0x1340   :  { %v3247_v60 = vpack.c.bf16 %v3229_v10, %v3223_v21  ;;  %v3249_v16 = vpack.c.bf16 %v3231_v23, %v3225_v11  ;;  %v4999_v11 = vld [vmem:[%s6720_s7 + $0x2f4] ss:$8 sps:$4 sm:$0xff]  }
0x1342   :  { %3878 = vmatprep.mubr.bf16.mxu1 %v3247_v60  ;;  %3931 = vmatprep.mubr.bf16.mxu0 %v3249_v16 }
0x1343   :  { %3879 = vmatmul.mubr.bf16.vlgmr.msra.gmra.mrb[84].mxu1 %v3246_v12  ;;  %3932 = vmatmul.mubr.bf16.vlgmr.msra.gmra.mrb[68].mxu0 %v3248_v24 }
0x1344   :  { %3953 = vmatpush1.bf16.msra.mxu0 %v4952_v25  ;;  %v2683_v25 = vrot.slane %v6549_v31, %v208_v30 }
0x1345   :  { %3954 = vmatprep.subr.bf16.mxu0 %v4957_v34  ;;  %v2687_v34 = vrot.slane %v6549_v31, %v212_v33 }
0x1348   :  { %3955 = vmatpush1.bf16.msra.mxu0 %v4955_v37 }
0x1349   :  { %3956 = vmatprep.subr.bf16.mxu0 %v4960_v7 }
0x134c   :  { %3957 = vmatpush1.bf16.msra.mxu0 %v4958_v47 }
0x134d   :  { %3958 = vmatprep.subr.bf16.mxu0 %v4963_v4 }
0x1350   :  { %3959 = vmatpush1.bf16.msra.mxu0 %v4961_v52 }
0x1351   :  { %3960 = vmatprep.subr.bf16.mxu0 %v4966_v59 }
0x1354   :  { %3961 = vmatpush1.bf16.msra.mxu0 %v4964_v56 }
0x1355   :  { %3962 = vmatprep.subr.bf16.mxu0 %v4969_v39 }
0x1358   :  { %3963 = vmatpush1.bf16.msra.mxu0 %v4967_v6 }
0x1359   :  { %3964 = vmatprep.subr.bf16.mxu0 %v4972_v57 }
0x135c   :  { %3965 = vmatpush1.bf16.msra.mxu0 %v4970_v62 }
0x135d   :  { %3966 = vmatprep.subr.bf16.mxu0 %v4975_v45 }
0x1360   :  { %3967 = vmatpush1.bf16.msra.mxu0 %v4973_v27 }
0x1361   :  { %3968 = vmatprep.subr.bf16.mxu0 %v4978_v46 }
0x1364   :  { %3969 = vmatpush1.bf16.msra.mxu0 %v4976_v17 }
0x1365   :  { %3970 = vmatprep.subr.bf16.mxu0 %v4981_v9 }
0x1368   :  { %3971 = vmatpush1.bf16.msra.mxu0 %v4979_v18 }
0x1369   :  { %3972 = vmatprep.subr.bf16.mxu0 %v4984_v20 }
0x136c   :  { %3973 = vmatpush1.bf16.msra.mxu0 %v4982_v0 }
0x136d   :  { %3974 = vmatprep.subr.bf16.mxu0 %v4987_v44 }
0x1370   :  { %3975 = vmatpush1.bf16.msra.mxu0 %v4985_v26 }
0x1371   :  { %3976 = vmatprep.subr.bf16.mxu0 %v4990_v55 }
0x1374   :  { %3977 = vmatpush1.bf16.msra.mxu0 %v4988_v14 }
0x1375   :  { %3978 = vmatprep.subr.bf16.mxu0 %v4993_v2 }
0x1377   :  { %v3107_v35 = vpop.f32.mrb[72].mxu1  ;;  %v3160_v50 = vpop.f32.mrb[64].mxu0 }
0x1378   :  { %v3108_v15 = vadd.f32 %v3107_v35, %v6553_v42  ;;  %v3161_v38 = vadd.f32 %v3160_v50, %v6558_v51  ;;  %v3109_v54 = vpop.f32.mrb[73].mxu1  ;;  %v3162_v53 = vpop.f32.mrb[65].mxu0  ;;  %3979 = vmatpush1.bf16.msra.mxu0 %v4991_v41 }
0x1379   :  { %v3110_v40 = vadd.f32 %v3109_v54, %v6562_v63  ;;  %v3163_v48 = vadd.f32 %v3162_v53, %v6567_v8  ;;  %v3111_v19 = vpop.f32.mrb[74].mxu1  ;;  %v3164_v21 = vpop.f32.mrb[66].mxu0  ;;  %3980 = vmatprep.subr.bf16.mxu0 %v4996_v1 }
0x137a   :  { %v3112_v10 = vadd.f32 %v3111_v19, %v6553_v42  ;;  %v3165_v23 = vadd.f32 %v3164_v21, %v6558_v51  ;;  %v3113_v12 = vpop.f32.mrb[75].mxu1  ;;  %v3166_v24 = vpop.f32.mrb[67].mxu0  ;;  %v3234_v37 = vmax.f32 %v3108_v15, 0.0  ;;  %v3236_v7 = vmax.f32 %v3161_v38, 0.0  ;;  %v4997_v51 = vld [vmem:[%s6720_s7 + $0x2f0] ss:$8 sps:$4 sm:$0xff]  }
0x137b   :  { %v3114_v60 = vadd.f32 %v3113_v12, %v6562_v63  ;;  %v3167_v16 = vadd.f32 %v3166_v24, %v6567_v8  ;;  %v3235_v63 = vmax.f32 %v3110_v40, 0.0  ;;  %v3237_v4 = vmax.f32 %v3163_v48, 0.0 }
0x137c   :  { %v3240_v47 = vmax.f32 %v3112_v10, 0.0  ;;  %v3242_v42 = vmax.f32 %v3165_v23, 0.0  ;;  %3981 = vmatpush1.bf16.msra.mxu0 %v4994_v5 }
0x137d   :  { %v3241_v8 = vmax.f32 %v3114_v60, 0.0  ;;  %v3243_v52 = vmax.f32 %v3167_v16, 0.0  ;;  %3982 = vmatprep.subr.bf16.mxu0 %v4999_v11  ;;  %v3354_v11 = vld [vmem:[%s6721_s8] sm:$0x3]  ;;  %s5150_s8 = smov [#allocation2]  }
0x137e   :  { %v3252_v59 = vpack.c.bf16 %v3240_v47, %v3234_v37  ;;  %v3254_v30 = vpack.c.bf16 %v3242_v42, %v3236_v7  ;;  %v3359_v24 = vrot.slane %v3354_v11, %v5541_v29  ;;  %v3363_v16 = vrot.slane %v3354_v11, %v5548_v32  ;;  %s4026_s25 = sshll.u32 %s5150_s8, 4  ;;  %s4027_s25 = int_to_ptr.vmem [resolvable:$true] %s4026_s25 }
0x137f   :  { %v3253_v56 = vpack.c.bf16 %v3241_v8, %v3235_v63  ;;  %v3255_v28 = vpack.c.bf16 %v3243_v52, %v3237_v4  ;;  %v3203_v39 = vpop.f32.mrb[76].mxu1  ;;  %s5120_s4 = scalar_lea.vmem %s4027_s25, 1024  ;;  %p5125_p1 = scmp.lt.s32.totalorder %s4027_s25, %s4027_s25 }
0x1380   :  { %v3204_v33 = vadd.f32 %v3203_v39, %v2683_v25  ;;  %v3205_v31 = vpop.f32.mrb[77].mxu1  ;;  %3983 = vmatpush1.bf16.msra.mxu0 %v4997_v51  ;;  %p5121_p0 = scmp.ne.s32.totalorder %s4027_s25, %s5120_s4  ;;  %p5126_p2 = scmp.lt.s32.totalorder %s5120_s4, %s5120_s4 }
0x1381   :  { %v3206_v6 = vadd.f32 %v3205_v31, %v2687_v34  ;;  %v3207_v57 = vpop.f32.mrb[78].mxu1  ;;  %3888 = vmatprep.mubr.bf16.mxu1 %v3253_v56  ;;  %3941 = vmatprep.mubr.bf16.mxu0 %v3255_v28 }
0x1382   :  { %v3208_v62 = vadd.f32 %v3207_v57, %v2683_v25  ;;  %v3209_v45 = vpop.f32.mrb[79].mxu1  ;;  %3889 = vmatmul.mubr.bf16.gmra.mrb[88].mxu1 %v3252_v59  ;;  %3942 = vmatmul.mubr.bf16.gmra.mrb[72].mxu0 %v3254_v30  ;;  %v3226_v46 = vmax.f32 %v3204_v33, 0.0  ;;  %p5127_p3 = por %p5126_p2, %p5125_p1 }
0x1383   :  { %v3210_v27 = vadd.f32 %v3209_v45, %v2687_v34  ;;  %v3227_v9 = vmax.f32 %v3206_v6, 0.0 }
0x1384   :  { %v3232_v17 = vmax.f32 %v3208_v62, 0.0  ;;  %p5128_p4 = pnand %p5127_p3, %p5121_p0 }
0x1385   :  { %v3233_v18 = vmax.f32 %v3210_v27, 0.0 }
0x1386   :  { %v3250_v20 = vpack.c.bf16 %v3232_v17, %v3226_v46 }
0x1387   :  { %v3251_v0 = vpack.c.bf16 %v3233_v18, %v3227_v9  ;;  %v3213_v44 = vpop.f32.mrb[80].mxu1 }
0x1388   :  { %v3214_v26 = vadd.f32 %v3213_v44, %v2683_v25  ;;  %v3215_v55 = vpop.f32.mrb[81].mxu1 }
0x1389   :  { %v3216_v14 = vadd.f32 %v3215_v55, %v2687_v34  ;;  %v3217_v2 = vpop.f32.mrb[82].mxu1  ;;  %3984 = vmatprep.mubr.bf16.mxu0 %v3251_v0 }
0x138a   :  { %v3218_v41 = vadd.f32 %v3217_v2, %v2683_v25  ;;  %v3219_v1 = vpop.f32.mrb[83].mxu1  ;;  %3985 = vmatmul.mubr.bf16.vlgmr.msra.gmra.mrb[68].mxu0 %v3250_v20  ;;  %v3238_v50 = vmax.f32 %v3214_v26, 0.0 }
0x138b   :  { %v3220_v35 = vadd.f32 %v3219_v1, %v2687_v34  ;;  %v3239_v38 = vmax.f32 %v3216_v14, 0.0 }
0x138c   :  { %v3244_v15 = vmax.f32 %v3218_v41, 0.0 }
0x138d   :  { %v3245_v54 = vmax.f32 %v3220_v35, 0.0 }
0x138e   :  { %v3256_v53 = vpack.c.bf16 %v3244_v15, %v3238_v50 }
0x138f   :  { %v3257_v5 = vpack.c.bf16 %v3245_v54, %v3239_v38 }
0x1391   :  { %3994 = vmatprep.mubr.bf16.mxu0 %v3257_v5 }
0x1392   :  { %3995 = vmatmul.mubr.bf16.gmra.mrb[72].mxu0 %v3256_v53 }
0x1416   :  { %v3880_v40 = vpop.f32.mrb[84].mxu1 }
0x1417   :  { %v3882_v48 = vpop.f32.mrb[85].mxu1  ;;  %v3881_v25 = vadd.f32 %v3880_v40, %v3359_v24 }
0x1418   :  { %v3884_v19 = vpop.f32.mrb[86].mxu1  ;;  %v3883_v34 = vadd.f32 %v3882_v48, %v3363_v16 }
0x1419   :  { %v3886_v21 = vpop.f32.mrb[87].mxu1  ;;  %v3885_v7 = vadd.f32 %v3884_v19, %v3359_v24 }
0x141a   :  { %v3887_v51 = vadd.f32 %v3886_v21, %v3363_v16 }
0x1455   :  { %v3890_v10 = vpop.f32.mrb[88].mxu1 }
0x1456   :  { %v3892_v23 = vpop.f32.mrb[89].mxu1  ;;  %v3891_v28 = vadd.f32 %v3890_v10, %v3359_v24 }
0x1457   :  { %v3894_v12 = vpop.f32.mrb[90].mxu1  ;;  %v3893_v39 = vadd.f32 %v3892_v23, %v3363_v16 }
0x1458   :  { %v3896_v60 = vpop.f32.mrb[91].mxu1  ;;  %v3895_v31 = vadd.f32 %v3894_v12, %v3359_v24 }
0x1459   :  { %v3897_v57 = vadd.f32 %v3896_v60, %v3363_v16 }
0x145d   :  { %v3986_v37 = vpop.f32.mrb[68].mxu0 }
0x145e   :  { %v4538_v47 = vadd.f32 %v3986_v37, %v3881_v25  ;;  %v3988_v42 = vpop.f32.mrb[69].mxu0 }
0x145f   :  { %v4540_v63 = vadd.f32 %v3988_v42, %v3883_v34  ;;  %v3990_v4 = vpop.f32.mrb[70].mxu0 }
0x1460   :  { %v4005_v8 = vadd.f32 %v4538_v47, %v6026_v3  ;;  %v4542_v52 = vadd.f32 %v3990_v4, %v3885_v7  ;;  %v3992_v59 = vpop.f32.mrb[71].mxu0 }
0x1461   :  { %v4006_v30 = vadd.f32 %v4540_v63, %v6021_v13  ;;  %v4544_v56 = vadd.f32 %v3992_v59, %v3887_v51 }
0x1462   :  { %4013 = vst [vmem:[#allocation2] sm:$0xff] %v4005_v8  ;;  %v4007_v29 = vadd.f32 %v4542_v52, %v6038_v58 }
0x1463   :  { %4014 = vst.msk [vmem:[#allocation2 + $0x8] sm:$0xff] %vm42_vm0, %v4006_v30  ;;  %v4008_v32 = vadd.f32 %v4544_v56, %v6031_v43 }
0x1464   :  { %4015 = vst [vmem:[#allocation2 + $0x10] sm:$0xff] %v4007_v29 }
0x1465   :  { %4016 = vst.msk [vmem:[#allocation2 + $0x18] sm:$0xff] %vm42_vm0, %v4008_v32  ;;  %v3996_v33 = vpop.f32.mrb[72].mxu0 }
0x1466   :  { %v4546_v3 = vadd.f32 %v3996_v33, %v3891_v28  ;;  %v3998_v6 = vpop.f32.mrb[73].mxu0 }
0x1467   :  { %v4548_v62 = vadd.f32 %v3998_v6, %v3893_v39  ;;  %v4000_v13 = vpop.f32.mrb[74].mxu0 }
0x1468   :  { %v4009_v45 = vadd.f32 %v4546_v3, %v6052_v49  ;;  %v4550_v27 = vadd.f32 %v4000_v13, %v3895_v31  ;;  %v4002_v58 = vpop.f32.mrb[75].mxu0 }
0x1469   :  { %v4010_v43 = vadd.f32 %v4548_v62, %v6047_v22  ;;  %v4552_v46 = vadd.f32 %v4002_v58, %v3897_v57 }
0x146a   :  { %4017 = vst [vmem:[#allocation2 + $0x20] sm:$0xff] %v4009_v45  ;;  %v4011_v17 = vadd.f32 %v4550_v27, %v6067_v36 }
0x146b   :  { %4018 = vst.msk [vmem:[#allocation2 + $0x28] sm:$0xff] %vm42_vm0, %v4010_v43  ;;  %v4012_v9 = vadd.f32 %v4552_v46, %v6057_v61 }
0x146c   :  { %4019 = vst [vmem:[#allocation2 + $0x30] sm:$0xff] %v4011_v17 }
0x146d   :  { %4020 = vst.msk [vmem:[#allocation2 + $0x38] sm:$0xff] %vm42_vm0, %v4012_v9 }
0x146e   :  { %5131 = shalt.err (!%p5128_p4)
}
0x146f   :  { %s5132_s28 = scalar_lea.hbm %s6722_s9, 1024 }
0x1470   :  { %p5133_p5 = scmp.ne.s32.totalorder %s6722_s9, %s5132_s28  ;;  %p5136_p6 = scmp.lt.u32.totalorder %s5132_s28, %s6722_s9 }
0x1472   :  { %p5138_p7 = pnand %p5136_p6, %p5133_p5 }
0x1474   :  { %5141 = shalt.err (!%p5138_p7)
}
0x1475   :  { %s5151_s12 = smov 256   ;;  %s5152_s13 = smov 16  }
0x1476   :  { %4032 = dma.vmem_to_hbm [thread:$0]  %s4027_s25, 1024, %s6722_s9, [#allocation3], %s5151_s12, %s5151_s12, %s5152_s13  }
0x1477   :  { %5142 = dma.done.wait [#allocation3], 1024  }
0x1478   :  { %5143 = vsyncadd [#allocation3], 4294966272 }
0x1479   :  { %4036 = vsyncpa [#allocation3], 1 }

</bundles_post_ra>
